<compile_context>
chip_gen: v7x
topology: tpu7x:2x2x1
jax: 0.10.0
libtpu: 0.0.40
codegen_flags: <defaults>
</compile_context>

<pallas_src>
import math

import jax
import jax.numpy as jnp
from jax.experimental import pallas as pl
from jax.experimental.pallas import tpu as pltpu

LOG2PI = math.log(2.0 * math.pi)

DEFAULT_MIN_BIN_WIDTH = 1e-3
DEFAULT_MIN_BIN_HEIGHT = 1e-3
DEFAULT_MIN_DERIVATIVE = 1e-3


# ----------------------------------------------------------------------------
# In-kernel helpers (traced inside the Pallas kernel)
# ----------------------------------------------------------------------------
def _erf_approx(x):
    # TODO(synk): Mosaic has no native erf; Abramowitz & Stegun 7.1.26 (|err| < 1.5e-7 ~ f32 eps).
    # Kept erf-based (not tanh-GELU) for parity with F.gelu(approximate='none').
    a1, a2, a3, a4, a5 = 0.254829592, -0.284496736, 1.421413741, -1.453152027, 1.061405429
    p = 0.3275911
    sgn = jnp.where(x >= 0.0, 1.0, -1.0)
    ax = jnp.abs(x)
    t = 1.0 / (1.0 + p * ax)
    poly = ((((a5 * t + a4) * t + a3) * t + a2) * t + a1) * t
    return sgn * (1.0 - poly * jnp.exp(-ax * ax))


def _gelu(x):
    # exact (erf-based) GELU, matching F.gelu(approximate='none')
    return 0.5 * x * (1.0 + _erf_approx(x * 0.7071067811865476))


def _layer_norm_c(y, gamma, beta, eps=1e-5):
    # LayerNorm over the channel axis (axis 0 of the (C, T) tile), per time column.
    mean = jnp.mean(y, axis=0, keepdims=True)
    var = jnp.mean(jnp.square(y - mean), axis=0, keepdims=True)
    return (y - mean) * jax.lax.rsqrt(var + eps) * gamma + beta


# ----------------------------------------------------------------------------
# Fused Pallas kernel: pre 1x1 conv -> DDSConv stack -> proj 1x1 conv (*mask)
# ----------------------------------------------------------------------------
_CHAIN_PARAM_KEYS = ("pre_w", "pre_b", "sep_w", "sep_b", "pw_w", "pw_b",
                     "g1", "b1", "g2", "b2", "proj_w", "proj_b")


def fused_conv_dds_conv(x, mask, p, g=None, kernel_size=3):
    """y = proj(DDSConv(pre(x) [+ g], mask)) * mask, all in one pallas_call; grid over batch.

    x:    (B, Cin, Tp)   Tp must be a multiple of 128
    mask: (B, 1, Tp)
    g:    optional (B, fc, Tp) conditioning, added before the DDSConv layers
    p:    dict with keys _CHAIN_PARAM_KEYS
    """
    B, Cin, Tp = x.shape
    fc = p["pre_w"].shape[0]
    Cout = p["proj_w"].shape[0]
    n_layers, _, K = p["sep_w"].shape
    center = (K - 1) // 2
    has_g = g is not None

    def kernel(*refs):
        if has_g:
            (x_ref, m_ref, g_ref, prew, preb, sw, sb, pw, pb,
             g1, b1, g2, b2, projw, projb, o_ref) = refs
        else:
            (x_ref, m_ref, prew, preb, sw, sb, pw, pb,
             g1, b1, g2, b2, projw, projb, o_ref) = refs

        m = m_ref[0]                              # (1, Tp)
        xin = x_ref[0]                            # (Cin, Tp)

        # --- pre 1x1 conv ---
        if Cin == 1:
            # depth-1 contraction: VPU broadcast FMA, skip the MXU entirely
            h = prew[...] * xin + preb[...]       # (fc,1)*(1,Tp) -> (fc,Tp)
        else:
            h = jnp.dot(prew[...], xin, preferred_element_type=jnp.float32) + preb[...]
        if has_g:
            h = h + g_ref[0]

        # --- DDSConv stack ---
        col = jax.lax.broadcasted_iota(jnp.int32, (1, Tp), 1)   # hoisted, shared by all taps
        for i in range(n_layers):
            d = K ** i                            # dilation (matches kernel_size**i)
            xm = h * m                            # (fc, Tp)
            wsep = sw[i]                          # (fc, K)
            y = wsep[:, center:center + 1] * xm   # center tap (no shift)
            for k in range(K):
                if k == center:
                    continue
                off = (k - center) * d            # sh[c, t] = xm[c, t + off], zero outside
                rolled = pltpu.roll(xm, (-off) % Tp, 1)         # XLU lane rotate (free-ish slot)
                valid = (col + off >= 0) & (col + off < Tp)     # zero the wrapped lanes (VPU)
                sh = jnp.where(valid, rolled, 0.0)
                y = y + wsep[:, k:k + 1] * sh
            y = y + sb[i]
            y = _gelu(_layer_norm_c(y, g1[i], b1[i]))
            y = jnp.dot(pw[i], y, preferred_element_type=jnp.float32) + pb[i]
            y = _gelu(_layer_norm_c(y, g2[i], b2[i]))
            # dropout_ratio == 0.0 (eval): identity
            h = h + y
        h = h * m                                 # DDSConv's trailing mask

        # --- proj 1x1 conv (*mask) ---
        out = jnp.dot(projw[...], h, preferred_element_type=jnp.float32) + projb[...]
        o_ref[0] = (out * m).astype(o_ref.dtype)

    def rep(shape):
        n = len(shape)
        return pl.BlockSpec(shape, lambda i, _n=n: (0,) * _n)

    in_specs = [pl.BlockSpec((1, Cin, Tp), lambda i: (i, 0, 0)),
                pl.BlockSpec((1, 1, Tp), lambda i: (i, 0, 0))]
    args = [x, mask]
    if has_g:
        in_specs.append(pl.BlockSpec((1, fc, Tp), lambda i: (i, 0, 0)))
        args.append(g)
    for name in _CHAIN_PARAM_KEYS:
        in_specs.append(rep(p[name].shape))
        args.append(p[name])

    return pl.pallas_call(
        kernel,
        out_shape=jax.ShapeDtypeStruct((B, Cout, Tp), x.dtype),
        grid=(B,),
        in_specs=in_specs,
        out_specs=pl.BlockSpec((1, Cout, Tp), lambda i: (i, 0, 0)),
        compiler_params=pltpu.CompilerParams(
            dimension_semantics=("parallel",),
            # Re-derive if fc / T grow; per-step tiles here are well under 1 MiB.
            vmem_limit_bytes=32 * 1024 * 1024,
        ),
    )(*args)


# ----------------------------------------------------------------------------
# Plain-JAX glue: masked reductions, rational-quadratic spline, flows
# ----------------------------------------------------------------------------
def masked_sum(x, mask):
    """sum(x * mask) over axes [1, 2] -> (B,).  Plain JAX: XLA fuses it into neighbours."""
    return jnp.sum(x * mask, axis=(1, 2))


def _rational_quadratic_spline(inputs, uw, uh, ud, left, right, bottom, top,
                               min_bin_width=DEFAULT_MIN_BIN_WIDTH,
                               min_bin_height=DEFAULT_MIN_BIN_HEIGHT,
                               min_derivative=DEFAULT_MIN_DERIVATIVE):
    num_bins = uw.shape[-1]

    widths = jax.nn.softmax(uw, axis=-1)
    widths = min_bin_width + (1.0 - min_bin_width * num_bins) * widths
    cumwidths = jnp.cumsum(widths, axis=-1)
    cumwidths = jnp.pad(cumwidths, [(0, 0)] * (cumwidths.ndim - 1) + [(1, 0)])
    cumwidths = (right - left) * cumwidths + left
    cumwidths = cumwidths.at[..., 0].set(left)
    cumwidths = cumwidths.at[..., -1].set(right)
    widths = cumwidths[..., 1:] - cumwidths[..., :-1]

    derivatives = min_derivative + jax.nn.softplus(ud)

    heights = jax.nn.softmax(uh, axis=-1)
    heights = min_bin_height + (1.0 - min_bin_height * num_bins) * heights
    cumheights = jnp.cumsum(heights, axis=-1)
    cumheights = jnp.pad(cumheights, [(0, 0)] * (cumheights.ndim - 1) + [(1, 0)])
    cumheights = (top - bottom) * cumheights + bottom
    cumheights = cumheights.at[..., 0].set(bottom)
    cumheights = cumheights.at[..., -1].set(top)
    heights = cumheights[..., 1:] - cumheights[..., :-1]

    bin_loc = cumwidths.at[..., -1].add(1e-6)
    bin_idx = jnp.sum((inputs[..., None] >= bin_loc).astype(jnp.int32), axis=-1) - 1
    bin_idx = jnp.clip(bin_idx, 0, num_bins - 1)

    def gather(t):
        return jnp.take_along_axis(t, bin_idx[..., None], axis=-1)[..., 0]

    input_cumwidths = gather(cumwidths)
    input_bin_widths = gather(widths)
    input_cumheights = gather(cumheights)
    delta = heights / widths
    input_delta = gather(delta)
    input_derivatives = gather(derivatives)
    input_derivatives_p1 = gather(derivatives[..., 1:])
    input_heights = gather(heights)

    theta = (inputs - input_cumwidths) / input_bin_widths
    tomt = theta * (1.0 - theta)
    numerator = input_heights * (input_delta * theta ** 2 + input_derivatives * tomt)
    denominator = input_delta + (input_derivatives + input_derivatives_p1 - 2.0 * input_delta) * tomt
    outputs = input_cumheights + numerator / denominator
    deriv_num = input_delta ** 2 * (input_derivatives_p1 * theta ** 2
                                    + 2.0 * input_delta * tomt
                                    + input_derivatives * (1.0 - theta) ** 2)
    logabsdet = jnp.log(deriv_num) - 2.0 * jnp.log(denominator)
    return outputs, logabsdet


def piecewise_rational_quadratic_transform(inputs, uw, uh, ud, tail_bound=5.0):
    # 'linear' tails (unconstrained spline), forward direction (inverse=False).
    constant = math.log(math.exp(1.0 - DEFAULT_MIN_DERIVATIVE) - 1.0)
    ud = jnp.pad(ud, [(0, 0)] * (ud.ndim - 1) + [(1, 1)], constant_values=constant)
    inside = (inputs >= -tail_bound) & (inputs <= tail_bound)
    clamped = jnp.clip(inputs, -tail_bound, tail_bound)
    out_in, lad_in = _rational_quadratic_spline(
        clamped, uw, uh, ud, left=-tail_bound, right=tail_bound,
        bottom=-tail_bound, top=tail_bound)
    outputs = jnp.where(inside, out_in, inputs)
    logabsdet = jnp.where(inside, lad_in, 0.0)
    return outputs, logabsdet


def elementwise_affine_fwd(p, x, x_mask):
    m, logs = p["m"], p["logs"]                         # (2,1) each
    y = (m[None] + jnp.exp(logs)[None] * x) * x_mask
    logdet = jnp.sum(logs[None] * x_mask, axis=(1, 2))
    return y, logdet


def convflow_fwd(cf, x, x_mask, g, filter_channels, num_bins=10, tail_bound=5.0, kernel_size=3):
    x0, x1 = x[:, :1], x[:, 1:]
    # single fused pallas_call: pre(1x1, Cin=1) -> DDSConv(+g) -> proj(1x1)*mask
    h = fused_conv_dds_conv(x0, x_mask, cf, g=g, kernel_size=kernel_size)   # (B, 3*nb-1, Tp)
    s = math.sqrt(filter_channels)
    h = jnp.transpose(h, (0, 2, 1))[:, None]                                # (B, 1, Tp, 3*nb-1)
    uw = h[..., :num_bins] / s
    uh = h[..., num_bins:2 * num_bins] / s
    ud = h[..., 2 * num_bins:]
    x1n, logabsdet = piecewise_rational_quadratic_transform(x1, uw, uh, ud, tail_bound=tail_bound)
    xo = jnp.concatenate([x0, x1n], axis=1) * x_mask
    logdet = masked_sum(logabsdet, x_mask)
    return xo, logdet


# ----------------------------------------------------------------------------
# Parameter init (deterministic, matching module __init__ shapes / zero-inits)
# ----------------------------------------------------------------------------
def init_chain_params(key, cin, fc, cout, ksize, n_layers, zero_proj=False, scale=0.1):
    ks = jax.random.split(key, 8)
    p = {
        "pre_w": scale * jax.random.normal(ks[0], (fc, cin), jnp.float32),
        "pre_b": scale * jax.random.normal(ks[1], (fc, 1), jnp.float32),
        "sep_w": scale * jax.random.normal(ks[2], (n_layers, fc, ksize), jnp.float32),
        "sep_b": scale * jax.random.normal(ks[3], (n_layers, fc, 1), jnp.float32),
        "pw_w": scale * jax.random.normal(ks[4], (n_layers, fc, fc), jnp.float32),
        "pw_b": scale * jax.random.normal(ks[5], (n_layers, fc, 1), jnp.float32),
        "g1": jnp.ones((n_layers, fc, 1), jnp.float32),
        "b1": jnp.zeros((n_layers, fc, 1), jnp.float32),
        "g2": jnp.ones((n_layers, fc, 1), jnp.float32),
        "b2": jnp.zeros((n_layers, fc, 1), jnp.float32),
    }
    if zero_proj:   # ConvFlow.proj is zero-initialized in the PyTorch module
        p["proj_w"] = jnp.zeros((cout, fc), jnp.float32)
        p["proj_b"] = jnp.zeros((cout, 1), jnp.float32)
    else:
        p["proj_w"] = scale * jax.random.normal(ks[6], (cout, fc), jnp.float32)
        p["proj_b"] = scale * jax.random.normal(ks[7], (cout, 1), jnp.float32)
    return p


def init_sdp_params(key, in_channels, kernel_size, n_flows=4, num_bins=10):
    fc = in_channels  # filter_channels = in_channels in __init__
    keys = jax.random.split(key, 2 + n_flows + 4)
    out_c = num_bins * 3 - 1
    p = {
        # main chain: pre (Cin=in_channels) -> convs -> proj (Cout=fc)
        "x_chain": init_chain_params(keys[0], in_channels, fc, fc, kernel_size, 3),
        # posterior chain: post_pre (Cin=1) -> post_convs -> post_proj (Cout=fc)
        "w_chain": init_chain_params(keys[1], 1, fc, fc, kernel_size, 3),
        # ElementwiseAffine(2): zero-initialized
        "flows_ea": {"m": jnp.zeros((2, 1), jnp.float32), "logs": jnp.zeros((2, 1), jnp.float32)},
        "post_flows_ea": {"m": jnp.zeros((2, 1), jnp.float32), "logs": jnp.zeros((2, 1), jnp.float32)},
    }
    flows_cf = [init_chain_params(keys[2 + i], 1, fc, out_c, kernel_size, 3, zero_proj=True)
                for i in range(n_flows)]
    post_cf = [init_chain_params(keys[2 + n_flows + i], 1, fc, out_c, kernel_size, 3, zero_proj=True)
               for i in range(4)]
    p["flows_cf"] = jax.tree_util.tree_map(lambda *xs: jnp.stack(xs, 0), *flows_cf)
    p["post_flows_cf"] = jax.tree_util.tree_map(lambda *xs: jnp.stack(xs, 0), *post_cf)
    return p


# ----------------------------------------------------------------------------
# StochasticDurationPredictor forward (training / non-reverse branch, g=None)
# ----------------------------------------------------------------------------
def sdp_forward(params, x, x_mask, w, e_q, kernel_size=3, num_bins=10, tail_bound=5.0):
    B, _, T = x.shape
    fc = params["x_chain"]["pre_w"].shape[0]   # filter_channels == in_channels

    # Pad time to a multiple of 128 so every Pallas tile is lane-dense.  Padding is exact:
    # everything inside the kernels is per-column or mask-gated, and all sums are masked.
    Tp = ((T + 127) // 128) * 128
    if Tp != T:
        padT = [(0, 0), (0, 0), (0, Tp - T)]
        x = jnp.pad(x, padT)
        x_mask = jnp.pad(x_mask, padT)
        w = jnp.pad(w, padT)
        e_q = jnp.pad(e_q, padT)

    # fused pre -> convs -> proj(*mask) chains (one pallas_call each)
    x = fused_conv_dds_conv(x, x_mask, params["x_chain"], kernel_size=kernel_size)
    h_w = fused_conv_dds_conv(w, x_mask, params["w_chain"], kernel_size=kernel_size)

    e_q = e_q * x_mask          # torch: e_q = randn * x_mask  (noise passed in)
    g_post = x + h_w

    def make_body(g_cond):
        def body(carry, cf):
            z, ldt = carry
            z, ld = convflow_fwd(cf, z, x_mask, g_cond, fc, num_bins, tail_bound, kernel_size)
            z = jnp.flip(z, axis=1)      # Flip flow (logdet = 0)
            return (z, ldt + ld), None
        return body

    # ---- posterior flows ----
    z_q, logdet_tot_q = elementwise_affine_fwd(params["post_flows_ea"], e_q, x_mask)
    (z_q, logdet_tot_q), _ = jax.lax.scan(make_body(g_post), (z_q, logdet_tot_q),
                                          params["post_flows_cf"])
    z_u, z1 = z_q[:, :1], z_q[:, 1:]
    u = jax.nn.sigmoid(z_u) * x_mask
    z0 = (w - u) * x_mask
    logdet_tot_q = logdet_tot_q + masked_sum(
        jax.nn.log_sigmoid(z_u) + jax.nn.log_sigmoid(-z_u), x_mask)
    logq = masked_sum(-0.5 * (LOG2PI + jnp.square(e_q)), x_mask) - logdet_tot_q

    # ---- main flows ----
    y0 = jnp.log(jnp.maximum(z0, 1e-5)) * x_mask      # Log flow
    logdet_tot = -jnp.sum(y0, axis=(1, 2))
    z = jnp.concatenate([y0, z1], axis=1)
    z, ld = elementwise_affine_fwd(params["flows_ea"], z, x_mask)
    logdet_tot = logdet_tot + ld
    (z, logdet_tot), _ = jax.lax.scan(make_body(x), (z, logdet_tot), params["flows_cf"])

    nll = masked_sum(0.5 * (LOG2PI + jnp.square(z)), x_mask) - logdet_tot
    return nll + logq            # (B,)


# ----------------------------------------------------------------------------
if __name__ == "__main__":
    key = jax.random.PRNGKey(0)
    B, Cin, T = 2, 4, 16
    kernel_size, n_flows = 3, 4

    kp, kx, kw, ke = jax.random.split(key, 4)
    params = init_sdp_params(kp, in_channels=Cin, kernel_size=kernel_size, n_flows=n_flows)

    x = jax.random.normal(kx, (B, Cin, T), jnp.float32)
    lengths = jnp.array([T, T - 4], jnp.int32)
    x_mask = (jnp.arange(T)[None, None, :] < lengths[:, None, None]).astype(jnp.float32)
    # synthetic positive "durations"
    w = jnp.floor(jax.random.uniform(kw, (B, 1, T), minval=1.0, maxval=5.0)) * x_mask
    # torch.randn(w.size(0), 2, w.size(2)) -> precomputed noise passed in
    e_q = jax.random.normal(ke, (B, 2, T), jnp.float32)

    fwd = jax.jit(sdp_forward)
    out = jax.block_until_ready(fwd(params, x, x_mask, w, e_q))

    assert out.shape == (B,), out.shape
    assert bool(jnp.all(jnp.isfinite(out))), out
    print("KERNEL_OK")
</pallas_src>

<mosaic_0001>
module attributes {stable_mosaic.version = 11 : i64} {
  func.func @kernel(%arg0: i32, %arg1: memref<1x4x128xf32, #tpu.memory_space<vmem>>, %arg2: memref<1x1x128xf32, #tpu.memory_space<vmem>>, %arg3: memref<4x4xf32, #tpu.memory_space<vmem>>, %arg4: memref<4x1xf32, #tpu.memory_space<vmem>>, %arg5: memref<3x4x3xf32, #tpu.memory_space<vmem>>, %arg6: memref<3x4x1xf32, #tpu.memory_space<vmem>>, %arg7: memref<3x4x4xf32, #tpu.memory_space<vmem>>, %arg8: memref<3x4x1xf32, #tpu.memory_space<vmem>>, %arg9: memref<3x4x1xf32, #tpu.memory_space<vmem>>, %arg10: memref<3x4x1xf32, #tpu.memory_space<vmem>>, %arg11: memref<3x4x1xf32, #tpu.memory_space<vmem>>, %arg12: memref<3x4x1xf32, #tpu.memory_space<vmem>>, %arg13: memref<4x4xf32, #tpu.memory_space<vmem>>, %arg14: memref<4x1xf32, #tpu.memory_space<vmem>>, %arg15: memref<1x4x128xf32, #tpu.memory_space<vmem>>) attributes {dimension_semantics = [#tpu.dimension_semantics<parallel>], iteration_bounds = array<i64: 2>, scalar_prefetch = 0 : i64, scratch_operands = 0 : i64, tpu.core_type = #tpu.core_type<tc>, window_params = [{transform_indices = @transform_0, window_bounds = array<i64: 1, 4, 128>}, {transform_indices = @transform_1, window_bounds = array<i64: 1, 1, 128>}, {pipeline_mode = #tpu.pipeline_mode<synchronous>, transform_indices = @transform_2, window_bounds = array<i64: 4, 4>}, {pipeline_mode = #tpu.pipeline_mode<synchronous>, transform_indices = @transform_3, window_bounds = array<i64: 4, 1>}, {pipeline_mode = #tpu.pipeline_mode<synchronous>, transform_indices = @transform_4, window_bounds = array<i64: 3, 4, 3>}, {pipeline_mode = #tpu.pipeline_mode<synchronous>, transform_indices = @transform_5, window_bounds = array<i64: 3, 4, 1>}, {pipeline_mode = #tpu.pipeline_mode<synchronous>, transform_indices = @transform_6, window_bounds = array<i64: 3, 4, 4>}, {pipeline_mode = #tpu.pipeline_mode<synchronous>, transform_indices = @transform_7, window_bounds = array<i64: 3, 4, 1>}, {pipeline_mode = #tpu.pipeline_mode<synchronous>, transform_indices = @transform_8, window_bounds = array<i64: 3, 4, 1>}, {pipeline_mode = #tpu.pipeline_mode<synchronous>, transform_indices = @transform_9, window_bounds = array<i64: 3, 4, 1>}, {pipeline_mode = #tpu.pipeline_mode<synchronous>, transform_indices = @transform_10, window_bounds = array<i64: 3, 4, 1>}, {pipeline_mode = #tpu.pipeline_mode<synchronous>, transform_indices = @transform_11, window_bounds = array<i64: 3, 4, 1>}, {pipeline_mode = #tpu.pipeline_mode<synchronous>, transform_indices = @transform_12, window_bounds = array<i64: 4, 4>}, {pipeline_mode = #tpu.pipeline_mode<synchronous>, transform_indices = @transform_13, window_bounds = array<i64: 4, 1>}, {transform_indices = @transform_14, window_bounds = array<i64: 1, 4, 128>}]} {
    %c0 = arith.constant 0 : index
    %c0_0 = arith.constant 0 : index
    %c0_1 = arith.constant 0 : index
    %0 = vector.load %arg2[%c0, %c0_0, %c0_1] : memref<1x1x128xf32, #tpu.memory_space<vmem>>, vector<1x1x128xf32>
    %1 = vector.shape_cast %0 : vector<1x1x128xf32> to vector<1x128xf32>
    %c0_2 = arith.constant 0 : index
    %c0_3 = arith.constant 0 : index
    %c0_4 = arith.constant 0 : index
    %2 = vector.load %arg1[%c0_2, %c0_3, %c0_4] : memref<1x4x128xf32, #tpu.memory_space<vmem>>, vector<1x4x128xf32>
    %3 = vector.shape_cast %2 : vector<1x4x128xf32> to vector<4x128xf32>
    %c0_5 = arith.constant 0 : index
    %c0_6 = arith.constant 0 : index
    %4 = vector.load %arg3[%c0_5, %c0_6] : memref<4x4xf32, #tpu.memory_space<vmem>>, vector<4x4xf32>
    %cst = arith.constant dense<0.000000e+00> : vector<4x128xf32>
    %5 = tpu.matmul %4, %3, %cst {dimension_numbers = #tpu.dot_dimension_numbers<[1], [0], [0], [1], [0, 0, 1, 1], [], []>} : vector<4x4xf32>, vector<4x128xf32>, vector<4x128xf32> -> vector<4x128xf32>
    %c0_7 = arith.constant 0 : index
    %c0_8 = arith.constant 0 : index
    %6 = vector.load %arg4[%c0_7, %c0_8] : memref<4x1xf32, #tpu.memory_space<vmem>>, vector<4x1xf32>
    %7 = vector.broadcast %6 : vector<4x1xf32> to vector<4x128xf32>
    %8 = arith.addf %5, %7 : vector<4x128xf32>
    %9 = tpu.iota {dimensions = array<i32: 1>} : vector<1x128xi32>
    %10 = vector.broadcast %1 : vector<1x128xf32> to vector<4x128xf32>
    %11 = arith.mulf %8, %10 : vector<4x128xf32>
    %c0_9 = arith.constant 0 : index
    %c0_10 = arith.constant 0 : index
    %c0_11 = arith.constant 0 : index
    %12 = vector.load %arg5[%c0_9, %c0_10, %c0_11] : memref<3x4x3xf32, #tpu.memory_space<vmem>>, vector<1x4x3xf32>
    %13 = vector.shape_cast %12 : vector<1x4x3xf32> to vector<4x3xf32>
    %14 = vector.extract_strided_slice %13 {offsets = [0, 1], sizes = [4, 1], strides = [1, 1]} : vector<4x3xf32> to vector<4x1xf32>
    %15 = vector.broadcast %14 : vector<4x1xf32> to vector<4x128xf32>
    %16 = arith.mulf %15, %11 : vector<4x128xf32>
    %c1_i32 = arith.constant 1 : i32
    %17 = tpu.dynamic_rotate %11 by %c1_i32 dim 1 : vector<4x128xf32>, i32 -> vector<4x128xf32>
    %c-1_i32 = arith.constant -1 : i32
    %18 = vector.broadcast %c-1_i32 : i32 to vector<1x128xi32>
    %19 = arith.addi %9, %18 : vector<1x128xi32>
    %c0_i32 = arith.constant 0 : i32
    %20 = vector.broadcast %c0_i32 : i32 to vector<1x128xi32>
    %21 = arith.cmpi sge, %19, %20 : vector<1x128xi32>
    %c-1_i32_12 = arith.constant -1 : i32
    %22 = vector.broadcast %c-1_i32_12 : i32 to vector<1x128xi32>
    %23 = arith.addi %9, %22 : vector<1x128xi32>
    %c128_i32 = arith.constant 128 : i32
    %24 = vector.broadcast %c128_i32 : i32 to vector<1x128xi32>
    %25 = arith.cmpi slt, %23, %24 : vector<1x128xi32>
    %26 = arith.andi %21, %25 : vector<1x128xi1>
    %cst_13 = arith.constant 0.000000e+00 : f32
    %27 = vector.shape_cast %26 : vector<1x128xi1> to vector<1x128xi1>
    %28 = vector.broadcast %27 : vector<1x128xi1> to vector<4x128xi1>
    %29 = vector.broadcast %cst_13 : f32 to vector<4x128xf32>
    %30 = arith.select %28, %17, %29 : vector<4x128xi1>, vector<4x128xf32>
    %31 = vector.extract_strided_slice %13 {offsets = [0, 0], sizes = [4, 1], strides = [1, 1]} : vector<4x3xf32> to vector<4x1xf32>
    %32 = vector.broadcast %31 : vector<4x1xf32> to vector<4x128xf32>
    %33 = arith.mulf %32, %30 : vector<4x128xf32>
    %34 = arith.addf %16, %33 : vector<4x128xf32>
    %c127_i32 = arith.constant 127 : i32
    %35 = tpu.dynamic_rotate %11 by %c127_i32 dim 1 : vector<4x128xf32>, i32 -> vector<4x128xf32>
    %c1_i32_14 = arith.constant 1 : i32
    %36 = vector.broadcast %c1_i32_14 : i32 to vector<1x128xi32>
    %37 = arith.addi %9, %36 : vector<1x128xi32>
    %c0_i32_15 = arith.constant 0 : i32
    %38 = vector.broadcast %c0_i32_15 : i32 to vector<1x128xi32>
    %39 = arith.cmpi sge, %37, %38 : vector<1x128xi32>
    %c1_i32_16 = arith.constant 1 : i32
    %40 = vector.broadcast %c1_i32_16 : i32 to vector<1x128xi32>
    %41 = arith.addi %9, %40 : vector<1x128xi32>
    %c128_i32_17 = arith.constant 128 : i32
    %42 = vector.broadcast %c128_i32_17 : i32 to vector<1x128xi32>
    %43 = arith.cmpi slt, %41, %42 : vector<1x128xi32>
    %44 = arith.andi %39, %43 : vector<1x128xi1>
    %cst_18 = arith.constant 0.000000e+00 : f32
    %45 = vector.shape_cast %44 : vector<1x128xi1> to vector<1x128xi1>
    %46 = vector.broadcast %45 : vector<1x128xi1> to vector<4x128xi1>
    %47 = vector.broadcast %cst_18 : f32 to vector<4x128xf32>
    %48 = arith.select %46, %35, %47 : vector<4x128xi1>, vector<4x128xf32>
    %49 = vector.extract_strided_slice %13 {offsets = [0, 2], sizes = [4, 1], strides = [1, 1]} : vector<4x3xf32> to vector<4x1xf32>
    %50 = vector.broadcast %49 : vector<4x1xf32> to vector<4x128xf32>
    %51 = arith.mulf %50, %48 : vector<4x128xf32>
    %52 = arith.addf %34, %51 : vector<4x128xf32>
    %c0_19 = arith.constant 0 : index
    %c0_20 = arith.constant 0 : index
    %c0_21 = arith.constant 0 : index
    %53 = vector.load %arg6[%c0_19, %c0_20, %c0_21] : memref<3x4x1xf32, #tpu.memory_space<vmem>>, vector<1x4x1xf32>
    %54 = vector.shape_cast %53 : vector<1x4x1xf32> to vector<4x1xf32>
    %55 = vector.broadcast %54 : vector<4x1xf32> to vector<4x128xf32>
    %56 = arith.addf %52, %55 : vector<4x128xf32>
    %c0_22 = arith.constant 0 : index
    %c0_23 = arith.constant 0 : index
    %c0_24 = arith.constant 0 : index
    %57 = vector.load %arg9[%c0_22, %c0_23, %c0_24] : memref<3x4x1xf32, #tpu.memory_space<vmem>>, vector<1x4x1xf32>
    %58 = vector.shape_cast %57 : vector<1x4x1xf32> to vector<4x1xf32>
    %c0_25 = arith.constant 0 : index
    %c0_26 = arith.constant 0 : index
    %c0_27 = arith.constant 0 : index
    %59 = vector.load %arg10[%c0_25, %c0_26, %c0_27] : memref<3x4x1xf32, #tpu.memory_space<vmem>>, vector<1x4x1xf32>
    %60 = vector.shape_cast %59 : vector<1x4x1xf32> to vector<4x1xf32>
    %cst_28 = arith.constant dense<0.000000e+00> : vector<128xf32>
    %61 = vector.multi_reduction <add>, %56, %cst_28 [0] : vector<4x128xf32> to vector<128xf32>
    %62 = vector.shape_cast %61 : vector<128xf32> to vector<1x128xf32>
    %cst_29 = arith.constant 4.000000e+00 : f32
    %63 = vector.broadcast %cst_29 : f32 to vector<1x128xf32>
    %64 = arith.divf %62, %63 : vector<1x128xf32>
    %65 = vector.broadcast %64 : vector<1x128xf32> to vector<4x128xf32>
    %66 = arith.subf %56, %65 : vector<4x128xf32>
    %67 = arith.mulf %66, %66 : vector<4x128xf32>
    %cst_30 = arith.constant dense<0.000000e+00> : vector<128xf32>
    %68 = vector.multi_reduction <add>, %67, %cst_30 [0] : vector<4x128xf32> to vector<128xf32>
    %69 = vector.shape_cast %68 : vector<128xf32> to vector<1x128xf32>
    %cst_31 = arith.constant 4.000000e+00 : f32
    %70 = vector.broadcast %cst_31 : f32 to vector<1x128xf32>
    %71 = arith.divf %69, %70 : vector<1x128xf32>
    %72 = vector.broadcast %64 : vector<1x128xf32> to vector<4x128xf32>
    %73 = arith.subf %56, %72 : vector<4x128xf32>
    %cst_32 = arith.constant 9.99999974E-6 : f32
    %74 = vector.broadcast %cst_32 : f32 to vector<1x128xf32>
    %75 = arith.addf %71, %74 : vector<1x128xf32>
    %76 = math.rsqrt %75 : vector<1x128xf32>
    %77 = vector.broadcast %76 : vector<1x128xf32> to vector<4x128xf32>
    %78 = arith.mulf %73, %77 : vector<4x128xf32>
    %79 = vector.broadcast %58 : vector<4x1xf32> to vector<4x128xf32>
    %80 = arith.mulf %78, %79 : vector<4x128xf32>
    %81 = vector.broadcast %60 : vector<4x1xf32> to vector<4x128xf32>
    %82 = arith.addf %80, %81 : vector<4x128xf32>
    %cst_33 = arith.constant 5.000000e-01 : f32
    %83 = vector.broadcast %cst_33 : f32 to vector<4x128xf32>
    %84 = arith.mulf %83, %82 : vector<4x128xf32>
    %cst_34 = arith.constant 0.707106769 : f32
    %85 = vector.broadcast %cst_34 : f32 to vector<4x128xf32>
    %86 = arith.mulf %82, %85 : vector<4x128xf32>
    %cst_35 = arith.constant 0.000000e+00 : f32
    %87 = vector.broadcast %cst_35 : f32 to vector<4x128xf32>
    %88 = arith.cmpf oge, %86, %87 : vector<4x128xf32>
    %cst_36 = arith.constant 1.000000e+00 : f32
    %cst_37 = arith.constant -1.000000e+00 : f32
    %89 = vector.broadcast %cst_36 : f32 to vector<4x128xf32>
    %90 = vector.broadcast %cst_37 : f32 to vector<4x128xf32>
    %91 = arith.select %88, %89, %90 : vector<4x128xi1>, vector<4x128xf32>
    %92 = math.absf %86 : vector<4x128xf32>
    %cst_38 = arith.constant 0.327591091 : f32
    %93 = vector.broadcast %cst_38 : f32 to vector<4x128xf32>
    %94 = arith.mulf %93, %92 : vector<4x128xf32>
    %cst_39 = arith.constant 1.000000e+00 : f32
    %95 = vector.broadcast %cst_39 : f32 to vector<4x128xf32>
    %96 = arith.addf %95, %94 : vector<4x128xf32>
    %cst_40 = arith.constant 1.000000e+00 : f32
    %97 = vector.broadcast %cst_40 : f32 to vector<4x128xf32>
    %98 = arith.divf %97, %96 : vector<4x128xf32>
    %cst_41 = arith.constant 1.06140542 : f32
    %99 = vector.broadcast %cst_41 : f32 to vector<4x128xf32>
    %100 = arith.mulf %99, %98 : vector<4x128xf32>
    %cst_42 = arith.constant -1.45315206 : f32
    %101 = vector.broadcast %cst_42 : f32 to vector<4x128xf32>
    %102 = arith.addf %100, %101 : vector<4x128xf32>
    %103 = arith.mulf %102, %98 : vector<4x128xf32>
    %cst_43 = arith.constant 1.42141378 : f32
    %104 = vector.broadcast %cst_43 : f32 to vector<4x128xf32>
    %105 = arith.addf %103, %104 : vector<4x128xf32>
    %106 = arith.mulf %105, %98 : vector<4x128xf32>
    %cst_44 = arith.constant -0.284496725 : f32
    %107 = vector.broadcast %cst_44 : f32 to vector<4x128xf32>
    %108 = arith.addf %106, %107 : vector<4x128xf32>
    %109 = arith.mulf %108, %98 : vector<4x128xf32>
    %cst_45 = arith.constant 0.254829586 : f32
    %110 = vector.broadcast %cst_45 : f32 to vector<4x128xf32>
    %111 = arith.addf %109, %110 : vector<4x128xf32>
    %112 = arith.mulf %111, %98 : vector<4x128xf32>
    %cst_46 = arith.constant 0.000000e+00 : f32
    %113 = vector.broadcast %cst_46 : f32 to vector<4x128xf32>
    %114 = arith.subf %113, %92 : vector<4x128xf32>
    %115 = arith.mulf %114, %92 : vector<4x128xf32>
    %116 = math.exp %115 : vector<4x128xf32>
    %117 = arith.mulf %112, %116 : vector<4x128xf32>
    %cst_47 = arith.constant 1.000000e+00 : f32
    %118 = vector.broadcast %cst_47 : f32 to vector<4x128xf32>
    %119 = arith.subf %118, %117 : vector<4x128xf32>
    %120 = arith.mulf %91, %119 : vector<4x128xf32>
    %cst_48 = arith.constant 1.000000e+00 : f32
    %121 = vector.broadcast %cst_48 : f32 to vector<4x128xf32>
    %122 = arith.addf %121, %120 : vector<4x128xf32>
    %123 = arith.mulf %84, %122 : vector<4x128xf32>
    %c0_49 = arith.constant 0 : index
    %c0_50 = arith.constant 0 : index
    %c0_51 = arith.constant 0 : index
    %124 = vector.load %arg7[%c0_49, %c0_50, %c0_51] : memref<3x4x4xf32, #tpu.memory_space<vmem>>, vector<1x4x4xf32>
    %125 = vector.shape_cast %124 : vector<1x4x4xf32> to vector<4x4xf32>
    %cst_52 = arith.constant dense<0.000000e+00> : vector<4x128xf32>
    %126 = tpu.matmul %125, %123, %cst_52 {dimension_numbers = #tpu.dot_dimension_numbers<[1], [0], [0], [1], [0, 0, 1, 1], [], []>} : vector<4x4xf32>, vector<4x128xf32>, vector<4x128xf32> -> vector<4x128xf32>
    %c0_53 = arith.constant 0 : index
    %c0_54 = arith.constant 0 : index
    %c0_55 = arith.constant 0 : index
    %127 = vector.load %arg8[%c0_53, %c0_54, %c0_55] : memref<3x4x1xf32, #tpu.memory_space<vmem>>, vector<1x4x1xf32>
    %128 = vector.shape_cast %127 : vector<1x4x1xf32> to vector<4x1xf32>
    %129 = vector.broadcast %128 : vector<4x1xf32> to vector<4x128xf32>
    %130 = arith.addf %126, %129 : vector<4x128xf32>
    %c0_56 = arith.constant 0 : index
    %c0_57 = arith.constant 0 : index
    %c0_58 = arith.constant 0 : index
    %131 = vector.load %arg11[%c0_56, %c0_57, %c0_58] : memref<3x4x1xf32, #tpu.memory_space<vmem>>, vector<1x4x1xf32>
    %132 = vector.shape_cast %131 : vector<1x4x1xf32> to vector<4x1xf32>
    %c0_59 = arith.constant 0 : index
    %c0_60 = arith.constant 0 : index
    %c0_61 = arith.constant 0 : index
    %133 = vector.load %arg12[%c0_59, %c0_60, %c0_61] : memref<3x4x1xf32, #tpu.memory_space<vmem>>, vector<1x4x1xf32>
    %134 = vector.shape_cast %133 : vector<1x4x1xf32> to vector<4x1xf32>
    %cst_62 = arith.constant dense<0.000000e+00> : vector<128xf32>
    %135 = vector.multi_reduction <add>, %130, %cst_62 [0] : vector<4x128xf32> to vector<128xf32>
    %136 = vector.shape_cast %135 : vector<128xf32> to vector<1x128xf32>
    %cst_63 = arith.constant 4.000000e+00 : f32
    %137 = vector.broadcast %cst_63 : f32 to vector<1x128xf32>
    %138 = arith.divf %136, %137 : vector<1x128xf32>
    %139 = vector.broadcast %138 : vector<1x128xf32> to vector<4x128xf32>
    %140 = arith.subf %130, %139 : vector<4x128xf32>
    %141 = arith.mulf %140, %140 : vector<4x128xf32>
    %cst_64 = arith.constant dense<0.000000e+00> : vector<128xf32>
    %142 = vector.multi_reduction <add>, %141, %cst_64 [0] : vector<4x128xf32> to vector<128xf32>
    %143 = vector.shape_cast %142 : vector<128xf32> to vector<1x128xf32>
    %cst_65 = arith.constant 4.000000e+00 : f32
    %144 = vector.broadcast %cst_65 : f32 to vector<1x128xf32>
    %145 = arith.divf %143, %144 : vector<1x128xf32>
    %146 = vector.broadcast %138 : vector<1x128xf32> to vector<4x128xf32>
    %147 = arith.subf %130, %146 : vector<4x128xf32>
    %cst_66 = arith.constant 9.99999974E-6 : f32
    %148 = vector.broadcast %cst_66 : f32 to vector<1x128xf32>
    %149 = arith.addf %145, %148 : vector<1x128xf32>
    %150 = math.rsqrt %149 : vector<1x128xf32>
    %151 = vector.broadcast %150 : vector<1x128xf32> to vector<4x128xf32>
    %152 = arith.mulf %147, %151 : vector<4x128xf32>
    %153 = vector.broadcast %132 : vector<4x1xf32> to vector<4x128xf32>
    %154 = arith.mulf %152, %153 : vector<4x128xf32>
    %155 = vector.broadcast %134 : vector<4x1xf32> to vector<4x128xf32>
    %156 = arith.addf %154, %155 : vector<4x128xf32>
    %cst_67 = arith.constant 5.000000e-01 : f32
    %157 = vector.broadcast %cst_67 : f32 to vector<4x128xf32>
    %158 = arith.mulf %157, %156 : vector<4x128xf32>
    %cst_68 = arith.constant 0.707106769 : f32
    %159 = vector.broadcast %cst_68 : f32 to vector<4x128xf32>
    %160 = arith.mulf %156, %159 : vector<4x128xf32>
    %cst_69 = arith.constant 0.000000e+00 : f32
    %161 = vector.broadcast %cst_69 : f32 to vector<4x128xf32>
    %162 = arith.cmpf oge, %160, %161 : vector<4x128xf32>
    %cst_70 = arith.constant 1.000000e+00 : f32
    %cst_71 = arith.constant -1.000000e+00 : f32
    %163 = vector.broadcast %cst_70 : f32 to vector<4x128xf32>
    %164 = vector.broadcast %cst_71 : f32 to vector<4x128xf32>
    %165 = arith.select %162, %163, %164 : vector<4x128xi1>, vector<4x128xf32>
    %166 = math.absf %160 : vector<4x128xf32>
    %cst_72 = arith.constant 0.327591091 : f32
    %167 = vector.broadcast %cst_72 : f32 to vector<4x128xf32>
    %168 = arith.mulf %167, %166 : vector<4x128xf32>
    %cst_73 = arith.constant 1.000000e+00 : f32
    %169 = vector.broadcast %cst_73 : f32 to vector<4x128xf32>
    %170 = arith.addf %169, %168 : vector<4x128xf32>
    %cst_74 = arith.constant 1.000000e+00 : f32
    %171 = vector.broadcast %cst_74 : f32 to vector<4x128xf32>
    %172 = arith.divf %171, %170 : vector<4x128xf32>
    %cst_75 = arith.constant 1.06140542 : f32
    %173 = vector.broadcast %cst_75 : f32 to vector<4x128xf32>
    %174 = arith.mulf %173, %172 : vector<4x128xf32>
    %cst_76 = arith.constant -1.45315206 : f32
    %175 = vector.broadcast %cst_76 : f32 to vector<4x128xf32>
    %176 = arith.addf %174, %175 : vector<4x128xf32>
    %177 = arith.mulf %176, %172 : vector<4x128xf32>
    %cst_77 = arith.constant 1.42141378 : f32
    %178 = vector.broadcast %cst_77 : f32 to vector<4x128xf32>
    %179 = arith.addf %177, %178 : vector<4x128xf32>
    %180 = arith.mulf %179, %172 : vector<4x128xf32>
    %cst_78 = arith.constant -0.284496725 : f32
    %181 = vector.broadcast %cst_78 : f32 to vector<4x128xf32>
    %182 = arith.addf %180, %181 : vector<4x128xf32>
    %183 = arith.mulf %182, %172 : vector<4x128xf32>
    %cst_79 = arith.constant 0.254829586 : f32
    %184 = vector.broadcast %cst_79 : f32 to vector<4x128xf32>
    %185 = arith.addf %183, %184 : vector<4x128xf32>
    %186 = arith.mulf %185, %172 : vector<4x128xf32>
    %cst_80 = arith.constant 0.000000e+00 : f32
    %187 = vector.broadcast %cst_80 : f32 to vector<4x128xf32>
    %188 = arith.subf %187, %166 : vector<4x128xf32>
    %189 = arith.mulf %188, %166 : vector<4x128xf32>
    %190 = math.exp %189 : vector<4x128xf32>
    %191 = arith.mulf %186, %190 : vector<4x128xf32>
    %cst_81 = arith.constant 1.000000e+00 : f32
    %192 = vector.broadcast %cst_81 : f32 to vector<4x128xf32>
    %193 = arith.subf %192, %191 : vector<4x128xf32>
    %194 = arith.mulf %165, %193 : vector<4x128xf32>
    %cst_82 = arith.constant 1.000000e+00 : f32
    %195 = vector.broadcast %cst_82 : f32 to vector<4x128xf32>
    %196 = arith.addf %195, %194 : vector<4x128xf32>
    %197 = arith.mulf %158, %196 : vector<4x128xf32>
    %198 = arith.addf %8, %197 : vector<4x128xf32>
    %199 = vector.broadcast %1 : vector<1x128xf32> to vector<4x128xf32>
    %200 = arith.mulf %198, %199 : vector<4x128xf32>
    %c1 = arith.constant 1 : index
    %c0_83 = arith.constant 0 : index
    %c0_84 = arith.constant 0 : index
    %201 = vector.load %arg5[%c1, %c0_83, %c0_84] : memref<3x4x3xf32, #tpu.memory_space<vmem>>, vector<1x4x3xf32>
    %202 = vector.shape_cast %201 : vector<1x4x3xf32> to vector<4x3xf32>
    %203 = vector.extract_strided_slice %202 {offsets = [0, 1], sizes = [4, 1], strides = [1, 1]} : vector<4x3xf32> to vector<4x1xf32>
    %204 = vector.broadcast %203 : vector<4x1xf32> to vector<4x128xf32>
    %205 = arith.mulf %204, %200 : vector<4x128xf32>
    %c3_i32 = arith.constant 3 : i32
    %206 = tpu.dynamic_rotate %200 by %c3_i32 dim 1 : vector<4x128xf32>, i32 -> vector<4x128xf32>
    %c-3_i32 = arith.constant -3 : i32
    %207 = vector.broadcast %c-3_i32 : i32 to vector<1x128xi32>
    %208 = arith.addi %9, %207 : vector<1x128xi32>
    %c0_i32_85 = arith.constant 0 : i32
    %209 = vector.broadcast %c0_i32_85 : i32 to vector<1x128xi32>
    %210 = arith.cmpi sge, %208, %209 : vector<1x128xi32>
    %c-3_i32_86 = arith.constant -3 : i32
    %211 = vector.broadcast %c-3_i32_86 : i32 to vector<1x128xi32>
    %212 = arith.addi %9, %211 : vector<1x128xi32>
    %c128_i32_87 = arith.constant 128 : i32
    %213 = vector.broadcast %c128_i32_87 : i32 to vector<1x128xi32>
    %214 = arith.cmpi slt, %212, %213 : vector<1x128xi32>
    %215 = arith.andi %210, %214 : vector<1x128xi1>
    %cst_88 = arith.constant 0.000000e+00 : f32
    %216 = vector.shape_cast %215 : vector<1x128xi1> to vector<1x128xi1>
    %217 = vector.broadcast %216 : vector<1x128xi1> to vector<4x128xi1>
    %218 = vector.broadcast %cst_88 : f32 to vector<4x128xf32>
    %219 = arith.select %217, %206, %218 : vector<4x128xi1>, vector<4x128xf32>
    %220 = vector.extract_strided_slice %202 {offsets = [0, 0], sizes = [4, 1], strides = [1, 1]} : vector<4x3xf32> to vector<4x1xf32>
    %221 = vector.broadcast %220 : vector<4x1xf32> to vector<4x128xf32>
    %222 = arith.mulf %221, %219 : vector<4x128xf32>
    %223 = arith.addf %205, %222 : vector<4x128xf32>
    %c125_i32 = arith.constant 125 : i32
    %224 = tpu.dynamic_rotate %200 by %c125_i32 dim 1 : vector<4x128xf32>, i32 -> vector<4x128xf32>
    %c3_i32_89 = arith.constant 3 : i32
    %225 = vector.broadcast %c3_i32_89 : i32 to vector<1x128xi32>
    %226 = arith.addi %9, %225 : vector<1x128xi32>
    %c0_i32_90 = arith.constant 0 : i32
    %227 = vector.broadcast %c0_i32_90 : i32 to vector<1x128xi32>
    %228 = arith.cmpi sge, %226, %227 : vector<1x128xi32>
    %c3_i32_91 = arith.constant 3 : i32
    %229 = vector.broadcast %c3_i32_91 : i32 to vector<1x128xi32>
    %230 = arith.addi %9, %229 : vector<1x128xi32>
    %c128_i32_92 = arith.constant 128 : i32
    %231 = vector.broadcast %c128_i32_92 : i32 to vector<1x128xi32>
    %232 = arith.cmpi slt, %230, %231 : vector<1x128xi32>
    %233 = arith.andi %228, %232 : vector<1x128xi1>
    %cst_93 = arith.constant 0.000000e+00 : f32
    %234 = vector.shape_cast %233 : vector<1x128xi1> to vector<1x128xi1>
    %235 = vector.broadcast %234 : vector<1x128xi1> to vector<4x128xi1>
    %236 = vector.broadcast %cst_93 : f32 to vector<4x128xf32>
    %237 = arith.select %235, %224, %236 : vector<4x128xi1>, vector<4x128xf32>
    %238 = vector.extract_strided_slice %202 {offsets = [0, 2], sizes = [4, 1], strides = [1, 1]} : vector<4x3xf32> to vector<4x1xf32>
    %239 = vector.broadcast %238 : vector<4x1xf32> to vector<4x128xf32>
    %240 = arith.mulf %239, %237 : vector<4x128xf32>
    %241 = arith.addf %223, %240 : vector<4x128xf32>
    %c1_94 = arith.constant 1 : index
    %c0_95 = arith.constant 0 : index
    %c0_96 = arith.constant 0 : index
    %242 = vector.load %arg6[%c1_94, %c0_95, %c0_96] : memref<3x4x1xf32, #tpu.memory_space<vmem>>, vector<1x4x1xf32>
    %243 = vector.shape_cast %242 : vector<1x4x1xf32> to vector<4x1xf32>
    %244 = vector.broadcast %243 : vector<4x1xf32> to vector<4x128xf32>
    %245 = arith.addf %241, %244 : vector<4x128xf32>
    %c1_97 = arith.constant 1 : index
    %c0_98 = arith.constant 0 : index
    %c0_99 = arith.constant 0 : index
    %246 = vector.load %arg9[%c1_97, %c0_98, %c0_99] : memref<3x4x1xf32, #tpu.memory_space<vmem>>, vector<1x4x1xf32>
    %247 = vector.shape_cast %246 : vector<1x4x1xf32> to vector<4x1xf32>
    %c1_100 = arith.constant 1 : index
    %c0_101 = arith.constant 0 : index
    %c0_102 = arith.constant 0 : index
    %248 = vector.load %arg10[%c1_100, %c0_101, %c0_102] : memref<3x4x1xf32, #tpu.memory_space<vmem>>, vector<1x4x1xf32>
    %249 = vector.shape_cast %248 : vector<1x4x1xf32> to vector<4x1xf32>
    %cst_103 = arith.constant dense<0.000000e+00> : vector<128xf32>
    %250 = vector.multi_reduction <add>, %245, %cst_103 [0] : vector<4x128xf32> to vector<128xf32>
    %251 = vector.shape_cast %250 : vector<128xf32> to vector<1x128xf32>
    %cst_104 = arith.constant 4.000000e+00 : f32
    %252 = vector.broadcast %cst_104 : f32 to vector<1x128xf32>
    %253 = arith.divf %251, %252 : vector<1x128xf32>
    %254 = vector.broadcast %253 : vector<1x128xf32> to vector<4x128xf32>
    %255 = arith.subf %245, %254 : vector<4x128xf32>
    %256 = arith.mulf %255, %255 : vector<4x128xf32>
    %cst_105 = arith.constant dense<0.000000e+00> : vector<128xf32>
    %257 = vector.multi_reduction <add>, %256, %cst_105 [0] : vector<4x128xf32> to vector<128xf32>
    %258 = vector.shape_cast %257 : vector<128xf32> to vector<1x128xf32>
    %cst_106 = arith.constant 4.000000e+00 : f32
    %259 = vector.broadcast %cst_106 : f32 to vector<1x128xf32>
    %260 = arith.divf %258, %259 : vector<1x128xf32>
    %261 = vector.broadcast %253 : vector<1x128xf32> to vector<4x128xf32>
    %262 = arith.subf %245, %261 : vector<4x128xf32>
    %cst_107 = arith.constant 9.99999974E-6 : f32
    %263 = vector.broadcast %cst_107 : f32 to vector<1x128xf32>
    %264 = arith.addf %260, %263 : vector<1x128xf32>
    %265 = math.rsqrt %264 : vector<1x128xf32>
    %266 = vector.broadcast %265 : vector<1x128xf32> to vector<4x128xf32>
    %267 = arith.mulf %262, %266 : vector<4x128xf32>
    %268 = vector.broadcast %247 : vector<4x1xf32> to vector<4x128xf32>
    %269 = arith.mulf %267, %268 : vector<4x128xf32>
    %270 = vector.broadcast %249 : vector<4x1xf32> to vector<4x128xf32>
    %271 = arith.addf %269, %270 : vector<4x128xf32>
    %cst_108 = arith.constant 5.000000e-01 : f32
    %272 = vector.broadcast %cst_108 : f32 to vector<4x128xf32>
    %273 = arith.mulf %272, %271 : vector<4x128xf32>
    %cst_109 = arith.constant 0.707106769 : f32
    %274 = vector.broadcast %cst_109 : f32 to vector<4x128xf32>
    %275 = arith.mulf %271, %274 : vector<4x128xf32>
    %cst_110 = arith.constant 0.000000e+00 : f32
    %276 = vector.broadcast %cst_110 : f32 to vector<4x128xf32>
    %277 = arith.cmpf oge, %275, %276 : vector<4x128xf32>
    %cst_111 = arith.constant 1.000000e+00 : f32
    %cst_112 = arith.constant -1.000000e+00 : f32
    %278 = vector.broadcast %cst_111 : f32 to vector<4x128xf32>
    %279 = vector.broadcast %cst_112 : f32 to vector<4x128xf32>
    %280 = arith.select %277, %278, %279 : vector<4x128xi1>, vector<4x128xf32>
    %281 = math.absf %275 : vector<4x128xf32>
    %cst_113 = arith.constant 0.327591091 : f32
    %282 = vector.broadcast %cst_113 : f32 to vector<4x128xf32>
    %283 = arith.mulf %282, %281 : vector<4x128xf32>
    %cst_114 = arith.constant 1.000000e+00 : f32
    %284 = vector.broadcast %cst_114 : f32 to vector<4x128xf32>
    %285 = arith.addf %284, %283 : vector<4x128xf32>
    %cst_115 = arith.constant 1.000000e+00 : f32
    %286 = vector.broadcast %cst_115 : f32 to vector<4x128xf32>
    %287 = arith.divf %286, %285 : vector<4x128xf32>
    %cst_116 = arith.constant 1.06140542 : f32
    %288 = vector.broadcast %cst_116 : f32 to vector<4x128xf32>
    %289 = arith.mulf %288, %287 : vector<4x128xf32>
    %cst_117 = arith.constant -1.45315206 : f32
    %290 = vector.broadcast %cst_117 : f32 to vector<4x128xf32>
    %291 = arith.addf %289, %290 : vector<4x128xf32>
    %292 = arith.mulf %291, %287 : vector<4x128xf32>
    %cst_118 = arith.constant 1.42141378 : f32
    %293 = vector.broadcast %cst_118 : f32 to vector<4x128xf32>
    %294 = arith.addf %292, %293 : vector<4x128xf32>
    %295 = arith.mulf %294, %287 : vector<4x128xf32>
    %cst_119 = arith.constant -0.284496725 : f32
    %296 = vector.broadcast %cst_119 : f32 to vector<4x128xf32>
    %297 = arith.addf %295, %296 : vector<4x128xf32>
    %298 = arith.mulf %297, %287 : vector<4x128xf32>
    %cst_120 = arith.constant 0.254829586 : f32
    %299 = vector.broadcast %cst_120 : f32 to vector<4x128xf32>
    %300 = arith.addf %298, %299 : vector<4x128xf32>
    %301 = arith.mulf %300, %287 : vector<4x128xf32>
    %cst_121 = arith.constant 0.000000e+00 : f32
    %302 = vector.broadcast %cst_121 : f32 to vector<4x128xf32>
    %303 = arith.subf %302, %281 : vector<4x128xf32>
    %304 = arith.mulf %303, %281 : vector<4x128xf32>
    %305 = math.exp %304 : vector<4x128xf32>
    %306 = arith.mulf %301, %305 : vector<4x128xf32>
    %cst_122 = arith.constant 1.000000e+00 : f32
    %307 = vector.broadcast %cst_122 : f32 to vector<4x128xf32>
    %308 = arith.subf %307, %306 : vector<4x128xf32>
    %309 = arith.mulf %280, %308 : vector<4x128xf32>
    %cst_123 = arith.constant 1.000000e+00 : f32
    %310 = vector.broadcast %cst_123 : f32 to vector<4x128xf32>
    %311 = arith.addf %310, %309 : vector<4x128xf32>
    %312 = arith.mulf %273, %311 : vector<4x128xf32>
    %c1_124 = arith.constant 1 : index
    %c0_125 = arith.constant 0 : index
    %c0_126 = arith.constant 0 : index
    %313 = vector.load %arg7[%c1_124, %c0_125, %c0_126] : memref<3x4x4xf32, #tpu.memory_space<vmem>>, vector<1x4x4xf32>
    %314 = vector.shape_cast %313 : vector<1x4x4xf32> to vector<4x4xf32>
    %cst_127 = arith.constant dense<0.000000e+00> : vector<4x128xf32>
    %315 = tpu.matmul %314, %312, %cst_127 {dimension_numbers = #tpu.dot_dimension_numbers<[1], [0], [0], [1], [0, 0, 1, 1], [], []>} : vector<4x4xf32>, vector<4x128xf32>, vector<4x128xf32> -> vector<4x128xf32>
    %c1_128 = arith.constant 1 : index
    %c0_129 = arith.constant 0 : index
    %c0_130 = arith.constant 0 : index
    %316 = vector.load %arg8[%c1_128, %c0_129, %c0_130] : memref<3x4x1xf32, #tpu.memory_space<vmem>>, vector<1x4x1xf32>
    %317 = vector.shape_cast %316 : vector<1x4x1xf32> to vector<4x1xf32>
    %318 = vector.broadcast %317 : vector<4x1xf32> to vector<4x128xf32>
    %319 = arith.addf %315, %318 : vector<4x128xf32>
    %c1_131 = arith.constant 1 : index
    %c0_132 = arith.constant 0 : index
    %c0_133 = arith.constant 0 : index
    %320 = vector.load %arg11[%c1_131, %c0_132, %c0_133] : memref<3x4x1xf32, #tpu.memory_space<vmem>>, vector<1x4x1xf32>
    %321 = vector.shape_cast %320 : vector<1x4x1xf32> to vector<4x1xf32>
    %c1_134 = arith.constant 1 : index
    %c0_135 = arith.constant 0 : index
    %c0_136 = arith.constant 0 : index
    %322 = vector.load %arg12[%c1_134, %c0_135, %c0_136] : memref<3x4x1xf32, #tpu.memory_space<vmem>>, vector<1x4x1xf32>
    %323 = vector.shape_cast %322 : vector<1x4x1xf32> to vector<4x1xf32>
    %cst_137 = arith.constant dense<0.000000e+00> : vector<128xf32>
    %324 = vector.multi_reduction <add>, %319, %cst_137 [0] : vector<4x128xf32> to vector<128xf32>
    %325 = vector.shape_cast %324 : vector<128xf32> to vector<1x128xf32>
    %cst_138 = arith.constant 4.000000e+00 : f32
    %326 = vector.broadcast %cst_138 : f32 to vector<1x128xf32>
    %327 = arith.divf %325, %326 : vector<1x128xf32>
    %328 = vector.broadcast %327 : vector<1x128xf32> to vector<4x128xf32>
    %329 = arith.subf %319, %328 : vector<4x128xf32>
    %330 = arith.mulf %329, %329 : vector<4x128xf32>
    %cst_139 = arith.constant dense<0.000000e+00> : vector<128xf32>
    %331 = vector.multi_reduction <add>, %330, %cst_139 [0] : vector<4x128xf32> to vector<128xf32>
    %332 = vector.shape_cast %331 : vector<128xf32> to vector<1x128xf32>
    %cst_140 = arith.constant 4.000000e+00 : f32
    %333 = vector.broadcast %cst_140 : f32 to vector<1x128xf32>
    %334 = arith.divf %332, %333 : vector<1x128xf32>
    %335 = vector.broadcast %327 : vector<1x128xf32> to vector<4x128xf32>
    %336 = arith.subf %319, %335 : vector<4x128xf32>
    %cst_141 = arith.constant 9.99999974E-6 : f32
    %337 = vector.broadcast %cst_141 : f32 to vector<1x128xf32>
    %338 = arith.addf %334, %337 : vector<1x128xf32>
    %339 = math.rsqrt %338 : vector<1x128xf32>
    %340 = vector.broadcast %339 : vector<1x128xf32> to vector<4x128xf32>
    %341 = arith.mulf %336, %340 : vector<4x128xf32>
    %342 = vector.broadcast %321 : vector<4x1xf32> to vector<4x128xf32>
    %343 = arith.mulf %341, %342 : vector<4x128xf32>
    %344 = vector.broadcast %323 : vector<4x1xf32> to vector<4x128xf32>
    %345 = arith.addf %343, %344 : vector<4x128xf32>
    %cst_142 = arith.constant 5.000000e-01 : f32
    %346 = vector.broadcast %cst_142 : f32 to vector<4x128xf32>
    %347 = arith.mulf %346, %345 : vector<4x128xf32>
    %cst_143 = arith.constant 0.707106769 : f32
    %348 = vector.broadcast %cst_143 : f32 to vector<4x128xf32>
    %349 = arith.mulf %345, %348 : vector<4x128xf32>
    %cst_144 = arith.constant 0.000000e+00 : f32
    %350 = vector.broadcast %cst_144 : f32 to vector<4x128xf32>
    %351 = arith.cmpf oge, %349, %350 : vector<4x128xf32>
    %cst_145 = arith.constant 1.000000e+00 : f32
    %cst_146 = arith.constant -1.000000e+00 : f32
    %352 = vector.broadcast %cst_145 : f32 to vector<4x128xf32>
    %353 = vector.broadcast %cst_146 : f32 to vector<4x128xf32>
    %354 = arith.select %351, %352, %353 : vector<4x128xi1>, vector<4x128xf32>
    %355 = math.absf %349 : vector<4x128xf32>
    %cst_147 = arith.constant 0.327591091 : f32
    %356 = vector.broadcast %cst_147 : f32 to vector<4x128xf32>
    %357 = arith.mulf %356, %355 : vector<4x128xf32>
    %cst_148 = arith.constant 1.000000e+00 : f32
    %358 = vector.broadcast %cst_148 : f32 to vector<4x128xf32>
    %359 = arith.addf %358, %357 : vector<4x128xf32>
    %cst_149 = arith.constant 1.000000e+00 : f32
    %360 = vector.broadcast %cst_149 : f32 to vector<4x128xf32>
    %361 = arith.divf %360, %359 : vector<4x128xf32>
    %cst_150 = arith.constant 1.06140542 : f32
    %362 = vector.broadcast %cst_150 : f32 to vector<4x128xf32>
    %363 = arith.mulf %362, %361 : vector<4x128xf32>
    %cst_151 = arith.constant -1.45315206 : f32
    %364 = vector.broadcast %cst_151 : f32 to vector<4x128xf32>
    %365 = arith.addf %363, %364 : vector<4x128xf32>
    %366 = arith.mulf %365, %361 : vector<4x128xf32>
    %cst_152 = arith.constant 1.42141378 : f32
    %367 = vector.broadcast %cst_152 : f32 to vector<4x128xf32>
    %368 = arith.addf %366, %367 : vector<4x128xf32>
    %369 = arith.mulf %368, %361 : vector<4x128xf32>
    %cst_153 = arith.constant -0.284496725 : f32
    %370 = vector.broadcast %cst_153 : f32 to vector<4x128xf32>
    %371 = arith.addf %369, %370 : vector<4x128xf32>
    %372 = arith.mulf %371, %361 : vector<4x128xf32>
    %cst_154 = arith.constant 0.254829586 : f32
    %373 = vector.broadcast %cst_154 : f32 to vector<4x128xf32>
    %374 = arith.addf %372, %373 : vector<4x128xf32>
    %375 = arith.mulf %374, %361 : vector<4x128xf32>
    %cst_155 = arith.constant 0.000000e+00 : f32
    %376 = vector.broadcast %cst_155 : f32 to vector<4x128xf32>
    %377 = arith.subf %376, %355 : vector<4x128xf32>
    %378 = arith.mulf %377, %355 : vector<4x128xf32>
    %379 = math.exp %378 : vector<4x128xf32>
    %380 = arith.mulf %375, %379 : vector<4x128xf32>
    %cst_156 = arith.constant 1.000000e+00 : f32
    %381 = vector.broadcast %cst_156 : f32 to vector<4x128xf32>
    %382 = arith.subf %381, %380 : vector<4x128xf32>
    %383 = arith.mulf %354, %382 : vector<4x128xf32>
    %cst_157 = arith.constant 1.000000e+00 : f32
    %384 = vector.broadcast %cst_157 : f32 to vector<4x128xf32>
    %385 = arith.addf %384, %383 : vector<4x128xf32>
    %386 = arith.mulf %347, %385 : vector<4x128xf32>
    %387 = arith.addf %198, %386 : vector<4x128xf32>
    %388 = vector.broadcast %1 : vector<1x128xf32> to vector<4x128xf32>
    %389 = arith.mulf %387, %388 : vector<4x128xf32>
    %c2 = arith.constant 2 : index
    %c0_158 = arith.constant 0 : index
    %c0_159 = arith.constant 0 : index
    %390 = vector.load %arg5[%c2, %c0_158, %c0_159] : memref<3x4x3xf32, #tpu.memory_space<vmem>>, vector<1x4x3xf32>
    %391 = vector.shape_cast %390 : vector<1x4x3xf32> to vector<4x3xf32>
    %392 = vector.extract_strided_slice %391 {offsets = [0, 1], sizes = [4, 1], strides = [1, 1]} : vector<4x3xf32> to vector<4x1xf32>
    %393 = vector.broadcast %392 : vector<4x1xf32> to vector<4x128xf32>
    %394 = arith.mulf %393, %389 : vector<4x128xf32>
    %c9_i32 = arith.constant 9 : i32
    %395 = tpu.dynamic_rotate %389 by %c9_i32 dim 1 : vector<4x128xf32>, i32 -> vector<4x128xf32>
    %c-9_i32 = arith.constant -9 : i32
    %396 = vector.broadcast %c-9_i32 : i32 to vector<1x128xi32>
    %397 = arith.addi %9, %396 : vector<1x128xi32>
    %c0_i32_160 = arith.constant 0 : i32
    %398 = vector.broadcast %c0_i32_160 : i32 to vector<1x128xi32>
    %399 = arith.cmpi sge, %397, %398 : vector<1x128xi32>
    %c-9_i32_161 = arith.constant -9 : i32
    %400 = vector.broadcast %c-9_i32_161 : i32 to vector<1x128xi32>
    %401 = arith.addi %9, %400 : vector<1x128xi32>
    %c128_i32_162 = arith.constant 128 : i32
    %402 = vector.broadcast %c128_i32_162 : i32 to vector<1x128xi32>
    %403 = arith.cmpi slt, %401, %402 : vector<1x128xi32>
    %404 = arith.andi %399, %403 : vector<1x128xi1>
    %cst_163 = arith.constant 0.000000e+00 : f32
    %405 = vector.shape_cast %404 : vector<1x128xi1> to vector<1x128xi1>
    %406 = vector.broadcast %405 : vector<1x128xi1> to vector<4x128xi1>
    %407 = vector.broadcast %cst_163 : f32 to vector<4x128xf32>
    %408 = arith.select %406, %395, %407 : vector<4x128xi1>, vector<4x128xf32>
    %409 = vector.extract_strided_slice %391 {offsets = [0, 0], sizes = [4, 1], strides = [1, 1]} : vector<4x3xf32> to vector<4x1xf32>
    %410 = vector.broadcast %409 : vector<4x1xf32> to vector<4x128xf32>
    %411 = arith.mulf %410, %408 : vector<4x128xf32>
    %412 = arith.addf %394, %411 : vector<4x128xf32>
    %c119_i32 = arith.constant 119 : i32
    %413 = tpu.dynamic_rotate %389 by %c119_i32 dim 1 : vector<4x128xf32>, i32 -> vector<4x128xf32>
    %c9_i32_164 = arith.constant 9 : i32
    %414 = vector.broadcast %c9_i32_164 : i32 to vector<1x128xi32>
    %415 = arith.addi %9, %414 : vector<1x128xi32>
    %c0_i32_165 = arith.constant 0 : i32
    %416 = vector.broadcast %c0_i32_165 : i32 to vector<1x128xi32>
    %417 = arith.cmpi sge, %415, %416 : vector<1x128xi32>
    %c9_i32_166 = arith.constant 9 : i32
    %418 = vector.broadcast %c9_i32_166 : i32 to vector<1x128xi32>
    %419 = arith.addi %9, %418 : vector<1x128xi32>
    %c128_i32_167 = arith.constant 128 : i32
    %420 = vector.broadcast %c128_i32_167 : i32 to vector<1x128xi32>
    %421 = arith.cmpi slt, %419, %420 : vector<1x128xi32>
    %422 = arith.andi %417, %421 : vector<1x128xi1>
    %cst_168 = arith.constant 0.000000e+00 : f32
    %423 = vector.shape_cast %422 : vector<1x128xi1> to vector<1x128xi1>
    %424 = vector.broadcast %423 : vector<1x128xi1> to vector<4x128xi1>
    %425 = vector.broadcast %cst_168 : f32 to vector<4x128xf32>
    %426 = arith.select %424, %413, %425 : vector<4x128xi1>, vector<4x128xf32>
    %427 = vector.extract_strided_slice %391 {offsets = [0, 2], sizes = [4, 1], strides = [1, 1]} : vector<4x3xf32> to vector<4x1xf32>
    %428 = vector.broadcast %427 : vector<4x1xf32> to vector<4x128xf32>
    %429 = arith.mulf %428, %426 : vector<4x128xf32>
    %430 = arith.addf %412, %429 : vector<4x128xf32>
    %c2_169 = arith.constant 2 : index
    %c0_170 = arith.constant 0 : index
    %c0_171 = arith.constant 0 : index
    %431 = vector.load %arg6[%c2_169, %c0_170, %c0_171] : memref<3x4x1xf32, #tpu.memory_space<vmem>>, vector<1x4x1xf32>
    %432 = vector.shape_cast %431 : vector<1x4x1xf32> to vector<4x1xf32>
    %433 = vector.broadcast %432 : vector<4x1xf32> to vector<4x128xf32>
    %434 = arith.addf %430, %433 : vector<4x128xf32>
    %c2_172 = arith.constant 2 : index
    %c0_173 = arith.constant 0 : index
    %c0_174 = arith.constant 0 : index
    %435 = vector.load %arg9[%c2_172, %c0_173, %c0_174] : memref<3x4x1xf32, #tpu.memory_space<vmem>>, vector<1x4x1xf32>
    %436 = vector.shape_cast %435 : vector<1x4x1xf32> to vector<4x1xf32>
    %c2_175 = arith.constant 2 : index
    %c0_176 = arith.constant 0 : index
    %c0_177 = arith.constant 0 : index
    %437 = vector.load %arg10[%c2_175, %c0_176, %c0_177] : memref<3x4x1xf32, #tpu.memory_space<vmem>>, vector<1x4x1xf32>
    %438 = vector.shape_cast %437 : vector<1x4x1xf32> to vector<4x1xf32>
    %cst_178 = arith.constant dense<0.000000e+00> : vector<128xf32>
    %439 = vector.multi_reduction <add>, %434, %cst_178 [0] : vector<4x128xf32> to vector<128xf32>
    %440 = vector.shape_cast %439 : vector<128xf32> to vector<1x128xf32>
    %cst_179 = arith.constant 4.000000e+00 : f32
    %441 = vector.broadcast %cst_179 : f32 to vector<1x128xf32>
    %442 = arith.divf %440, %441 : vector<1x128xf32>
    %443 = vector.broadcast %442 : vector<1x128xf32> to vector<4x128xf32>
    %444 = arith.subf %434, %443 : vector<4x128xf32>
    %445 = arith.mulf %444, %444 : vector<4x128xf32>
    %cst_180 = arith.constant dense<0.000000e+00> : vector<128xf32>
    %446 = vector.multi_reduction <add>, %445, %cst_180 [0] : vector<4x128xf32> to vector<128xf32>
    %447 = vector.shape_cast %446 : vector<128xf32> to vector<1x128xf32>
    %cst_181 = arith.constant 4.000000e+00 : f32
    %448 = vector.broadcast %cst_181 : f32 to vector<1x128xf32>
    %449 = arith.divf %447, %448 : vector<1x128xf32>
    %450 = vector.broadcast %442 : vector<1x128xf32> to vector<4x128xf32>
    %451 = arith.subf %434, %450 : vector<4x128xf32>
    %cst_182 = arith.constant 9.99999974E-6 : f32
    %452 = vector.broadcast %cst_182 : f32 to vector<1x128xf32>
    %453 = arith.addf %449, %452 : vector<1x128xf32>
    %454 = math.rsqrt %453 : vector<1x128xf32>
    %455 = vector.broadcast %454 : vector<1x128xf32> to vector<4x128xf32>
    %456 = arith.mulf %451, %455 : vector<4x128xf32>
    %457 = vector.broadcast %436 : vector<4x1xf32> to vector<4x128xf32>
    %458 = arith.mulf %456, %457 : vector<4x128xf32>
    %459 = vector.broadcast %438 : vector<4x1xf32> to vector<4x128xf32>
    %460 = arith.addf %458, %459 : vector<4x128xf32>
    %cst_183 = arith.constant 5.000000e-01 : f32
    %461 = vector.broadcast %cst_183 : f32 to vector<4x128xf32>
    %462 = arith.mulf %461, %460 : vector<4x128xf32>
    %cst_184 = arith.constant 0.707106769 : f32
    %463 = vector.broadcast %cst_184 : f32 to vector<4x128xf32>
    %464 = arith.mulf %460, %463 : vector<4x128xf32>
    %cst_185 = arith.constant 0.000000e+00 : f32
    %465 = vector.broadcast %cst_185 : f32 to vector<4x128xf32>
    %466 = arith.cmpf oge, %464, %465 : vector<4x128xf32>
    %cst_186 = arith.constant 1.000000e+00 : f32
    %cst_187 = arith.constant -1.000000e+00 : f32
    %467 = vector.broadcast %cst_186 : f32 to vector<4x128xf32>
    %468 = vector.broadcast %cst_187 : f32 to vector<4x128xf32>
    %469 = arith.select %466, %467, %468 : vector<4x128xi1>, vector<4x128xf32>
    %470 = math.absf %464 : vector<4x128xf32>
    %cst_188 = arith.constant 0.327591091 : f32
    %471 = vector.broadcast %cst_188 : f32 to vector<4x128xf32>
    %472 = arith.mulf %471, %470 : vector<4x128xf32>
    %cst_189 = arith.constant 1.000000e+00 : f32
    %473 = vector.broadcast %cst_189 : f32 to vector<4x128xf32>
    %474 = arith.addf %473, %472 : vector<4x128xf32>
    %cst_190 = arith.constant 1.000000e+00 : f32
    %475 = vector.broadcast %cst_190 : f32 to vector<4x128xf32>
    %476 = arith.divf %475, %474 : vector<4x128xf32>
    %cst_191 = arith.constant 1.06140542 : f32
    %477 = vector.broadcast %cst_191 : f32 to vector<4x128xf32>
    %478 = arith.mulf %477, %476 : vector<4x128xf32>
    %cst_192 = arith.constant -1.45315206 : f32
    %479 = vector.broadcast %cst_192 : f32 to vector<4x128xf32>
    %480 = arith.addf %478, %479 : vector<4x128xf32>
    %481 = arith.mulf %480, %476 : vector<4x128xf32>
    %cst_193 = arith.constant 1.42141378 : f32
    %482 = vector.broadcast %cst_193 : f32 to vector<4x128xf32>
    %483 = arith.addf %481, %482 : vector<4x128xf32>
    %484 = arith.mulf %483, %476 : vector<4x128xf32>
    %cst_194 = arith.constant -0.284496725 : f32
    %485 = vector.broadcast %cst_194 : f32 to vector<4x128xf32>
    %486 = arith.addf %484, %485 : vector<4x128xf32>
    %487 = arith.mulf %486, %476 : vector<4x128xf32>
    %cst_195 = arith.constant 0.254829586 : f32
    %488 = vector.broadcast %cst_195 : f32 to vector<4x128xf32>
    %489 = arith.addf %487, %488 : vector<4x128xf32>
    %490 = arith.mulf %489, %476 : vector<4x128xf32>
    %cst_196 = arith.constant 0.000000e+00 : f32
    %491 = vector.broadcast %cst_196 : f32 to vector<4x128xf32>
    %492 = arith.subf %491, %470 : vector<4x128xf32>
    %493 = arith.mulf %492, %470 : vector<4x128xf32>
    %494 = math.exp %493 : vector<4x128xf32>
    %495 = arith.mulf %490, %494 : vector<4x128xf32>
    %cst_197 = arith.constant 1.000000e+00 : f32
    %496 = vector.broadcast %cst_197 : f32 to vector<4x128xf32>
    %497 = arith.subf %496, %495 : vector<4x128xf32>
    %498 = arith.mulf %469, %497 : vector<4x128xf32>
    %cst_198 = arith.constant 1.000000e+00 : f32
    %499 = vector.broadcast %cst_198 : f32 to vector<4x128xf32>
    %500 = arith.addf %499, %498 : vector<4x128xf32>
    %501 = arith.mulf %462, %500 : vector<4x128xf32>
    %c2_199 = arith.constant 2 : index
    %c0_200 = arith.constant 0 : index
    %c0_201 = arith.constant 0 : index
    %502 = vector.load %arg7[%c2_199, %c0_200, %c0_201] : memref<3x4x4xf32, #tpu.memory_space<vmem>>, vector<1x4x4xf32>
    %503 = vector.shape_cast %502 : vector<1x4x4xf32> to vector<4x4xf32>
    %cst_202 = arith.constant dense<0.000000e+00> : vector<4x128xf32>
    %504 = tpu.matmul %503, %501, %cst_202 {dimension_numbers = #tpu.dot_dimension_numbers<[1], [0], [0], [1], [0, 0, 1, 1], [], []>} : vector<4x4xf32>, vector<4x128xf32>, vector<4x128xf32> -> vector<4x128xf32>
    %c2_203 = arith.constant 2 : index
    %c0_204 = arith.constant 0 : index
    %c0_205 = arith.constant 0 : index
    %505 = vector.load %arg8[%c2_203, %c0_204, %c0_205] : memref<3x4x1xf32, #tpu.memory_space<vmem>>, vector<1x4x1xf32>
    %506 = vector.shape_cast %505 : vector<1x4x1xf32> to vector<4x1xf32>
    %507 = vector.broadcast %506 : vector<4x1xf32> to vector<4x128xf32>
    %508 = arith.addf %504, %507 : vector<4x128xf32>
    %c2_206 = arith.constant 2 : index
    %c0_207 = arith.constant 0 : index
    %c0_208 = arith.constant 0 : index
    %509 = vector.load %arg11[%c2_206, %c0_207, %c0_208] : memref<3x4x1xf32, #tpu.memory_space<vmem>>, vector<1x4x1xf32>
    %510 = vector.shape_cast %509 : vector<1x4x1xf32> to vector<4x1xf32>
    %c2_209 = arith.constant 2 : index
    %c0_210 = arith.constant 0 : index
    %c0_211 = arith.constant 0 : index
    %511 = vector.load %arg12[%c2_209, %c0_210, %c0_211] : memref<3x4x1xf32, #tpu.memory_space<vmem>>, vector<1x4x1xf32>
    %512 = vector.shape_cast %511 : vector<1x4x1xf32> to vector<4x1xf32>
    %cst_212 = arith.constant dense<0.000000e+00> : vector<128xf32>
    %513 = vector.multi_reduction <add>, %508, %cst_212 [0] : vector<4x128xf32> to vector<128xf32>
    %514 = vector.shape_cast %513 : vector<128xf32> to vector<1x128xf32>
    %cst_213 = arith.constant 4.000000e+00 : f32
    %515 = vector.broadcast %cst_213 : f32 to vector<1x128xf32>
    %516 = arith.divf %514, %515 : vector<1x128xf32>
    %517 = vector.broadcast %516 : vector<1x128xf32> to vector<4x128xf32>
    %518 = arith.subf %508, %517 : vector<4x128xf32>
    %519 = arith.mulf %518, %518 : vector<4x128xf32>
    %cst_214 = arith.constant dense<0.000000e+00> : vector<128xf32>
    %520 = vector.multi_reduction <add>, %519, %cst_214 [0] : vector<4x128xf32> to vector<128xf32>
    %521 = vector.shape_cast %520 : vector<128xf32> to vector<1x128xf32>
    %cst_215 = arith.constant 4.000000e+00 : f32
    %522 = vector.broadcast %cst_215 : f32 to vector<1x128xf32>
    %523 = arith.divf %521, %522 : vector<1x128xf32>
    %524 = vector.broadcast %516 : vector<1x128xf32> to vector<4x128xf32>
    %525 = arith.subf %508, %524 : vector<4x128xf32>
    %cst_216 = arith.constant 9.99999974E-6 : f32
    %526 = vector.broadcast %cst_216 : f32 to vector<1x128xf32>
    %527 = arith.addf %523, %526 : vector<1x128xf32>
    %528 = math.rsqrt %527 : vector<1x128xf32>
    %529 = vector.broadcast %528 : vector<1x128xf32> to vector<4x128xf32>
    %530 = arith.mulf %525, %529 : vector<4x128xf32>
    %531 = vector.broadcast %510 : vector<4x1xf32> to vector<4x128xf32>
    %532 = arith.mulf %530, %531 : vector<4x128xf32>
    %533 = vector.broadcast %512 : vector<4x1xf32> to vector<4x128xf32>
    %534 = arith.addf %532, %533 : vector<4x128xf32>
    %cst_217 = arith.constant 5.000000e-01 : f32
    %535 = vector.broadcast %cst_217 : f32 to vector<4x128xf32>
    %536 = arith.mulf %535, %534 : vector<4x128xf32>
    %cst_218 = arith.constant 0.707106769 : f32
    %537 = vector.broadcast %cst_218 : f32 to vector<4x128xf32>
    %538 = arith.mulf %534, %537 : vector<4x128xf32>
    %cst_219 = arith.constant 0.000000e+00 : f32
    %539 = vector.broadcast %cst_219 : f32 to vector<4x128xf32>
    %540 = arith.cmpf oge, %538, %539 : vector<4x128xf32>
    %cst_220 = arith.constant 1.000000e+00 : f32
    %cst_221 = arith.constant -1.000000e+00 : f32
    %541 = vector.broadcast %cst_220 : f32 to vector<4x128xf32>
    %542 = vector.broadcast %cst_221 : f32 to vector<4x128xf32>
    %543 = arith.select %540, %541, %542 : vector<4x128xi1>, vector<4x128xf32>
    %544 = math.absf %538 : vector<4x128xf32>
    %cst_222 = arith.constant 0.327591091 : f32
    %545 = vector.broadcast %cst_222 : f32 to vector<4x128xf32>
    %546 = arith.mulf %545, %544 : vector<4x128xf32>
    %cst_223 = arith.constant 1.000000e+00 : f32
    %547 = vector.broadcast %cst_223 : f32 to vector<4x128xf32>
    %548 = arith.addf %547, %546 : vector<4x128xf32>
    %cst_224 = arith.constant 1.000000e+00 : f32
    %549 = vector.broadcast %cst_224 : f32 to vector<4x128xf32>
    %550 = arith.divf %549, %548 : vector<4x128xf32>
    %cst_225 = arith.constant 1.06140542 : f32
    %551 = vector.broadcast %cst_225 : f32 to vector<4x128xf32>
    %552 = arith.mulf %551, %550 : vector<4x128xf32>
    %cst_226 = arith.constant -1.45315206 : f32
    %553 = vector.broadcast %cst_226 : f32 to vector<4x128xf32>
    %554 = arith.addf %552, %553 : vector<4x128xf32>
    %555 = arith.mulf %554, %550 : vector<4x128xf32>
    %cst_227 = arith.constant 1.42141378 : f32
    %556 = vector.broadcast %cst_227 : f32 to vector<4x128xf32>
    %557 = arith.addf %555, %556 : vector<4x128xf32>
    %558 = arith.mulf %557, %550 : vector<4x128xf32>
    %cst_228 = arith.constant -0.284496725 : f32
    %559 = vector.broadcast %cst_228 : f32 to vector<4x128xf32>
    %560 = arith.addf %558, %559 : vector<4x128xf32>
    %561 = arith.mulf %560, %550 : vector<4x128xf32>
    %cst_229 = arith.constant 0.254829586 : f32
    %562 = vector.broadcast %cst_229 : f32 to vector<4x128xf32>
    %563 = arith.addf %561, %562 : vector<4x128xf32>
    %564 = arith.mulf %563, %550 : vector<4x128xf32>
    %cst_230 = arith.constant 0.000000e+00 : f32
    %565 = vector.broadcast %cst_230 : f32 to vector<4x128xf32>
    %566 = arith.subf %565, %544 : vector<4x128xf32>
    %567 = arith.mulf %566, %544 : vector<4x128xf32>
    %568 = math.exp %567 : vector<4x128xf32>
    %569 = arith.mulf %564, %568 : vector<4x128xf32>
    %cst_231 = arith.constant 1.000000e+00 : f32
    %570 = vector.broadcast %cst_231 : f32 to vector<4x128xf32>
    %571 = arith.subf %570, %569 : vector<4x128xf32>
    %572 = arith.mulf %543, %571 : vector<4x128xf32>
    %cst_232 = arith.constant 1.000000e+00 : f32
    %573 = vector.broadcast %cst_232 : f32 to vector<4x128xf32>
    %574 = arith.addf %573, %572 : vector<4x128xf32>
    %575 = arith.mulf %536, %574 : vector<4x128xf32>
    %576 = arith.addf %387, %575 : vector<4x128xf32>
    %577 = vector.broadcast %1 : vector<1x128xf32> to vector<4x128xf32>
    %578 = arith.mulf %576, %577 : vector<4x128xf32>
    %c0_233 = arith.constant 0 : index
    %c0_234 = arith.constant 0 : index
    %579 = vector.load %arg13[%c0_233, %c0_234] : memref<4x4xf32, #tpu.memory_space<vmem>>, vector<4x4xf32>
    %cst_235 = arith.constant dense<0.000000e+00> : vector<4x128xf32>
    %580 = tpu.matmul %579, %578, %cst_235 {dimension_numbers = #tpu.dot_dimension_numbers<[1], [0], [0], [1], [0, 0, 1, 1], [], []>} : vector<4x4xf32>, vector<4x128xf32>, vector<4x128xf32> -> vector<4x128xf32>
    %c0_236 = arith.constant 0 : index
    %c0_237 = arith.constant 0 : index
    %581 = vector.load %arg14[%c0_236, %c0_237] : memref<4x1xf32, #tpu.memory_space<vmem>>, vector<4x1xf32>
    %582 = vector.broadcast %581 : vector<4x1xf32> to vector<4x128xf32>
    %583 = arith.addf %580, %582 : vector<4x128xf32>
    %584 = vector.broadcast %1 : vector<1x128xf32> to vector<4x128xf32>
    %585 = arith.mulf %583, %584 : vector<4x128xf32>
    %c0_238 = arith.constant 0 : index
    %c0_239 = arith.constant 0 : index
    %c0_240 = arith.constant 0 : index
    %586 = vector.load %arg15[%c0_238, %c0_239, %c0_240] : memref<1x4x128xf32, #tpu.memory_space<vmem>>, vector<1x4x128xf32>
    %587 = vector.shape_cast %586 : vector<1x4x128xf32> to vector<4x128xf32>
    %588 = vector.shape_cast %585 : vector<4x128xf32> to vector<1x4x128xf32>
    tpu.vector_store %arg15[%c0_238, %c0_239, %c0_240], %588 {strides = array<i32>} : memref<1x4x128xf32, #tpu.memory_space<vmem>>, vector<1x4x128xf32>,
    return
  }
  func.func @transform_0(%arg0: i32) -> (i32, i32, i32) {
    %c0_i32 = arith.constant 0 : i32
    %c0_i32_0 = arith.constant 0 : i32
    %c0_i32_1 = arith.constant 0 : i32
    return %arg0, %c0_i32, %c0_i32_0 : i32, i32, i32
  }
  func.func @transform_1(%arg0: i32) -> (i32, i32, i32) {
    %c0_i32 = arith.constant 0 : i32
    %c0_i32_0 = arith.constant 0 : i32
    %c0_i32_1 = arith.constant 0 : i32
    return %arg0, %c0_i32, %c0_i32_0 : i32, i32, i32
  }
  func.func @transform_2(%arg0: i32) -> (i32, i32) {
    %c0_i32 = arith.constant 0 : i32
    %c0_i32_0 = arith.constant 0 : i32
    %c0_i32_1 = arith.constant 0 : i32
    return %c0_i32, %c0_i32_0 : i32, i32
  }
  func.func @transform_3(%arg0: i32) -> (i32, i32) {
    %c0_i32 = arith.constant 0 : i32
    %c0_i32_0 = arith.constant 0 : i32
    %c0_i32_1 = arith.constant 0 : i32
    return %c0_i32, %c0_i32_0 : i32, i32
  }
  func.func @transform_4(%arg0: i32) -> (i32, i32, i32) {
    %c0_i32 = arith.constant 0 : i32
    %c0_i32_0 = arith.constant 0 : i32
    %c0_i32_1 = arith.constant 0 : i32
    %c0_i32_2 = arith.constant 0 : i32
    return %c0_i32, %c0_i32_0, %c0_i32_1 : i32, i32, i32
  }
  func.func @transform_5(%arg0: i32) -> (i32, i32, i32) {
    %c0_i32 = arith.constant 0 : i32
    %c0_i32_0 = arith.constant 0 : i32
    %c0_i32_1 = arith.constant 0 : i32
    %c0_i32_2 = arith.constant 0 : i32
    return %c0_i32, %c0_i32_0, %c0_i32_1 : i32, i32, i32
  }
  func.func @transform_6(%arg0: i32) -> (i32, i32, i32) {
    %c0_i32 = arith.constant 0 : i32
    %c0_i32_0 = arith.constant 0 : i32
    %c0_i32_1 = arith.constant 0 : i32
    %c0_i32_2 = arith.constant 0 : i32
    return %c0_i32, %c0_i32_0, %c0_i32_1 : i32, i32, i32
  }
  func.func @transform_7(%arg0: i32) -> (i32, i32, i32) {
    %c0_i32 = arith.constant 0 : i32
    %c0_i32_0 = arith.constant 0 : i32
    %c0_i32_1 = arith.constant 0 : i32
    %c0_i32_2 = arith.constant 0 : i32
    return %c0_i32, %c0_i32_0, %c0_i32_1 : i32, i32, i32
  }
  func.func @transform_8(%arg0: i32) -> (i32, i32, i32) {
    %c0_i32 = arith.constant 0 : i32
    %c0_i32_0 = arith.constant 0 : i32
    %c0_i32_1 = arith.constant 0 : i32
    %c0_i32_2 = arith.constant 0 : i32
    return %c0_i32, %c0_i32_0, %c0_i32_1 : i32, i32, i32
  }
  func.func @transform_9(%arg0: i32) -> (i32, i32, i32) {
    %c0_i32 = arith.constant 0 : i32
    %c0_i32_0 = arith.constant 0 : i32
    %c0_i32_1 = arith.constant 0 : i32
    %c0_i32_2 = arith.constant 0 : i32
    return %c0_i32, %c0_i32_0, %c0_i32_1 : i32, i32, i32
  }
  func.func @transform_10(%arg0: i32) -> (i32, i32, i32) {
    %c0_i32 = arith.constant 0 : i32
    %c0_i32_0 = arith.constant 0 : i32
    %c0_i32_1 = arith.constant 0 : i32
    %c0_i32_2 = arith.constant 0 : i32
    return %c0_i32, %c0_i32_0, %c0_i32_1 : i32, i32, i32
  }
  func.func @transform_11(%arg0: i32) -> (i32, i32, i32) {
    %c0_i32 = arith.constant 0 : i32
    %c0_i32_0 = arith.constant 0 : i32
    %c0_i32_1 = arith.constant 0 : i32
    %c0_i32_2 = arith.constant 0 : i32
    return %c0_i32, %c0_i32_0, %c0_i32_1 : i32, i32, i32
  }
  func.func @transform_12(%arg0: i32) -> (i32, i32) {
    %c0_i32 = arith.constant 0 : i32
    %c0_i32_0 = arith.constant 0 : i32
    %c0_i32_1 = arith.constant 0 : i32
    return %c0_i32, %c0_i32_0 : i32, i32
  }
  func.func @transform_13(%arg0: i32) -> (i32, i32) {
    %c0_i32 = arith.constant 0 : i32
    %c0_i32_0 = arith.constant 0 : i32
    %c0_i32_1 = arith.constant 0 : i32
    return %c0_i32, %c0_i32_0 : i32, i32
  }
  func.func @transform_14(%arg0: i32) -> (i32, i32, i32) {
    %c0_i32 = arith.constant 0 : i32
    %c0_i32_0 = arith.constant 0 : i32
    %c0_i32_1 = arith.constant 0 : i32
    return %arg0, %c0_i32, %c0_i32_0 : i32, i32, i32
  }
}

module attributes {stable_mosaic.version = 11 : i64} {
  func.func @kernel(%arg0: i32, %arg1: memref<1x1x128xf32, #tpu.memory_space<vmem>>, %arg2: memref<1x1x128xf32, #tpu.memory_space<vmem>>, %arg3: memref<4x1xf32, #tpu.memory_space<vmem>>, %arg4: memref<4x1xf32, #tpu.memory_space<vmem>>, %arg5: memref<3x4x3xf32, #tpu.memory_space<vmem>>, %arg6: memref<3x4x1xf32, #tpu.memory_space<vmem>>, %arg7: memref<3x4x4xf32, #tpu.memory_space<vmem>>, %arg8: memref<3x4x1xf32, #tpu.memory_space<vmem>>, %arg9: memref<3x4x1xf32, #tpu.memory_space<vmem>>, %arg10: memref<3x4x1xf32, #tpu.memory_space<vmem>>, %arg11: memref<3x4x1xf32, #tpu.memory_space<vmem>>, %arg12: memref<3x4x1xf32, #tpu.memory_space<vmem>>, %arg13: memref<4x4xf32, #tpu.memory_space<vmem>>, %arg14: memref<4x1xf32, #tpu.memory_space<vmem>>, %arg15: memref<1x4x128xf32, #tpu.memory_space<vmem>>) attributes {dimension_semantics = [#tpu.dimension_semantics<parallel>], iteration_bounds = array<i64: 2>, scalar_prefetch = 0 : i64, scratch_operands = 0 : i64, tpu.core_type = #tpu.core_type<tc>, window_params = [{transform_indices = @transform_0, window_bounds = array<i64: 1, 1, 128>}, {transform_indices = @transform_1, window_bounds = array<i64: 1, 1, 128>}, {pipeline_mode = #tpu.pipeline_mode<synchronous>, transform_indices = @transform_2, window_bounds = array<i64: 4, 1>}, {pipeline_mode = #tpu.pipeline_mode<synchronous>, transform_indices = @transform_3, window_bounds = array<i64: 4, 1>}, {pipeline_mode = #tpu.pipeline_mode<synchronous>, transform_indices = @transform_4, window_bounds = array<i64: 3, 4, 3>}, {pipeline_mode = #tpu.pipeline_mode<synchronous>, transform_indices = @transform_5, window_bounds = array<i64: 3, 4, 1>}, {pipeline_mode = #tpu.pipeline_mode<synchronous>, transform_indices = @transform_6, window_bounds = array<i64: 3, 4, 4>}, {pipeline_mode = #tpu.pipeline_mode<synchronous>, transform_indices = @transform_7, window_bounds = array<i64: 3, 4, 1>}, {pipeline_mode = #tpu.pipeline_mode<synchronous>, transform_indices = @transform_8, window_bounds = array<i64: 3, 4, 1>}, {pipeline_mode = #tpu.pipeline_mode<synchronous>, transform_indices = @transform_9, window_bounds = array<i64: 3, 4, 1>}, {pipeline_mode = #tpu.pipeline_mode<synchronous>, transform_indices = @transform_10, window_bounds = array<i64: 3, 4, 1>}, {pipeline_mode = #tpu.pipeline_mode<synchronous>, transform_indices = @transform_11, window_bounds = array<i64: 3, 4, 1>}, {pipeline_mode = #tpu.pipeline_mode<synchronous>, transform_indices = @transform_12, window_bounds = array<i64: 4, 4>}, {pipeline_mode = #tpu.pipeline_mode<synchronous>, transform_indices = @transform_13, window_bounds = array<i64: 4, 1>}, {transform_indices = @transform_14, window_bounds = array<i64: 1, 4, 128>}]} {
    %c0 = arith.constant 0 : index
    %c0_0 = arith.constant 0 : index
    %c0_1 = arith.constant 0 : index
    %0 = vector.load %arg2[%c0, %c0_0, %c0_1] : memref<1x1x128xf32, #tpu.memory_space<vmem>>, vector<1x1x128xf32>
    %1 = vector.shape_cast %0 : vector<1x1x128xf32> to vector<1x128xf32>
    %c0_2 = arith.constant 0 : index
    %c0_3 = arith.constant 0 : index
    %c0_4 = arith.constant 0 : index
    %2 = vector.load %arg1[%c0_2, %c0_3, %c0_4] : memref<1x1x128xf32, #tpu.memory_space<vmem>>, vector<1x1x128xf32>
    %3 = vector.shape_cast %2 : vector<1x1x128xf32> to vector<1x128xf32>
    %c0_5 = arith.constant 0 : index
    %c0_6 = arith.constant 0 : index
    %4 = vector.load %arg3[%c0_5, %c0_6] : memref<4x1xf32, #tpu.memory_space<vmem>>, vector<4x1xf32>
    %5 = vector.broadcast %4 : vector<4x1xf32> to vector<4x128xf32>
    %6 = vector.broadcast %3 : vector<1x128xf32> to vector<4x128xf32>
    %7 = arith.mulf %5, %6 : vector<4x128xf32>
    %c0_7 = arith.constant 0 : index
    %c0_8 = arith.constant 0 : index
    %8 = vector.load %arg4[%c0_7, %c0_8] : memref<4x1xf32, #tpu.memory_space<vmem>>, vector<4x1xf32>
    %9 = vector.broadcast %8 : vector<4x1xf32> to vector<4x128xf32>
    %10 = arith.addf %7, %9 : vector<4x128xf32>
    %11 = tpu.iota {dimensions = array<i32: 1>} : vector<1x128xi32>
    %12 = vector.broadcast %1 : vector<1x128xf32> to vector<4x128xf32>
    %13 = arith.mulf %10, %12 : vector<4x128xf32>
    %c0_9 = arith.constant 0 : index
    %c0_10 = arith.constant 0 : index
    %c0_11 = arith.constant 0 : index
    %14 = vector.load %arg5[%c0_9, %c0_10, %c0_11] : memref<3x4x3xf32, #tpu.memory_space<vmem>>, vector<1x4x3xf32>
    %15 = vector.shape_cast %14 : vector<1x4x3xf32> to vector<4x3xf32>
    %16 = vector.extract_strided_slice %15 {offsets = [0, 1], sizes = [4, 1], strides = [1, 1]} : vector<4x3xf32> to vector<4x1xf32>
    %17 = vector.broadcast %16 : vector<4x1xf32> to vector<4x128xf32>
    %18 = arith.mulf %17, %13 : vector<4x128xf32>
    %c1_i32 = arith.constant 1 : i32
    %19 = tpu.dynamic_rotate %13 by %c1_i32 dim 1 : vector<4x128xf32>, i32 -> vector<4x128xf32>
    %c-1_i32 = arith.constant -1 : i32
    %20 = vector.broadcast %c-1_i32 : i32 to vector<1x128xi32>
    %21 = arith.addi %11, %20 : vector<1x128xi32>
    %c0_i32 = arith.constant 0 : i32
    %22 = vector.broadcast %c0_i32 : i32 to vector<1x128xi32>
    %23 = arith.cmpi sge, %21, %22 : vector<1x128xi32>
    %c-1_i32_12 = arith.constant -1 : i32
    %24 = vector.broadcast %c-1_i32_12 : i32 to vector<1x128xi32>
    %25 = arith.addi %11, %24 : vector<1x128xi32>
    %c128_i32 = arith.constant 128 : i32
    %26 = vector.broadcast %c128_i32 : i32 to vector<1x128xi32>
    %27 = arith.cmpi slt, %25, %26 : vector<1x128xi32>
    %28 = arith.andi %23, %27 : vector<1x128xi1>
    %cst = arith.constant 0.000000e+00 : f32
    %29 = vector.shape_cast %28 : vector<1x128xi1> to vector<1x128xi1>
    %30 = vector.broadcast %29 : vector<1x128xi1> to vector<4x128xi1>
    %31 = vector.broadcast %cst : f32 to vector<4x128xf32>
    %32 = arith.select %30, %19, %31 : vector<4x128xi1>, vector<4x128xf32>
    %33 = vector.extract_strided_slice %15 {offsets = [0, 0], sizes = [4, 1], strides = [1, 1]} : vector<4x3xf32> to vector<4x1xf32>
    %34 = vector.broadcast %33 : vector<4x1xf32> to vector<4x128xf32>
    %35 = arith.mulf %34, %32 : vector<4x128xf32>
    %36 = arith.addf %18, %35 : vector<4x128xf32>
    %c127_i32 = arith.constant 127 : i32
    %37 = tpu.dynamic_rotate %13 by %c127_i32 dim 1 : vector<4x128xf32>, i32 -> vector<4x128xf32>
    %c1_i32_13 = arith.constant 1 : i32
    %38 = vector.broadcast %c1_i32_13 : i32 to vector<1x128xi32>
    %39 = arith.addi %11, %38 : vector<1x128xi32>
    %c0_i32_14 = arith.constant 0 : i32
    %40 = vector.broadcast %c0_i32_14 : i32 to vector<1x128xi32>
    %41 = arith.cmpi sge, %39, %40 : vector<1x128xi32>
    %c1_i32_15 = arith.constant 1 : i32
    %42 = vector.broadcast %c1_i32_15 : i32 to vector<1x128xi32>
    %43 = arith.addi %11, %42 : vector<1x128xi32>
    %c128_i32_16 = arith.constant 128 : i32
    %44 = vector.broadcast %c128_i32_16 : i32 to vector<1x128xi32>
    %45 = arith.cmpi slt, %43, %44 : vector<1x128xi32>
    %46 = arith.andi %41, %45 : vector<1x128xi1>
    %cst_17 = arith.constant 0.000000e+00 : f32
    %47 = vector.shape_cast %46 : vector<1x128xi1> to vector<1x128xi1>
    %48 = vector.broadcast %47 : vector<1x128xi1> to vector<4x128xi1>
    %49 = vector.broadcast %cst_17 : f32 to vector<4x128xf32>
    %50 = arith.select %48, %37, %49 : vector<4x128xi1>, vector<4x128xf32>
    %51 = vector.extract_strided_slice %15 {offsets = [0, 2], sizes = [4, 1], strides = [1, 1]} : vector<4x3xf32> to vector<4x1xf32>
    %52 = vector.broadcast %51 : vector<4x1xf32> to vector<4x128xf32>
    %53 = arith.mulf %52, %50 : vector<4x128xf32>
    %54 = arith.addf %36, %53 : vector<4x128xf32>
    %c0_18 = arith.constant 0 : index
    %c0_19 = arith.constant 0 : index
    %c0_20 = arith.constant 0 : index
    %55 = vector.load %arg6[%c0_18, %c0_19, %c0_20] : memref<3x4x1xf32, #tpu.memory_space<vmem>>, vector<1x4x1xf32>
    %56 = vector.shape_cast %55 : vector<1x4x1xf32> to vector<4x1xf32>
    %57 = vector.broadcast %56 : vector<4x1xf32> to vector<4x128xf32>
    %58 = arith.addf %54, %57 : vector<4x128xf32>
    %c0_21 = arith.constant 0 : index
    %c0_22 = arith.constant 0 : index
    %c0_23 = arith.constant 0 : index
    %59 = vector.load %arg9[%c0_21, %c0_22, %c0_23] : memref<3x4x1xf32, #tpu.memory_space<vmem>>, vector<1x4x1xf32>
    %60 = vector.shape_cast %59 : vector<1x4x1xf32> to vector<4x1xf32>
    %c0_24 = arith.constant 0 : index
    %c0_25 = arith.constant 0 : index
    %c0_26 = arith.constant 0 : index
    %61 = vector.load %arg10[%c0_24, %c0_25, %c0_26] : memref<3x4x1xf32, #tpu.memory_space<vmem>>, vector<1x4x1xf32>
    %62 = vector.shape_cast %61 : vector<1x4x1xf32> to vector<4x1xf32>
    %cst_27 = arith.constant dense<0.000000e+00> : vector<128xf32>
    %63 = vector.multi_reduction <add>, %58, %cst_27 [0] : vector<4x128xf32> to vector<128xf32>
    %64 = vector.shape_cast %63 : vector<128xf32> to vector<1x128xf32>
    %cst_28 = arith.constant 4.000000e+00 : f32
    %65 = vector.broadcast %cst_28 : f32 to vector<1x128xf32>
    %66 = arith.divf %64, %65 : vector<1x128xf32>
    %67 = vector.broadcast %66 : vector<1x128xf32> to vector<4x128xf32>
    %68 = arith.subf %58, %67 : vector<4x128xf32>
    %69 = arith.mulf %68, %68 : vector<4x128xf32>
    %cst_29 = arith.constant dense<0.000000e+00> : vector<128xf32>
    %70 = vector.multi_reduction <add>, %69, %cst_29 [0] : vector<4x128xf32> to vector<128xf32>
    %71 = vector.shape_cast %70 : vector<128xf32> to vector<1x128xf32>
    %cst_30 = arith.constant 4.000000e+00 : f32
    %72 = vector.broadcast %cst_30 : f32 to vector<1x128xf32>
    %73 = arith.divf %71, %72 : vector<1x128xf32>
    %74 = vector.broadcast %66 : vector<1x128xf32> to vector<4x128xf32>
    %75 = arith.subf %58, %74 : vector<4x128xf32>
    %cst_31 = arith.constant 9.99999974E-6 : f32
    %76 = vector.broadcast %cst_31 : f32 to vector<1x128xf32>
    %77 = arith.addf %73, %76 : vector<1x128xf32>
    %78 = math.rsqrt %77 : vector<1x128xf32>
    %79 = vector.broadcast %78 : vector<1x128xf32> to vector<4x128xf32>
    %80 = arith.mulf %75, %79 : vector<4x128xf32>
    %81 = vector.broadcast %60 : vector<4x1xf32> to vector<4x128xf32>
    %82 = arith.mulf %80, %81 : vector<4x128xf32>
    %83 = vector.broadcast %62 : vector<4x1xf32> to vector<4x128xf32>
    %84 = arith.addf %82, %83 : vector<4x128xf32>
    %cst_32 = arith.constant 5.000000e-01 : f32
    %85 = vector.broadcast %cst_32 : f32 to vector<4x128xf32>
    %86 = arith.mulf %85, %84 : vector<4x128xf32>
    %cst_33 = arith.constant 0.707106769 : f32
    %87 = vector.broadcast %cst_33 : f32 to vector<4x128xf32>
    %88 = arith.mulf %84, %87 : vector<4x128xf32>
    %cst_34 = arith.constant 0.000000e+00 : f32
    %89 = vector.broadcast %cst_34 : f32 to vector<4x128xf32>
    %90 = arith.cmpf oge, %88, %89 : vector<4x128xf32>
    %cst_35 = arith.constant 1.000000e+00 : f32
    %cst_36 = arith.constant -1.000000e+00 : f32
    %91 = vector.broadcast %cst_35 : f32 to vector<4x128xf32>
    %92 = vector.broadcast %cst_36 : f32 to vector<4x128xf32>
    %93 = arith.select %90, %91, %92 : vector<4x128xi1>, vector<4x128xf32>
    %94 = math.absf %88 : vector<4x128xf32>
    %cst_37 = arith.constant 0.327591091 : f32
    %95 = vector.broadcast %cst_37 : f32 to vector<4x128xf32>
    %96 = arith.mulf %95, %94 : vector<4x128xf32>
    %cst_38 = arith.constant 1.000000e+00 : f32
    %97 = vector.broadcast %cst_38 : f32 to vector<4x128xf32>
    %98 = arith.addf %97, %96 : vector<4x128xf32>
    %cst_39 = arith.constant 1.000000e+00 : f32
    %99 = vector.broadcast %cst_39 : f32 to vector<4x128xf32>
    %100 = arith.divf %99, %98 : vector<4x128xf32>
    %cst_40 = arith.constant 1.06140542 : f32
    %101 = vector.broadcast %cst_40 : f32 to vector<4x128xf32>
    %102 = arith.mulf %101, %100 : vector<4x128xf32>
    %cst_41 = arith.constant -1.45315206 : f32
    %103 = vector.broadcast %cst_41 : f32 to vector<4x128xf32>
    %104 = arith.addf %102, %103 : vector<4x128xf32>
    %105 = arith.mulf %104, %100 : vector<4x128xf32>
    %cst_42 = arith.constant 1.42141378 : f32
    %106 = vector.broadcast %cst_42 : f32 to vector<4x128xf32>
    %107 = arith.addf %105, %106 : vector<4x128xf32>
    %108 = arith.mulf %107, %100 : vector<4x128xf32>
    %cst_43 = arith.constant -0.284496725 : f32
    %109 = vector.broadcast %cst_43 : f32 to vector<4x128xf32>
    %110 = arith.addf %108, %109 : vector<4x128xf32>
    %111 = arith.mulf %110, %100 : vector<4x128xf32>
    %cst_44 = arith.constant 0.254829586 : f32
    %112 = vector.broadcast %cst_44 : f32 to vector<4x128xf32>
    %113 = arith.addf %111, %112 : vector<4x128xf32>
    %114 = arith.mulf %113, %100 : vector<4x128xf32>
    %cst_45 = arith.constant 0.000000e+00 : f32
    %115 = vector.broadcast %cst_45 : f32 to vector<4x128xf32>
    %116 = arith.subf %115, %94 : vector<4x128xf32>
    %117 = arith.mulf %116, %94 : vector<4x128xf32>
    %118 = math.exp %117 : vector<4x128xf32>
    %119 = arith.mulf %114, %118 : vector<4x128xf32>
    %cst_46 = arith.constant 1.000000e+00 : f32
    %120 = vector.broadcast %cst_46 : f32 to vector<4x128xf32>
    %121 = arith.subf %120, %119 : vector<4x128xf32>
    %122 = arith.mulf %93, %121 : vector<4x128xf32>
    %cst_47 = arith.constant 1.000000e+00 : f32
    %123 = vector.broadcast %cst_47 : f32 to vector<4x128xf32>
    %124 = arith.addf %123, %122 : vector<4x128xf32>
    %125 = arith.mulf %86, %124 : vector<4x128xf32>
    %c0_48 = arith.constant 0 : index
    %c0_49 = arith.constant 0 : index
    %c0_50 = arith.constant 0 : index
    %126 = vector.load %arg7[%c0_48, %c0_49, %c0_50] : memref<3x4x4xf32, #tpu.memory_space<vmem>>, vector<1x4x4xf32>
    %127 = vector.shape_cast %126 : vector<1x4x4xf32> to vector<4x4xf32>
    %cst_51 = arith.constant dense<0.000000e+00> : vector<4x128xf32>
    %128 = tpu.matmul %127, %125, %cst_51 {dimension_numbers = #tpu.dot_dimension_numbers<[1], [0], [0], [1], [0, 0, 1, 1], [], []>} : vector<4x4xf32>, vector<4x128xf32>, vector<4x128xf32> -> vector<4x128xf32>
    %c0_52 = arith.constant 0 : index
    %c0_53 = arith.constant 0 : index
    %c0_54 = arith.constant 0 : index
    %129 = vector.load %arg8[%c0_52, %c0_53, %c0_54] : memref<3x4x1xf32, #tpu.memory_space<vmem>>, vector<1x4x1xf32>
    %130 = vector.shape_cast %129 : vector<1x4x1xf32> to vector<4x1xf32>
    %131 = vector.broadcast %130 : vector<4x1xf32> to vector<4x128xf32>
    %132 = arith.addf %128, %131 : vector<4x128xf32>
    %c0_55 = arith.constant 0 : index
    %c0_56 = arith.constant 0 : index
    %c0_57 = arith.constant 0 : index
    %133 = vector.load %arg11[%c0_55, %c0_56, %c0_57] : memref<3x4x1xf32, #tpu.memory_space<vmem>>, vector<1x4x1xf32>
    %134 = vector.shape_cast %133 : vector<1x4x1xf32> to vector<4x1xf32>
    %c0_58 = arith.constant 0 : index
    %c0_59 = arith.constant 0 : index
    %c0_60 = arith.constant 0 : index
    %135 = vector.load %arg12[%c0_58, %c0_59, %c0_60] : memref<3x4x1xf32, #tpu.memory_space<vmem>>, vector<1x4x1xf32>
    %136 = vector.shape_cast %135 : vector<1x4x1xf32> to vector<4x1xf32>
    %cst_61 = arith.constant dense<0.000000e+00> : vector<128xf32>
    %137 = vector.multi_reduction <add>, %132, %cst_61 [0] : vector<4x128xf32> to vector<128xf32>
    %138 = vector.shape_cast %137 : vector<128xf32> to vector<1x128xf32>
    %cst_62 = arith.constant 4.000000e+00 : f32
    %139 = vector.broadcast %cst_62 : f32 to vector<1x128xf32>
    %140 = arith.divf %138, %139 : vector<1x128xf32>
    %141 = vector.broadcast %140 : vector<1x128xf32> to vector<4x128xf32>
    %142 = arith.subf %132, %141 : vector<4x128xf32>
    %143 = arith.mulf %142, %142 : vector<4x128xf32>
    %cst_63 = arith.constant dense<0.000000e+00> : vector<128xf32>
    %144 = vector.multi_reduction <add>, %143, %cst_63 [0] : vector<4x128xf32> to vector<128xf32>
    %145 = vector.shape_cast %144 : vector<128xf32> to vector<1x128xf32>
    %cst_64 = arith.constant 4.000000e+00 : f32
    %146 = vector.broadcast %cst_64 : f32 to vector<1x128xf32>
    %147 = arith.divf %145, %146 : vector<1x128xf32>
    %148 = vector.broadcast %140 : vector<1x128xf32> to vector<4x128xf32>
    %149 = arith.subf %132, %148 : vector<4x128xf32>
    %cst_65 = arith.constant 9.99999974E-6 : f32
    %150 = vector.broadcast %cst_65 : f32 to vector<1x128xf32>
    %151 = arith.addf %147, %150 : vector<1x128xf32>
    %152 = math.rsqrt %151 : vector<1x128xf32>
    %153 = vector.broadcast %152 : vector<1x128xf32> to vector<4x128xf32>
    %154 = arith.mulf %149, %153 : vector<4x128xf32>
    %155 = vector.broadcast %134 : vector<4x1xf32> to vector<4x128xf32>
    %156 = arith.mulf %154, %155 : vector<4x128xf32>
    %157 = vector.broadcast %136 : vector<4x1xf32> to vector<4x128xf32>
    %158 = arith.addf %156, %157 : vector<4x128xf32>
    %cst_66 = arith.constant 5.000000e-01 : f32
    %159 = vector.broadcast %cst_66 : f32 to vector<4x128xf32>
    %160 = arith.mulf %159, %158 : vector<4x128xf32>
    %cst_67 = arith.constant 0.707106769 : f32
    %161 = vector.broadcast %cst_67 : f32 to vector<4x128xf32>
    %162 = arith.mulf %158, %161 : vector<4x128xf32>
    %cst_68 = arith.constant 0.000000e+00 : f32
    %163 = vector.broadcast %cst_68 : f32 to vector<4x128xf32>
    %164 = arith.cmpf oge, %162, %163 : vector<4x128xf32>
    %cst_69 = arith.constant 1.000000e+00 : f32
    %cst_70 = arith.constant -1.000000e+00 : f32
    %165 = vector.broadcast %cst_69 : f32 to vector<4x128xf32>
    %166 = vector.broadcast %cst_70 : f32 to vector<4x128xf32>
    %167 = arith.select %164, %165, %166 : vector<4x128xi1>, vector<4x128xf32>
    %168 = math.absf %162 : vector<4x128xf32>
    %cst_71 = arith.constant 0.327591091 : f32
    %169 = vector.broadcast %cst_71 : f32 to vector<4x128xf32>
    %170 = arith.mulf %169, %168 : vector<4x128xf32>
    %cst_72 = arith.constant 1.000000e+00 : f32
    %171 = vector.broadcast %cst_72 : f32 to vector<4x128xf32>
    %172 = arith.addf %171, %170 : vector<4x128xf32>
    %cst_73 = arith.constant 1.000000e+00 : f32
    %173 = vector.broadcast %cst_73 : f32 to vector<4x128xf32>
    %174 = arith.divf %173, %172 : vector<4x128xf32>
    %cst_74 = arith.constant 1.06140542 : f32
    %175 = vector.broadcast %cst_74 : f32 to vector<4x128xf32>
    %176 = arith.mulf %175, %174 : vector<4x128xf32>
    %cst_75 = arith.constant -1.45315206 : f32
    %177 = vector.broadcast %cst_75 : f32 to vector<4x128xf32>
    %178 = arith.addf %176, %177 : vector<4x128xf32>
    %179 = arith.mulf %178, %174 : vector<4x128xf32>
    %cst_76 = arith.constant 1.42141378 : f32
    %180 = vector.broadcast %cst_76 : f32 to vector<4x128xf32>
    %181 = arith.addf %179, %180 : vector<4x128xf32>
    %182 = arith.mulf %181, %174 : vector<4x128xf32>
    %cst_77 = arith.constant -0.284496725 : f32
    %183 = vector.broadcast %cst_77 : f32 to vector<4x128xf32>
    %184 = arith.addf %182, %183 : vector<4x128xf32>
    %185 = arith.mulf %184, %174 : vector<4x128xf32>
    %cst_78 = arith.constant 0.254829586 : f32
    %186 = vector.broadcast %cst_78 : f32 to vector<4x128xf32>
    %187 = arith.addf %185, %186 : vector<4x128xf32>
    %188 = arith.mulf %187, %174 : vector<4x128xf32>
    %cst_79 = arith.constant 0.000000e+00 : f32
    %189 = vector.broadcast %cst_79 : f32 to vector<4x128xf32>
    %190 = arith.subf %189, %168 : vector<4x128xf32>
    %191 = arith.mulf %190, %168 : vector<4x128xf32>
    %192 = math.exp %191 : vector<4x128xf32>
    %193 = arith.mulf %188, %192 : vector<4x128xf32>
    %cst_80 = arith.constant 1.000000e+00 : f32
    %194 = vector.broadcast %cst_80 : f32 to vector<4x128xf32>
    %195 = arith.subf %194, %193 : vector<4x128xf32>
    %196 = arith.mulf %167, %195 : vector<4x128xf32>
    %cst_81 = arith.constant 1.000000e+00 : f32
    %197 = vector.broadcast %cst_81 : f32 to vector<4x128xf32>
    %198 = arith.addf %197, %196 : vector<4x128xf32>
    %199 = arith.mulf %160, %198 : vector<4x128xf32>
    %200 = arith.addf %10, %199 : vector<4x128xf32>
    %201 = vector.broadcast %1 : vector<1x128xf32> to vector<4x128xf32>
    %202 = arith.mulf %200, %201 : vector<4x128xf32>
    %c1 = arith.constant 1 : index
    %c0_82 = arith.constant 0 : index
    %c0_83 = arith.constant 0 : index
    %203 = vector.load %arg5[%c1, %c0_82, %c0_83] : memref<3x4x3xf32, #tpu.memory_space<vmem>>, vector<1x4x3xf32>
    %204 = vector.shape_cast %203 : vector<1x4x3xf32> to vector<4x3xf32>
    %205 = vector.extract_strided_slice %204 {offsets = [0, 1], sizes = [4, 1], strides = [1, 1]} : vector<4x3xf32> to vector<4x1xf32>
    %206 = vector.broadcast %205 : vector<4x1xf32> to vector<4x128xf32>
    %207 = arith.mulf %206, %202 : vector<4x128xf32>
    %c3_i32 = arith.constant 3 : i32
    %208 = tpu.dynamic_rotate %202 by %c3_i32 dim 1 : vector<4x128xf32>, i32 -> vector<4x128xf32>
    %c-3_i32 = arith.constant -3 : i32
    %209 = vector.broadcast %c-3_i32 : i32 to vector<1x128xi32>
    %210 = arith.addi %11, %209 : vector<1x128xi32>
    %c0_i32_84 = arith.constant 0 : i32
    %211 = vector.broadcast %c0_i32_84 : i32 to vector<1x128xi32>
    %212 = arith.cmpi sge, %210, %211 : vector<1x128xi32>
    %c-3_i32_85 = arith.constant -3 : i32
    %213 = vector.broadcast %c-3_i32_85 : i32 to vector<1x128xi32>
    %214 = arith.addi %11, %213 : vector<1x128xi32>
    %c128_i32_86 = arith.constant 128 : i32
    %215 = vector.broadcast %c128_i32_86 : i32 to vector<1x128xi32>
    %216 = arith.cmpi slt, %214, %215 : vector<1x128xi32>
    %217 = arith.andi %212, %216 : vector<1x128xi1>
    %cst_87 = arith.constant 0.000000e+00 : f32
    %218 = vector.shape_cast %217 : vector<1x128xi1> to vector<1x128xi1>
    %219 = vector.broadcast %218 : vector<1x128xi1> to vector<4x128xi1>
    %220 = vector.broadcast %cst_87 : f32 to vector<4x128xf32>
    %221 = arith.select %219, %208, %220 : vector<4x128xi1>, vector<4x128xf32>
    %222 = vector.extract_strided_slice %204 {offsets = [0, 0], sizes = [4, 1], strides = [1, 1]} : vector<4x3xf32> to vector<4x1xf32>
    %223 = vector.broadcast %222 : vector<4x1xf32> to vector<4x128xf32>
    %224 = arith.mulf %223, %221 : vector<4x128xf32>
    %225 = arith.addf %207, %224 : vector<4x128xf32>
    %c125_i32 = arith.constant 125 : i32
    %226 = tpu.dynamic_rotate %202 by %c125_i32 dim 1 : vector<4x128xf32>, i32 -> vector<4x128xf32>
    %c3_i32_88 = arith.constant 3 : i32
    %227 = vector.broadcast %c3_i32_88 : i32 to vector<1x128xi32>
    %228 = arith.addi %11, %227 : vector<1x128xi32>
    %c0_i32_89 = arith.constant 0 : i32
    %229 = vector.broadcast %c0_i32_89 : i32 to vector<1x128xi32>
    %230 = arith.cmpi sge, %228, %229 : vector<1x128xi32>
    %c3_i32_90 = arith.constant 3 : i32
    %231 = vector.broadcast %c3_i32_90 : i32 to vector<1x128xi32>
    %232 = arith.addi %11, %231 : vector<1x128xi32>
    %c128_i32_91 = arith.constant 128 : i32
    %233 = vector.broadcast %c128_i32_91 : i32 to vector<1x128xi32>
    %234 = arith.cmpi slt, %232, %233 : vector<1x128xi32>
    %235 = arith.andi %230, %234 : vector<1x128xi1>
    %cst_92 = arith.constant 0.000000e+00 : f32
    %236 = vector.shape_cast %235 : vector<1x128xi1> to vector<1x128xi1>
    %237 = vector.broadcast %236 : vector<1x128xi1> to vector<4x128xi1>
    %238 = vector.broadcast %cst_92 : f32 to vector<4x128xf32>
    %239 = arith.select %237, %226, %238 : vector<4x128xi1>, vector<4x128xf32>
    %240 = vector.extract_strided_slice %204 {offsets = [0, 2], sizes = [4, 1], strides = [1, 1]} : vector<4x3xf32> to vector<4x1xf32>
    %241 = vector.broadcast %240 : vector<4x1xf32> to vector<4x128xf32>
    %242 = arith.mulf %241, %239 : vector<4x128xf32>
    %243 = arith.addf %225, %242 : vector<4x128xf32>
    %c1_93 = arith.constant 1 : index
    %c0_94 = arith.constant 0 : index
    %c0_95 = arith.constant 0 : index
    %244 = vector.load %arg6[%c1_93, %c0_94, %c0_95] : memref<3x4x1xf32, #tpu.memory_space<vmem>>, vector<1x4x1xf32>
    %245 = vector.shape_cast %244 : vector<1x4x1xf32> to vector<4x1xf32>
    %246 = vector.broadcast %245 : vector<4x1xf32> to vector<4x128xf32>
    %247 = arith.addf %243, %246 : vector<4x128xf32>
    %c1_96 = arith.constant 1 : index
    %c0_97 = arith.constant 0 : index
    %c0_98 = arith.constant 0 : index
    %248 = vector.load %arg9[%c1_96, %c0_97, %c0_98] : memref<3x4x1xf32, #tpu.memory_space<vmem>>, vector<1x4x1xf32>
    %249 = vector.shape_cast %248 : vector<1x4x1xf32> to vector<4x1xf32>
    %c1_99 = arith.constant 1 : index
    %c0_100 = arith.constant 0 : index
    %c0_101 = arith.constant 0 : index
    %250 = vector.load %arg10[%c1_99, %c0_100, %c0_101] : memref<3x4x1xf32, #tpu.memory_space<vmem>>, vector<1x4x1xf32>
    %251 = vector.shape_cast %250 : vector<1x4x1xf32> to vector<4x1xf32>
    %cst_102 = arith.constant dense<0.000000e+00> : vector<128xf32>
    %252 = vector.multi_reduction <add>, %247, %cst_102 [0] : vector<4x128xf32> to vector<128xf32>
    %253 = vector.shape_cast %252 : vector<128xf32> to vector<1x128xf32>
    %cst_103 = arith.constant 4.000000e+00 : f32
    %254 = vector.broadcast %cst_103 : f32 to vector<1x128xf32>
    %255 = arith.divf %253, %254 : vector<1x128xf32>
    %256 = vector.broadcast %255 : vector<1x128xf32> to vector<4x128xf32>
    %257 = arith.subf %247, %256 : vector<4x128xf32>
    %258 = arith.mulf %257, %257 : vector<4x128xf32>
    %cst_104 = arith.constant dense<0.000000e+00> : vector<128xf32>
    %259 = vector.multi_reduction <add>, %258, %cst_104 [0] : vector<4x128xf32> to vector<128xf32>
    %260 = vector.shape_cast %259 : vector<128xf32> to vector<1x128xf32>
    %cst_105 = arith.constant 4.000000e+00 : f32
    %261 = vector.broadcast %cst_105 : f32 to vector<1x128xf32>
    %262 = arith.divf %260, %261 : vector<1x128xf32>
    %263 = vector.broadcast %255 : vector<1x128xf32> to vector<4x128xf32>
    %264 = arith.subf %247, %263 : vector<4x128xf32>
    %cst_106 = arith.constant 9.99999974E-6 : f32
    %265 = vector.broadcast %cst_106 : f32 to vector<1x128xf32>
    %266 = arith.addf %262, %265 : vector<1x128xf32>
    %267 = math.rsqrt %266 : vector<1x128xf32>
    %268 = vector.broadcast %267 : vector<1x128xf32> to vector<4x128xf32>
    %269 = arith.mulf %264, %268 : vector<4x128xf32>
    %270 = vector.broadcast %249 : vector<4x1xf32> to vector<4x128xf32>
    %271 = arith.mulf %269, %270 : vector<4x128xf32>
    %272 = vector.broadcast %251 : vector<4x1xf32> to vector<4x128xf32>
    %273 = arith.addf %271, %272 : vector<4x128xf32>
    %cst_107 = arith.constant 5.000000e-01 : f32
    %274 = vector.broadcast %cst_107 : f32 to vector<4x128xf32>
    %275 = arith.mulf %274, %273 : vector<4x128xf32>
    %cst_108 = arith.constant 0.707106769 : f32
    %276 = vector.broadcast %cst_108 : f32 to vector<4x128xf32>
    %277 = arith.mulf %273, %276 : vector<4x128xf32>
    %cst_109 = arith.constant 0.000000e+00 : f32
    %278 = vector.broadcast %cst_109 : f32 to vector<4x128xf32>
    %279 = arith.cmpf oge, %277, %278 : vector<4x128xf32>
    %cst_110 = arith.constant 1.000000e+00 : f32
    %cst_111 = arith.constant -1.000000e+00 : f32
    %280 = vector.broadcast %cst_110 : f32 to vector<4x128xf32>
    %281 = vector.broadcast %cst_111 : f32 to vector<4x128xf32>
    %282 = arith.select %279, %280, %281 : vector<4x128xi1>, vector<4x128xf32>
    %283 = math.absf %277 : vector<4x128xf32>
    %cst_112 = arith.constant 0.327591091 : f32
    %284 = vector.broadcast %cst_112 : f32 to vector<4x128xf32>
    %285 = arith.mulf %284, %283 : vector<4x128xf32>
    %cst_113 = arith.constant 1.000000e+00 : f32
    %286 = vector.broadcast %cst_113 : f32 to vector<4x128xf32>
    %287 = arith.addf %286, %285 : vector<4x128xf32>
    %cst_114 = arith.constant 1.000000e+00 : f32
    %288 = vector.broadcast %cst_114 : f32 to vector<4x128xf32>
    %289 = arith.divf %288, %287 : vector<4x128xf32>
    %cst_115 = arith.constant 1.06140542 : f32
    %290 = vector.broadcast %cst_115 : f32 to vector<4x128xf32>
    %291 = arith.mulf %290, %289 : vector<4x128xf32>
    %cst_116 = arith.constant -1.45315206 : f32
    %292 = vector.broadcast %cst_116 : f32 to vector<4x128xf32>
    %293 = arith.addf %291, %292 : vector<4x128xf32>
    %294 = arith.mulf %293, %289 : vector<4x128xf32>
    %cst_117 = arith.constant 1.42141378 : f32
    %295 = vector.broadcast %cst_117 : f32 to vector<4x128xf32>
    %296 = arith.addf %294, %295 : vector<4x128xf32>
    %297 = arith.mulf %296, %289 : vector<4x128xf32>
    %cst_118 = arith.constant -0.284496725 : f32
    %298 = vector.broadcast %cst_118 : f32 to vector<4x128xf32>
    %299 = arith.addf %297, %298 : vector<4x128xf32>
    %300 = arith.mulf %299, %289 : vector<4x128xf32>
    %cst_119 = arith.constant 0.254829586 : f32
    %301 = vector.broadcast %cst_119 : f32 to vector<4x128xf32>
    %302 = arith.addf %300, %301 : vector<4x128xf32>
    %303 = arith.mulf %302, %289 : vector<4x128xf32>
    %cst_120 = arith.constant 0.000000e+00 : f32
    %304 = vector.broadcast %cst_120 : f32 to vector<4x128xf32>
    %305 = arith.subf %304, %283 : vector<4x128xf32>
    %306 = arith.mulf %305, %283 : vector<4x128xf32>
    %307 = math.exp %306 : vector<4x128xf32>
    %308 = arith.mulf %303, %307 : vector<4x128xf32>
    %cst_121 = arith.constant 1.000000e+00 : f32
    %309 = vector.broadcast %cst_121 : f32 to vector<4x128xf32>
    %310 = arith.subf %309, %308 : vector<4x128xf32>
    %311 = arith.mulf %282, %310 : vector<4x128xf32>
    %cst_122 = arith.constant 1.000000e+00 : f32
    %312 = vector.broadcast %cst_122 : f32 to vector<4x128xf32>
    %313 = arith.addf %312, %311 : vector<4x128xf32>
    %314 = arith.mulf %275, %313 : vector<4x128xf32>
    %c1_123 = arith.constant 1 : index
    %c0_124 = arith.constant 0 : index
    %c0_125 = arith.constant 0 : index
    %315 = vector.load %arg7[%c1_123, %c0_124, %c0_125] : memref<3x4x4xf32, #tpu.memory_space<vmem>>, vector<1x4x4xf32>
    %316 = vector.shape_cast %315 : vector<1x4x4xf32> to vector<4x4xf32>
    %cst_126 = arith.constant dense<0.000000e+00> : vector<4x128xf32>
    %317 = tpu.matmul %316, %314, %cst_126 {dimension_numbers = #tpu.dot_dimension_numbers<[1], [0], [0], [1], [0, 0, 1, 1], [], []>} : vector<4x4xf32>, vector<4x128xf32>, vector<4x128xf32> -> vector<4x128xf32>
    %c1_127 = arith.constant 1 : index
    %c0_128 = arith.constant 0 : index
    %c0_129 = arith.constant 0 : index
    %318 = vector.load %arg8[%c1_127, %c0_128, %c0_129] : memref<3x4x1xf32, #tpu.memory_space<vmem>>, vector<1x4x1xf32>
    %319 = vector.shape_cast %318 : vector<1x4x1xf32> to vector<4x1xf32>
    %320 = vector.broadcast %319 : vector<4x1xf32> to vector<4x128xf32>
    %321 = arith.addf %317, %320 : vector<4x128xf32>
    %c1_130 = arith.constant 1 : index
    %c0_131 = arith.constant 0 : index
    %c0_132 = arith.constant 0 : index
    %322 = vector.load %arg11[%c1_130, %c0_131, %c0_132] : memref<3x4x1xf32, #tpu.memory_space<vmem>>, vector<1x4x1xf32>
    %323 = vector.shape_cast %322 : vector<1x4x1xf32> to vector<4x1xf32>
    %c1_133 = arith.constant 1 : index
    %c0_134 = arith.constant 0 : index
    %c0_135 = arith.constant 0 : index
    %324 = vector.load %arg12[%c1_133, %c0_134, %c0_135] : memref<3x4x1xf32, #tpu.memory_space<vmem>>, vector<1x4x1xf32>
    %325 = vector.shape_cast %324 : vector<1x4x1xf32> to vector<4x1xf32>
    %cst_136 = arith.constant dense<0.000000e+00> : vector<128xf32>
    %326 = vector.multi_reduction <add>, %321, %cst_136 [0] : vector<4x128xf32> to vector<128xf32>
    %327 = vector.shape_cast %326 : vector<128xf32> to vector<1x128xf32>
    %cst_137 = arith.constant 4.000000e+00 : f32
    %328 = vector.broadcast %cst_137 : f32 to vector<1x128xf32>
    %329 = arith.divf %327, %328 : vector<1x128xf32>
    %330 = vector.broadcast %329 : vector<1x128xf32> to vector<4x128xf32>
    %331 = arith.subf %321, %330 : vector<4x128xf32>
    %332 = arith.mulf %331, %331 : vector<4x128xf32>
    %cst_138 = arith.constant dense<0.000000e+00> : vector<128xf32>
    %333 = vector.multi_reduction <add>, %332, %cst_138 [0] : vector<4x128xf32> to vector<128xf32>
    %334 = vector.shape_cast %333 : vector<128xf32> to vector<1x128xf32>
    %cst_139 = arith.constant 4.000000e+00 : f32
    %335 = vector.broadcast %cst_139 : f32 to vector<1x128xf32>
    %336 = arith.divf %334, %335 : vector<1x128xf32>
    %337 = vector.broadcast %329 : vector<1x128xf32> to vector<4x128xf32>
    %338 = arith.subf %321, %337 : vector<4x128xf32>
    %cst_140 = arith.constant 9.99999974E-6 : f32
    %339 = vector.broadcast %cst_140 : f32 to vector<1x128xf32>
    %340 = arith.addf %336, %339 : vector<1x128xf32>
    %341 = math.rsqrt %340 : vector<1x128xf32>
    %342 = vector.broadcast %341 : vector<1x128xf32> to vector<4x128xf32>
    %343 = arith.mulf %338, %342 : vector<4x128xf32>
    %344 = vector.broadcast %323 : vector<4x1xf32> to vector<4x128xf32>
    %345 = arith.mulf %343, %344 : vector<4x128xf32>
    %346 = vector.broadcast %325 : vector<4x1xf32> to vector<4x128xf32>
    %347 = arith.addf %345, %346 : vector<4x128xf32>
    %cst_141 = arith.constant 5.000000e-01 : f32
    %348 = vector.broadcast %cst_141 : f32 to vector<4x128xf32>
    %349 = arith.mulf %348, %347 : vector<4x128xf32>
    %cst_142 = arith.constant 0.707106769 : f32
    %350 = vector.broadcast %cst_142 : f32 to vector<4x128xf32>
    %351 = arith.mulf %347, %350 : vector<4x128xf32>
    %cst_143 = arith.constant 0.000000e+00 : f32
    %352 = vector.broadcast %cst_143 : f32 to vector<4x128xf32>
    %353 = arith.cmpf oge, %351, %352 : vector<4x128xf32>
    %cst_144 = arith.constant 1.000000e+00 : f32
    %cst_145 = arith.constant -1.000000e+00 : f32
    %354 = vector.broadcast %cst_144 : f32 to vector<4x128xf32>
    %355 = vector.broadcast %cst_145 : f32 to vector<4x128xf32>
    %356 = arith.select %353, %354, %355 : vector<4x128xi1>, vector<4x128xf32>
    %357 = math.absf %351 : vector<4x128xf32>
    %cst_146 = arith.constant 0.327591091 : f32
    %358 = vector.broadcast %cst_146 : f32 to vector<4x128xf32>
    %359 = arith.mulf %358, %357 : vector<4x128xf32>
    %cst_147 = arith.constant 1.000000e+00 : f32
    %360 = vector.broadcast %cst_147 : f32 to vector<4x128xf32>
    %361 = arith.addf %360, %359 : vector<4x128xf32>
    %cst_148 = arith.constant 1.000000e+00 : f32
    %362 = vector.broadcast %cst_148 : f32 to vector<4x128xf32>
    %363 = arith.divf %362, %361 : vector<4x128xf32>
    %cst_149 = arith.constant 1.06140542 : f32
    %364 = vector.broadcast %cst_149 : f32 to vector<4x128xf32>
    %365 = arith.mulf %364, %363 : vector<4x128xf32>
    %cst_150 = arith.constant -1.45315206 : f32
    %366 = vector.broadcast %cst_150 : f32 to vector<4x128xf32>
    %367 = arith.addf %365, %366 : vector<4x128xf32>
    %368 = arith.mulf %367, %363 : vector<4x128xf32>
    %cst_151 = arith.constant 1.42141378 : f32
    %369 = vector.broadcast %cst_151 : f32 to vector<4x128xf32>
    %370 = arith.addf %368, %369 : vector<4x128xf32>
    %371 = arith.mulf %370, %363 : vector<4x128xf32>
    %cst_152 = arith.constant -0.284496725 : f32
    %372 = vector.broadcast %cst_152 : f32 to vector<4x128xf32>
    %373 = arith.addf %371, %372 : vector<4x128xf32>
    %374 = arith.mulf %373, %363 : vector<4x128xf32>
    %cst_153 = arith.constant 0.254829586 : f32
    %375 = vector.broadcast %cst_153 : f32 to vector<4x128xf32>
    %376 = arith.addf %374, %375 : vector<4x128xf32>
    %377 = arith.mulf %376, %363 : vector<4x128xf32>
    %cst_154 = arith.constant 0.000000e+00 : f32
    %378 = vector.broadcast %cst_154 : f32 to vector<4x128xf32>
    %379 = arith.subf %378, %357 : vector<4x128xf32>
    %380 = arith.mulf %379, %357 : vector<4x128xf32>
    %381 = math.exp %380 : vector<4x128xf32>
    %382 = arith.mulf %377, %381 : vector<4x128xf32>
    %cst_155 = arith.constant 1.000000e+00 : f32
    %383 = vector.broadcast %cst_155 : f32 to vector<4x128xf32>
    %384 = arith.subf %383, %382 : vector<4x128xf32>
    %385 = arith.mulf %356, %384 : vector<4x128xf32>
    %cst_156 = arith.constant 1.000000e+00 : f32
    %386 = vector.broadcast %cst_156 : f32 to vector<4x128xf32>
    %387 = arith.addf %386, %385 : vector<4x128xf32>
    %388 = arith.mulf %349, %387 : vector<4x128xf32>
    %389 = arith.addf %200, %388 : vector<4x128xf32>
    %390 = vector.broadcast %1 : vector<1x128xf32> to vector<4x128xf32>
    %391 = arith.mulf %389, %390 : vector<4x128xf32>
    %c2 = arith.constant 2 : index
    %c0_157 = arith.constant 0 : index
    %c0_158 = arith.constant 0 : index
    %392 = vector.load %arg5[%c2, %c0_157, %c0_158] : memref<3x4x3xf32, #tpu.memory_space<vmem>>, vector<1x4x3xf32>
    %393 = vector.shape_cast %392 : vector<1x4x3xf32> to vector<4x3xf32>
    %394 = vector.extract_strided_slice %393 {offsets = [0, 1], sizes = [4, 1], strides = [1, 1]} : vector<4x3xf32> to vector<4x1xf32>
    %395 = vector.broadcast %394 : vector<4x1xf32> to vector<4x128xf32>
    %396 = arith.mulf %395, %391 : vector<4x128xf32>
    %c9_i32 = arith.constant 9 : i32
    %397 = tpu.dynamic_rotate %391 by %c9_i32 dim 1 : vector<4x128xf32>, i32 -> vector<4x128xf32>
    %c-9_i32 = arith.constant -9 : i32
    %398 = vector.broadcast %c-9_i32 : i32 to vector<1x128xi32>
    %399 = arith.addi %11, %398 : vector<1x128xi32>
    %c0_i32_159 = arith.constant 0 : i32
    %400 = vector.broadcast %c0_i32_159 : i32 to vector<1x128xi32>
    %401 = arith.cmpi sge, %399, %400 : vector<1x128xi32>
    %c-9_i32_160 = arith.constant -9 : i32
    %402 = vector.broadcast %c-9_i32_160 : i32 to vector<1x128xi32>
    %403 = arith.addi %11, %402 : vector<1x128xi32>
    %c128_i32_161 = arith.constant 128 : i32
    %404 = vector.broadcast %c128_i32_161 : i32 to vector<1x128xi32>
    %405 = arith.cmpi slt, %403, %404 : vector<1x128xi32>
    %406 = arith.andi %401, %405 : vector<1x128xi1>
    %cst_162 = arith.constant 0.000000e+00 : f32
    %407 = vector.shape_cast %406 : vector<1x128xi1> to vector<1x128xi1>
    %408 = vector.broadcast %407 : vector<1x128xi1> to vector<4x128xi1>
    %409 = vector.broadcast %cst_162 : f32 to vector<4x128xf32>
    %410 = arith.select %408, %397, %409 : vector<4x128xi1>, vector<4x128xf32>
    %411 = vector.extract_strided_slice %393 {offsets = [0, 0], sizes = [4, 1], strides = [1, 1]} : vector<4x3xf32> to vector<4x1xf32>
    %412 = vector.broadcast %411 : vector<4x1xf32> to vector<4x128xf32>
    %413 = arith.mulf %412, %410 : vector<4x128xf32>
    %414 = arith.addf %396, %413 : vector<4x128xf32>
    %c119_i32 = arith.constant 119 : i32
    %415 = tpu.dynamic_rotate %391 by %c119_i32 dim 1 : vector<4x128xf32>, i32 -> vector<4x128xf32>
    %c9_i32_163 = arith.constant 9 : i32
    %416 = vector.broadcast %c9_i32_163 : i32 to vector<1x128xi32>
    %417 = arith.addi %11, %416 : vector<1x128xi32>
    %c0_i32_164 = arith.constant 0 : i32
    %418 = vector.broadcast %c0_i32_164 : i32 to vector<1x128xi32>
    %419 = arith.cmpi sge, %417, %418 : vector<1x128xi32>
    %c9_i32_165 = arith.constant 9 : i32
    %420 = vector.broadcast %c9_i32_165 : i32 to vector<1x128xi32>
    %421 = arith.addi %11, %420 : vector<1x128xi32>
    %c128_i32_166 = arith.constant 128 : i32
    %422 = vector.broadcast %c128_i32_166 : i32 to vector<1x128xi32>
    %423 = arith.cmpi slt, %421, %422 : vector<1x128xi32>
    %424 = arith.andi %419, %423 : vector<1x128xi1>
    %cst_167 = arith.constant 0.000000e+00 : f32
    %425 = vector.shape_cast %424 : vector<1x128xi1> to vector<1x128xi1>
    %426 = vector.broadcast %425 : vector<1x128xi1> to vector<4x128xi1>
    %427 = vector.broadcast %cst_167 : f32 to vector<4x128xf32>
    %428 = arith.select %426, %415, %427 : vector<4x128xi1>, vector<4x128xf32>
    %429 = vector.extract_strided_slice %393 {offsets = [0, 2], sizes = [4, 1], strides = [1, 1]} : vector<4x3xf32> to vector<4x1xf32>
    %430 = vector.broadcast %429 : vector<4x1xf32> to vector<4x128xf32>
    %431 = arith.mulf %430, %428 : vector<4x128xf32>
    %432 = arith.addf %414, %431 : vector<4x128xf32>
    %c2_168 = arith.constant 2 : index
    %c0_169 = arith.constant 0 : index
    %c0_170 = arith.constant 0 : index
    %433 = vector.load %arg6[%c2_168, %c0_169, %c0_170] : memref<3x4x1xf32, #tpu.memory_space<vmem>>, vector<1x4x1xf32>
    %434 = vector.shape_cast %433 : vector<1x4x1xf32> to vector<4x1xf32>
    %435 = vector.broadcast %434 : vector<4x1xf32> to vector<4x128xf32>
    %436 = arith.addf %432, %435 : vector<4x128xf32>
    %c2_171 = arith.constant 2 : index
    %c0_172 = arith.constant 0 : index
    %c0_173 = arith.constant 0 : index
    %437 = vector.load %arg9[%c2_171, %c0_172, %c0_173] : memref<3x4x1xf32, #tpu.memory_space<vmem>>, vector<1x4x1xf32>
    %438 = vector.shape_cast %437 : vector<1x4x1xf32> to vector<4x1xf32>
    %c2_174 = arith.constant 2 : index
    %c0_175 = arith.constant 0 : index
    %c0_176 = arith.constant 0 : index
    %439 = vector.load %arg10[%c2_174, %c0_175, %c0_176] : memref<3x4x1xf32, #tpu.memory_space<vmem>>, vector<1x4x1xf32>
    %440 = vector.shape_cast %439 : vector<1x4x1xf32> to vector<4x1xf32>
    %cst_177 = arith.constant dense<0.000000e+00> : vector<128xf32>
    %441 = vector.multi_reduction <add>, %436, %cst_177 [0] : vector<4x128xf32> to vector<128xf32>
    %442 = vector.shape_cast %441 : vector<128xf32> to vector<1x128xf32>
    %cst_178 = arith.constant 4.000000e+00 : f32
    %443 = vector.broadcast %cst_178 : f32 to vector<1x128xf32>
    %444 = arith.divf %442, %443 : vector<1x128xf32>
    %445 = vector.broadcast %444 : vector<1x128xf32> to vector<4x128xf32>
    %446 = arith.subf %436, %445 : vector<4x128xf32>
    %447 = arith.mulf %446, %446 : vector<4x128xf32>
    %cst_179 = arith.constant dense<0.000000e+00> : vector<128xf32>
    %448 = vector.multi_reduction <add>, %447, %cst_179 [0] : vector<4x128xf32> to vector<128xf32>
    %449 = vector.shape_cast %448 : vector<128xf32> to vector<1x128xf32>
    %cst_180 = arith.constant 4.000000e+00 : f32
    %450 = vector.broadcast %cst_180 : f32 to vector<1x128xf32>
    %451 = arith.divf %449, %450 : vector<1x128xf32>
    %452 = vector.broadcast %444 : vector<1x128xf32> to vector<4x128xf32>
    %453 = arith.subf %436, %452 : vector<4x128xf32>
    %cst_181 = arith.constant 9.99999974E-6 : f32
    %454 = vector.broadcast %cst_181 : f32 to vector<1x128xf32>
    %455 = arith.addf %451, %454 : vector<1x128xf32>
    %456 = math.rsqrt %455 : vector<1x128xf32>
    %457 = vector.broadcast %456 : vector<1x128xf32> to vector<4x128xf32>
    %458 = arith.mulf %453, %457 : vector<4x128xf32>
    %459 = vector.broadcast %438 : vector<4x1xf32> to vector<4x128xf32>
    %460 = arith.mulf %458, %459 : vector<4x128xf32>
    %461 = vector.broadcast %440 : vector<4x1xf32> to vector<4x128xf32>
    %462 = arith.addf %460, %461 : vector<4x128xf32>
    %cst_182 = arith.constant 5.000000e-01 : f32
    %463 = vector.broadcast %cst_182 : f32 to vector<4x128xf32>
    %464 = arith.mulf %463, %462 : vector<4x128xf32>
    %cst_183 = arith.constant 0.707106769 : f32
    %465 = vector.broadcast %cst_183 : f32 to vector<4x128xf32>
    %466 = arith.mulf %462, %465 : vector<4x128xf32>
    %cst_184 = arith.constant 0.000000e+00 : f32
    %467 = vector.broadcast %cst_184 : f32 to vector<4x128xf32>
    %468 = arith.cmpf oge, %466, %467 : vector<4x128xf32>
    %cst_185 = arith.constant 1.000000e+00 : f32
    %cst_186 = arith.constant -1.000000e+00 : f32
    %469 = vector.broadcast %cst_185 : f32 to vector<4x128xf32>
    %470 = vector.broadcast %cst_186 : f32 to vector<4x128xf32>
    %471 = arith.select %468, %469, %470 : vector<4x128xi1>, vector<4x128xf32>
    %472 = math.absf %466 : vector<4x128xf32>
    %cst_187 = arith.constant 0.327591091 : f32
    %473 = vector.broadcast %cst_187 : f32 to vector<4x128xf32>
    %474 = arith.mulf %473, %472 : vector<4x128xf32>
    %cst_188 = arith.constant 1.000000e+00 : f32
    %475 = vector.broadcast %cst_188 : f32 to vector<4x128xf32>
    %476 = arith.addf %475, %474 : vector<4x128xf32>
    %cst_189 = arith.constant 1.000000e+00 : f32
    %477 = vector.broadcast %cst_189 : f32 to vector<4x128xf32>
    %478 = arith.divf %477, %476 : vector<4x128xf32>
    %cst_190 = arith.constant 1.06140542 : f32
    %479 = vector.broadcast %cst_190 : f32 to vector<4x128xf32>
    %480 = arith.mulf %479, %478 : vector<4x128xf32>
    %cst_191 = arith.constant -1.45315206 : f32
    %481 = vector.broadcast %cst_191 : f32 to vector<4x128xf32>
    %482 = arith.addf %480, %481 : vector<4x128xf32>
    %483 = arith.mulf %482, %478 : vector<4x128xf32>
    %cst_192 = arith.constant 1.42141378 : f32
    %484 = vector.broadcast %cst_192 : f32 to vector<4x128xf32>
    %485 = arith.addf %483, %484 : vector<4x128xf32>
    %486 = arith.mulf %485, %478 : vector<4x128xf32>
    %cst_193 = arith.constant -0.284496725 : f32
    %487 = vector.broadcast %cst_193 : f32 to vector<4x128xf32>
    %488 = arith.addf %486, %487 : vector<4x128xf32>
    %489 = arith.mulf %488, %478 : vector<4x128xf32>
    %cst_194 = arith.constant 0.254829586 : f32
    %490 = vector.broadcast %cst_194 : f32 to vector<4x128xf32>
    %491 = arith.addf %489, %490 : vector<4x128xf32>
    %492 = arith.mulf %491, %478 : vector<4x128xf32>
    %cst_195 = arith.constant 0.000000e+00 : f32
    %493 = vector.broadcast %cst_195 : f32 to vector<4x128xf32>
    %494 = arith.subf %493, %472 : vector<4x128xf32>
    %495 = arith.mulf %494, %472 : vector<4x128xf32>
    %496 = math.exp %495 : vector<4x128xf32>
    %497 = arith.mulf %492, %496 : vector<4x128xf32>
    %cst_196 = arith.constant 1.000000e+00 : f32
    %498 = vector.broadcast %cst_196 : f32 to vector<4x128xf32>
    %499 = arith.subf %498, %497 : vector<4x128xf32>
    %500 = arith.mulf %471, %499 : vector<4x128xf32>
    %cst_197 = arith.constant 1.000000e+00 : f32
    %501 = vector.broadcast %cst_197 : f32 to vector<4x128xf32>
    %502 = arith.addf %501, %500 : vector<4x128xf32>
    %503 = arith.mulf %464, %502 : vector<4x128xf32>
    %c2_198 = arith.constant 2 : index
    %c0_199 = arith.constant 0 : index
    %c0_200 = arith.constant 0 : index
    %504 = vector.load %arg7[%c2_198, %c0_199, %c0_200] : memref<3x4x4xf32, #tpu.memory_space<vmem>>, vector<1x4x4xf32>
    %505 = vector.shape_cast %504 : vector<1x4x4xf32> to vector<4x4xf32>
    %cst_201 = arith.constant dense<0.000000e+00> : vector<4x128xf32>
    %506 = tpu.matmul %505, %503, %cst_201 {dimension_numbers = #tpu.dot_dimension_numbers<[1], [0], [0], [1], [0, 0, 1, 1], [], []>} : vector<4x4xf32>, vector<4x128xf32>, vector<4x128xf32> -> vector<4x128xf32>
    %c2_202 = arith.constant 2 : index
    %c0_203 = arith.constant 0 : index
    %c0_204 = arith.constant 0 : index
    %507 = vector.load %arg8[%c2_202, %c0_203, %c0_204] : memref<3x4x1xf32, #tpu.memory_space<vmem>>, vector<1x4x1xf32>
    %508 = vector.shape_cast %507 : vector<1x4x1xf32> to vector<4x1xf32>
    %509 = vector.broadcast %508 : vector<4x1xf32> to vector<4x128xf32>
    %510 = arith.addf %506, %509 : vector<4x128xf32>
    %c2_205 = arith.constant 2 : index
    %c0_206 = arith.constant 0 : index
    %c0_207 = arith.constant 0 : index
    %511 = vector.load %arg11[%c2_205, %c0_206, %c0_207] : memref<3x4x1xf32, #tpu.memory_space<vmem>>, vector<1x4x1xf32>
    %512 = vector.shape_cast %511 : vector<1x4x1xf32> to vector<4x1xf32>
    %c2_208 = arith.constant 2 : index
    %c0_209 = arith.constant 0 : index
    %c0_210 = arith.constant 0 : index
    %513 = vector.load %arg12[%c2_208, %c0_209, %c0_210] : memref<3x4x1xf32, #tpu.memory_space<vmem>>, vector<1x4x1xf32>
    %514 = vector.shape_cast %513 : vector<1x4x1xf32> to vector<4x1xf32>
    %cst_211 = arith.constant dense<0.000000e+00> : vector<128xf32>
    %515 = vector.multi_reduction <add>, %510, %cst_211 [0] : vector<4x128xf32> to vector<128xf32>
    %516 = vector.shape_cast %515 : vector<128xf32> to vector<1x128xf32>
    %cst_212 = arith.constant 4.000000e+00 : f32
    %517 = vector.broadcast %cst_212 : f32 to vector<1x128xf32>
    %518 = arith.divf %516, %517 : vector<1x128xf32>
    %519 = vector.broadcast %518 : vector<1x128xf32> to vector<4x128xf32>
    %520 = arith.subf %510, %519 : vector<4x128xf32>
    %521 = arith.mulf %520, %520 : vector<4x128xf32>
    %cst_213 = arith.constant dense<0.000000e+00> : vector<128xf32>
    %522 = vector.multi_reduction <add>, %521, %cst_213 [0] : vector<4x128xf32> to vector<128xf32>
    %523 = vector.shape_cast %522 : vector<128xf32> to vector<1x128xf32>
    %cst_214 = arith.constant 4.000000e+00 : f32
    %524 = vector.broadcast %cst_214 : f32 to vector<1x128xf32>
    %525 = arith.divf %523, %524 : vector<1x128xf32>
    %526 = vector.broadcast %518 : vector<1x128xf32> to vector<4x128xf32>
    %527 = arith.subf %510, %526 : vector<4x128xf32>
    %cst_215 = arith.constant 9.99999974E-6 : f32
    %528 = vector.broadcast %cst_215 : f32 to vector<1x128xf32>
    %529 = arith.addf %525, %528 : vector<1x128xf32>
    %530 = math.rsqrt %529 : vector<1x128xf32>
    %531 = vector.broadcast %530 : vector<1x128xf32> to vector<4x128xf32>
    %532 = arith.mulf %527, %531 : vector<4x128xf32>
    %533 = vector.broadcast %512 : vector<4x1xf32> to vector<4x128xf32>
    %534 = arith.mulf %532, %533 : vector<4x128xf32>
    %535 = vector.broadcast %514 : vector<4x1xf32> to vector<4x128xf32>
    %536 = arith.addf %534, %535 : vector<4x128xf32>
    %cst_216 = arith.constant 5.000000e-01 : f32
    %537 = vector.broadcast %cst_216 : f32 to vector<4x128xf32>
    %538 = arith.mulf %537, %536 : vector<4x128xf32>
    %cst_217 = arith.constant 0.707106769 : f32
    %539 = vector.broadcast %cst_217 : f32 to vector<4x128xf32>
    %540 = arith.mulf %536, %539 : vector<4x128xf32>
    %cst_218 = arith.constant 0.000000e+00 : f32
    %541 = vector.broadcast %cst_218 : f32 to vector<4x128xf32>
    %542 = arith.cmpf oge, %540, %541 : vector<4x128xf32>
    %cst_219 = arith.constant 1.000000e+00 : f32
    %cst_220 = arith.constant -1.000000e+00 : f32
    %543 = vector.broadcast %cst_219 : f32 to vector<4x128xf32>
    %544 = vector.broadcast %cst_220 : f32 to vector<4x128xf32>
    %545 = arith.select %542, %543, %544 : vector<4x128xi1>, vector<4x128xf32>
    %546 = math.absf %540 : vector<4x128xf32>
    %cst_221 = arith.constant 0.327591091 : f32
    %547 = vector.broadcast %cst_221 : f32 to vector<4x128xf32>
    %548 = arith.mulf %547, %546 : vector<4x128xf32>
    %cst_222 = arith.constant 1.000000e+00 : f32
    %549 = vector.broadcast %cst_222 : f32 to vector<4x128xf32>
    %550 = arith.addf %549, %548 : vector<4x128xf32>
    %cst_223 = arith.constant 1.000000e+00 : f32
    %551 = vector.broadcast %cst_223 : f32 to vector<4x128xf32>
    %552 = arith.divf %551, %550 : vector<4x128xf32>
    %cst_224 = arith.constant 1.06140542 : f32
    %553 = vector.broadcast %cst_224 : f32 to vector<4x128xf32>
    %554 = arith.mulf %553, %552 : vector<4x128xf32>
    %cst_225 = arith.constant -1.45315206 : f32
    %555 = vector.broadcast %cst_225 : f32 to vector<4x128xf32>
    %556 = arith.addf %554, %555 : vector<4x128xf32>
    %557 = arith.mulf %556, %552 : vector<4x128xf32>
    %cst_226 = arith.constant 1.42141378 : f32
    %558 = vector.broadcast %cst_226 : f32 to vector<4x128xf32>
    %559 = arith.addf %557, %558 : vector<4x128xf32>
    %560 = arith.mulf %559, %552 : vector<4x128xf32>
    %cst_227 = arith.constant -0.284496725 : f32
    %561 = vector.broadcast %cst_227 : f32 to vector<4x128xf32>
    %562 = arith.addf %560, %561 : vector<4x128xf32>
    %563 = arith.mulf %562, %552 : vector<4x128xf32>
    %cst_228 = arith.constant 0.254829586 : f32
    %564 = vector.broadcast %cst_228 : f32 to vector<4x128xf32>
    %565 = arith.addf %563, %564 : vector<4x128xf32>
    %566 = arith.mulf %565, %552 : vector<4x128xf32>
    %cst_229 = arith.constant 0.000000e+00 : f32
    %567 = vector.broadcast %cst_229 : f32 to vector<4x128xf32>
    %568 = arith.subf %567, %546 : vector<4x128xf32>
    %569 = arith.mulf %568, %546 : vector<4x128xf32>
    %570 = math.exp %569 : vector<4x128xf32>
    %571 = arith.mulf %566, %570 : vector<4x128xf32>
    %cst_230 = arith.constant 1.000000e+00 : f32
    %572 = vector.broadcast %cst_230 : f32 to vector<4x128xf32>
    %573 = arith.subf %572, %571 : vector<4x128xf32>
    %574 = arith.mulf %545, %573 : vector<4x128xf32>
    %cst_231 = arith.constant 1.000000e+00 : f32
    %575 = vector.broadcast %cst_231 : f32 to vector<4x128xf32>
    %576 = arith.addf %575, %574 : vector<4x128xf32>
    %577 = arith.mulf %538, %576 : vector<4x128xf32>
    %578 = arith.addf %389, %577 : vector<4x128xf32>
    %579 = vector.broadcast %1 : vector<1x128xf32> to vector<4x128xf32>
    %580 = arith.mulf %578, %579 : vector<4x128xf32>
    %c0_232 = arith.constant 0 : index
    %c0_233 = arith.constant 0 : index
    %581 = vector.load %arg13[%c0_232, %c0_233] : memref<4x4xf32, #tpu.memory_space<vmem>>, vector<4x4xf32>
    %cst_234 = arith.constant dense<0.000000e+00> : vector<4x128xf32>
    %582 = tpu.matmul %581, %580, %cst_234 {dimension_numbers = #tpu.dot_dimension_numbers<[1], [0], [0], [1], [0, 0, 1, 1], [], []>} : vector<4x4xf32>, vector<4x128xf32>, vector<4x128xf32> -> vector<4x128xf32>
    %c0_235 = arith.constant 0 : index
    %c0_236 = arith.constant 0 : index
    %583 = vector.load %arg14[%c0_235, %c0_236] : memref<4x1xf32, #tpu.memory_space<vmem>>, vector<4x1xf32>
    %584 = vector.broadcast %583 : vector<4x1xf32> to vector<4x128xf32>
    %585 = arith.addf %582, %584 : vector<4x128xf32>
    %586 = vector.broadcast %1 : vector<1x128xf32> to vector<4x128xf32>
    %587 = arith.mulf %585, %586 : vector<4x128xf32>
    %c0_237 = arith.constant 0 : index
    %c0_238 = arith.constant 0 : index
    %c0_239 = arith.constant 0 : index
    %588 = vector.load %arg15[%c0_237, %c0_238, %c0_239] : memref<1x4x128xf32, #tpu.memory_space<vmem>>, vector<1x4x128xf32>
    %589 = vector.shape_cast %588 : vector<1x4x128xf32> to vector<4x128xf32>
    %590 = vector.shape_cast %587 : vector<4x128xf32> to vector<1x4x128xf32>
    tpu.vector_store %arg15[%c0_237, %c0_238, %c0_239], %590 {strides = array<i32>} : memref<1x4x128xf32, #tpu.memory_space<vmem>>, vector<1x4x128xf32>,
    return
  }
  func.func @transform_0(%arg0: i32) -> (i32, i32, i32) {
    %c0_i32 = arith.constant 0 : i32
    %c0_i32_0 = arith.constant 0 : i32
    %c0_i32_1 = arith.constant 0 : i32
    return %arg0, %c0_i32, %c0_i32_0 : i32, i32, i32
  }
  func.func @transform_1(%arg0: i32) -> (i32, i32, i32) {
    %c0_i32 = arith.constant 0 : i32
    %c0_i32_0 = arith.constant 0 : i32
    %c0_i32_1 = arith.constant 0 : i32
    return %arg0, %c0_i32, %c0_i32_0 : i32, i32, i32
  }
  func.func @transform_2(%arg0: i32) -> (i32, i32) {
    %c0_i32 = arith.constant 0 : i32
    %c0_i32_0 = arith.constant 0 : i32
    %c0_i32_1 = arith.constant 0 : i32
    return %c0_i32, %c0_i32_0 : i32, i32
  }
  func.func @transform_3(%arg0: i32) -> (i32, i32) {
    %c0_i32 = arith.constant 0 : i32
    %c0_i32_0 = arith.constant 0 : i32
    %c0_i32_1 = arith.constant 0 : i32
    return %c0_i32, %c0_i32_0 : i32, i32
  }
  func.func @transform_4(%arg0: i32) -> (i32, i32, i32) {
    %c0_i32 = arith.constant 0 : i32
    %c0_i32_0 = arith.constant 0 : i32
    %c0_i32_1 = arith.constant 0 : i32
    %c0_i32_2 = arith.constant 0 : i32
    return %c0_i32, %c0_i32_0, %c0_i32_1 : i32, i32, i32
  }
  func.func @transform_5(%arg0: i32) -> (i32, i32, i32) {
    %c0_i32 = arith.constant 0 : i32
    %c0_i32_0 = arith.constant 0 : i32
    %c0_i32_1 = arith.constant 0 : i32
    %c0_i32_2 = arith.constant 0 : i32
    return %c0_i32, %c0_i32_0, %c0_i32_1 : i32, i32, i32
  }
  func.func @transform_6(%arg0: i32) -> (i32, i32, i32) {
    %c0_i32 = arith.constant 0 : i32
    %c0_i32_0 = arith.constant 0 : i32
    %c0_i32_1 = arith.constant 0 : i32
    %c0_i32_2 = arith.constant 0 : i32
    return %c0_i32, %c0_i32_0, %c0_i32_1 : i32, i32, i32
  }
  func.func @transform_7(%arg0: i32) -> (i32, i32, i32) {
    %c0_i32 = arith.constant 0 : i32
    %c0_i32_0 = arith.constant 0 : i32
    %c0_i32_1 = arith.constant 0 : i32
    %c0_i32_2 = arith.constant 0 : i32
    return %c0_i32, %c0_i32_0, %c0_i32_1 : i32, i32, i32
  }
  func.func @transform_8(%arg0: i32) -> (i32, i32, i32) {
    %c0_i32 = arith.constant 0 : i32
    %c0_i32_0 = arith.constant 0 : i32
    %c0_i32_1 = arith.constant 0 : i32
    %c0_i32_2 = arith.constant 0 : i32
    return %c0_i32, %c0_i32_0, %c0_i32_1 : i32, i32, i32
  }
  func.func @transform_9(%arg0: i32) -> (i32, i32, i32) {
    %c0_i32 = arith.constant 0 : i32
    %c0_i32_0 = arith.constant 0 : i32
    %c0_i32_1 = arith.constant 0 : i32
    %c0_i32_2 = arith.constant 0 : i32
    return %c0_i32, %c0_i32_0, %c0_i32_1 : i32, i32, i32
  }
  func.func @transform_10(%arg0: i32) -> (i32, i32, i32) {
    %c0_i32 = arith.constant 0 : i32
    %c0_i32_0 = arith.constant 0 : i32
    %c0_i32_1 = arith.constant 0 : i32
    %c0_i32_2 = arith.constant 0 : i32
    return %c0_i32, %c0_i32_0, %c0_i32_1 : i32, i32, i32
  }
  func.func @transform_11(%arg0: i32) -> (i32, i32, i32) {
    %c0_i32 = arith.constant 0 : i32
    %c0_i32_0 = arith.constant 0 : i32
    %c0_i32_1 = arith.constant 0 : i32
    %c0_i32_2 = arith.constant 0 : i32
    return %c0_i32, %c0_i32_0, %c0_i32_1 : i32, i32, i32
  }
  func.func @transform_12(%arg0: i32) -> (i32, i32) {
    %c0_i32 = arith.constant 0 : i32
    %c0_i32_0 = arith.constant 0 : i32
    %c0_i32_1 = arith.constant 0 : i32
    return %c0_i32, %c0_i32_0 : i32, i32
  }
  func.func @transform_13(%arg0: i32) -> (i32, i32) {
    %c0_i32 = arith.constant 0 : i32
    %c0_i32_0 = arith.constant 0 : i32
    %c0_i32_1 = arith.constant 0 : i32
    return %c0_i32, %c0_i32_0 : i32, i32
  }
  func.func @transform_14(%arg0: i32) -> (i32, i32, i32) {
    %c0_i32 = arith.constant 0 : i32
    %c0_i32_0 = arith.constant 0 : i32
    %c0_i32_1 = arith.constant 0 : i32
    return %arg0, %c0_i32, %c0_i32_0 : i32, i32, i32
  }
}

module attributes {stable_mosaic.version = 11 : i64} {
  func.func @kernel(%arg0: i32, %arg1: memref<1x1x128xf32, #tpu.memory_space<vmem>>, %arg2: memref<1x1x128xf32, #tpu.memory_space<vmem>>, %arg3: memref<1x4x128xf32, #tpu.memory_space<vmem>>, %arg4: memref<4x1xf32, #tpu.memory_space<vmem>>, %arg5: memref<4x1xf32, #tpu.memory_space<vmem>>, %arg6: memref<3x4x3xf32, #tpu.memory_space<vmem>>, %arg7: memref<3x4x1xf32, #tpu.memory_space<vmem>>, %arg8: memref<3x4x4xf32, #tpu.memory_space<vmem>>, %arg9: memref<3x4x1xf32, #tpu.memory_space<vmem>>, %arg10: memref<3x4x1xf32, #tpu.memory_space<vmem>>, %arg11: memref<3x4x1xf32, #tpu.memory_space<vmem>>, %arg12: memref<3x4x1xf32, #tpu.memory_space<vmem>>, %arg13: memref<3x4x1xf32, #tpu.memory_space<vmem>>, %arg14: memref<29x4xf32, #tpu.memory_space<vmem>>, %arg15: memref<29x1xf32, #tpu.memory_space<vmem>>, %arg16: memref<1x29x128xf32, #tpu.memory_space<vmem>>) attributes {dimension_semantics = [#tpu.dimension_semantics<parallel>], iteration_bounds = array<i64: 2>, scalar_prefetch = 0 : i64, scratch_operands = 0 : i64, tpu.core_type = #tpu.core_type<tc>, window_params = [{transform_indices = @transform_0, window_bounds = array<i64: 1, 1, 128>}, {transform_indices = @transform_1, window_bounds = array<i64: 1, 1, 128>}, {transform_indices = @transform_2, window_bounds = array<i64: 1, 4, 128>}, {pipeline_mode = #tpu.pipeline_mode<synchronous>, transform_indices = @transform_3, window_bounds = array<i64: 4, 1>}, {pipeline_mode = #tpu.pipeline_mode<synchronous>, transform_indices = @transform_4, window_bounds = array<i64: 4, 1>}, {pipeline_mode = #tpu.pipeline_mode<synchronous>, transform_indices = @transform_5, window_bounds = array<i64: 3, 4, 3>}, {pipeline_mode = #tpu.pipeline_mode<synchronous>, transform_indices = @transform_6, window_bounds = array<i64: 3, 4, 1>}, {pipeline_mode = #tpu.pipeline_mode<synchronous>, transform_indices = @transform_7, window_bounds = array<i64: 3, 4, 4>}, {pipeline_mode = #tpu.pipeline_mode<synchronous>, transform_indices = @transform_8, window_bounds = array<i64: 3, 4, 1>}, {pipeline_mode = #tpu.pipeline_mode<synchronous>, transform_indices = @transform_9, window_bounds = array<i64: 3, 4, 1>}, {pipeline_mode = #tpu.pipeline_mode<synchronous>, transform_indices = @transform_10, window_bounds = array<i64: 3, 4, 1>}, {pipeline_mode = #tpu.pipeline_mode<synchronous>, transform_indices = @transform_11, window_bounds = array<i64: 3, 4, 1>}, {pipeline_mode = #tpu.pipeline_mode<synchronous>, transform_indices = @transform_12, window_bounds = array<i64: 3, 4, 1>}, {pipeline_mode = #tpu.pipeline_mode<synchronous>, transform_indices = @transform_13, window_bounds = array<i64: 29, 4>}, {pipeline_mode = #tpu.pipeline_mode<synchronous>, transform_indices = @transform_14, window_bounds = array<i64: 29, 1>}, {transform_indices = @transform_15, window_bounds = array<i64: 1, 29, 128>}]} {
    %c0 = arith.constant 0 : index
    %c0_0 = arith.constant 0 : index
    %c0_1 = arith.constant 0 : index
    %0 = vector.load %arg2[%c0, %c0_0, %c0_1] : memref<1x1x128xf32, #tpu.memory_space<vmem>>, vector<1x1x128xf32>
    %1 = vector.shape_cast %0 : vector<1x1x128xf32> to vector<1x128xf32>
    %c0_2 = arith.constant 0 : index
    %c0_3 = arith.constant 0 : index
    %c0_4 = arith.constant 0 : index
    %2 = vector.load %arg1[%c0_2, %c0_3, %c0_4] : memref<1x1x128xf32, #tpu.memory_space<vmem>>, vector<1x1x128xf32>
    %3 = vector.shape_cast %2 : vector<1x1x128xf32> to vector<1x128xf32>
    %c0_5 = arith.constant 0 : index
    %c0_6 = arith.constant 0 : index
    %4 = vector.load %arg4[%c0_5, %c0_6] : memref<4x1xf32, #tpu.memory_space<vmem>>, vector<4x1xf32>
    %5 = vector.broadcast %4 : vector<4x1xf32> to vector<4x128xf32>
    %6 = vector.broadcast %3 : vector<1x128xf32> to vector<4x128xf32>
    %7 = arith.mulf %5, %6 : vector<4x128xf32>
    %c0_7 = arith.constant 0 : index
    %c0_8 = arith.constant 0 : index
    %8 = vector.load %arg5[%c0_7, %c0_8] : memref<4x1xf32, #tpu.memory_space<vmem>>, vector<4x1xf32>
    %9 = vector.broadcast %8 : vector<4x1xf32> to vector<4x128xf32>
    %10 = arith.addf %7, %9 : vector<4x128xf32>
    %c0_9 = arith.constant 0 : index
    %c0_10 = arith.constant 0 : index
    %c0_11 = arith.constant 0 : index
    %11 = vector.load %arg3[%c0_9, %c0_10, %c0_11] : memref<1x4x128xf32, #tpu.memory_space<vmem>>, vector<1x4x128xf32>
    %12 = vector.shape_cast %11 : vector<1x4x128xf32> to vector<4x128xf32>
    %13 = arith.addf %10, %12 : vector<4x128xf32>
    %14 = tpu.iota {dimensions = array<i32: 1>} : vector<1x128xi32>
    %15 = vector.broadcast %1 : vector<1x128xf32> to vector<4x128xf32>
    %16 = arith.mulf %13, %15 : vector<4x128xf32>
    %c0_12 = arith.constant 0 : index
    %c0_13 = arith.constant 0 : index
    %c0_14 = arith.constant 0 : index
    %17 = vector.load %arg6[%c0_12, %c0_13, %c0_14] : memref<3x4x3xf32, #tpu.memory_space<vmem>>, vector<1x4x3xf32>
    %18 = vector.shape_cast %17 : vector<1x4x3xf32> to vector<4x3xf32>
    %19 = vector.extract_strided_slice %18 {offsets = [0, 1], sizes = [4, 1], strides = [1, 1]} : vector<4x3xf32> to vector<4x1xf32>
    %20 = vector.broadcast %19 : vector<4x1xf32> to vector<4x128xf32>
    %21 = arith.mulf %20, %16 : vector<4x128xf32>
    %c1_i32 = arith.constant 1 : i32
    %22 = tpu.dynamic_rotate %16 by %c1_i32 dim 1 : vector<4x128xf32>, i32 -> vector<4x128xf32>
    %c-1_i32 = arith.constant -1 : i32
    %23 = vector.broadcast %c-1_i32 : i32 to vector<1x128xi32>
    %24 = arith.addi %14, %23 : vector<1x128xi32>
    %c0_i32 = arith.constant 0 : i32
    %25 = vector.broadcast %c0_i32 : i32 to vector<1x128xi32>
    %26 = arith.cmpi sge, %24, %25 : vector<1x128xi32>
    %c-1_i32_15 = arith.constant -1 : i32
    %27 = vector.broadcast %c-1_i32_15 : i32 to vector<1x128xi32>
    %28 = arith.addi %14, %27 : vector<1x128xi32>
    %c128_i32 = arith.constant 128 : i32
    %29 = vector.broadcast %c128_i32 : i32 to vector<1x128xi32>
    %30 = arith.cmpi slt, %28, %29 : vector<1x128xi32>
    %31 = arith.andi %26, %30 : vector<1x128xi1>
    %cst = arith.constant 0.000000e+00 : f32
    %32 = vector.shape_cast %31 : vector<1x128xi1> to vector<1x128xi1>
    %33 = vector.broadcast %32 : vector<1x128xi1> to vector<4x128xi1>
    %34 = vector.broadcast %cst : f32 to vector<4x128xf32>
    %35 = arith.select %33, %22, %34 : vector<4x128xi1>, vector<4x128xf32>
    %36 = vector.extract_strided_slice %18 {offsets = [0, 0], sizes = [4, 1], strides = [1, 1]} : vector<4x3xf32> to vector<4x1xf32>
    %37 = vector.broadcast %36 : vector<4x1xf32> to vector<4x128xf32>
    %38 = arith.mulf %37, %35 : vector<4x128xf32>
    %39 = arith.addf %21, %38 : vector<4x128xf32>
    %c127_i32 = arith.constant 127 : i32
    %40 = tpu.dynamic_rotate %16 by %c127_i32 dim 1 : vector<4x128xf32>, i32 -> vector<4x128xf32>
    %c1_i32_16 = arith.constant 1 : i32
    %41 = vector.broadcast %c1_i32_16 : i32 to vector<1x128xi32>
    %42 = arith.addi %14, %41 : vector<1x128xi32>
    %c0_i32_17 = arith.constant 0 : i32
    %43 = vector.broadcast %c0_i32_17 : i32 to vector<1x128xi32>
    %44 = arith.cmpi sge, %42, %43 : vector<1x128xi32>
    %c1_i32_18 = arith.constant 1 : i32
    %45 = vector.broadcast %c1_i32_18 : i32 to vector<1x128xi32>
    %46 = arith.addi %14, %45 : vector<1x128xi32>
    %c128_i32_19 = arith.constant 128 : i32
    %47 = vector.broadcast %c128_i32_19 : i32 to vector<1x128xi32>
    %48 = arith.cmpi slt, %46, %47 : vector<1x128xi32>
    %49 = arith.andi %44, %48 : vector<1x128xi1>
    %cst_20 = arith.constant 0.000000e+00 : f32
    %50 = vector.shape_cast %49 : vector<1x128xi1> to vector<1x128xi1>
    %51 = vector.broadcast %50 : vector<1x128xi1> to vector<4x128xi1>
    %52 = vector.broadcast %cst_20 : f32 to vector<4x128xf32>
    %53 = arith.select %51, %40, %52 : vector<4x128xi1>, vector<4x128xf32>
    %54 = vector.extract_strided_slice %18 {offsets = [0, 2], sizes = [4, 1], strides = [1, 1]} : vector<4x3xf32> to vector<4x1xf32>
    %55 = vector.broadcast %54 : vector<4x1xf32> to vector<4x128xf32>
    %56 = arith.mulf %55, %53 : vector<4x128xf32>
    %57 = arith.addf %39, %56 : vector<4x128xf32>
    %c0_21 = arith.constant 0 : index
    %c0_22 = arith.constant 0 : index
    %c0_23 = arith.constant 0 : index
    %58 = vector.load %arg7[%c0_21, %c0_22, %c0_23] : memref<3x4x1xf32, #tpu.memory_space<vmem>>, vector<1x4x1xf32>
    %59 = vector.shape_cast %58 : vector<1x4x1xf32> to vector<4x1xf32>
    %60 = vector.broadcast %59 : vector<4x1xf32> to vector<4x128xf32>
    %61 = arith.addf %57, %60 : vector<4x128xf32>
    %c0_24 = arith.constant 0 : index
    %c0_25 = arith.constant 0 : index
    %c0_26 = arith.constant 0 : index
    %62 = vector.load %arg10[%c0_24, %c0_25, %c0_26] : memref<3x4x1xf32, #tpu.memory_space<vmem>>, vector<1x4x1xf32>
    %63 = vector.shape_cast %62 : vector<1x4x1xf32> to vector<4x1xf32>
    %c0_27 = arith.constant 0 : index
    %c0_28 = arith.constant 0 : index
    %c0_29 = arith.constant 0 : index
    %64 = vector.load %arg11[%c0_27, %c0_28, %c0_29] : memref<3x4x1xf32, #tpu.memory_space<vmem>>, vector<1x4x1xf32>
    %65 = vector.shape_cast %64 : vector<1x4x1xf32> to vector<4x1xf32>
    %cst_30 = arith.constant dense<0.000000e+00> : vector<128xf32>
    %66 = vector.multi_reduction <add>, %61, %cst_30 [0] : vector<4x128xf32> to vector<128xf32>
    %67 = vector.shape_cast %66 : vector<128xf32> to vector<1x128xf32>
    %cst_31 = arith.constant 4.000000e+00 : f32
    %68 = vector.broadcast %cst_31 : f32 to vector<1x128xf32>
    %69 = arith.divf %67, %68 : vector<1x128xf32>
    %70 = vector.broadcast %69 : vector<1x128xf32> to vector<4x128xf32>
    %71 = arith.subf %61, %70 : vector<4x128xf32>
    %72 = arith.mulf %71, %71 : vector<4x128xf32>
    %cst_32 = arith.constant dense<0.000000e+00> : vector<128xf32>
    %73 = vector.multi_reduction <add>, %72, %cst_32 [0] : vector<4x128xf32> to vector<128xf32>
    %74 = vector.shape_cast %73 : vector<128xf32> to vector<1x128xf32>
    %cst_33 = arith.constant 4.000000e+00 : f32
    %75 = vector.broadcast %cst_33 : f32 to vector<1x128xf32>
    %76 = arith.divf %74, %75 : vector<1x128xf32>
    %77 = vector.broadcast %69 : vector<1x128xf32> to vector<4x128xf32>
    %78 = arith.subf %61, %77 : vector<4x128xf32>
    %cst_34 = arith.constant 9.99999974E-6 : f32
    %79 = vector.broadcast %cst_34 : f32 to vector<1x128xf32>
    %80 = arith.addf %76, %79 : vector<1x128xf32>
    %81 = math.rsqrt %80 : vector<1x128xf32>
    %82 = vector.broadcast %81 : vector<1x128xf32> to vector<4x128xf32>
    %83 = arith.mulf %78, %82 : vector<4x128xf32>
    %84 = vector.broadcast %63 : vector<4x1xf32> to vector<4x128xf32>
    %85 = arith.mulf %83, %84 : vector<4x128xf32>
    %86 = vector.broadcast %65 : vector<4x1xf32> to vector<4x128xf32>
    %87 = arith.addf %85, %86 : vector<4x128xf32>
    %cst_35 = arith.constant 5.000000e-01 : f32
    %88 = vector.broadcast %cst_35 : f32 to vector<4x128xf32>
    %89 = arith.mulf %88, %87 : vector<4x128xf32>
    %cst_36 = arith.constant 0.707106769 : f32
    %90 = vector.broadcast %cst_36 : f32 to vector<4x128xf32>
    %91 = arith.mulf %87, %90 : vector<4x128xf32>
    %cst_37 = arith.constant 0.000000e+00 : f32
    %92 = vector.broadcast %cst_37 : f32 to vector<4x128xf32>
    %93 = arith.cmpf oge, %91, %92 : vector<4x128xf32>
    %cst_38 = arith.constant 1.000000e+00 : f32
    %cst_39 = arith.constant -1.000000e+00 : f32
    %94 = vector.broadcast %cst_38 : f32 to vector<4x128xf32>
    %95 = vector.broadcast %cst_39 : f32 to vector<4x128xf32>
    %96 = arith.select %93, %94, %95 : vector<4x128xi1>, vector<4x128xf32>
    %97 = math.absf %91 : vector<4x128xf32>
    %cst_40 = arith.constant 0.327591091 : f32
    %98 = vector.broadcast %cst_40 : f32 to vector<4x128xf32>
    %99 = arith.mulf %98, %97 : vector<4x128xf32>
    %cst_41 = arith.constant 1.000000e+00 : f32
    %100 = vector.broadcast %cst_41 : f32 to vector<4x128xf32>
    %101 = arith.addf %100, %99 : vector<4x128xf32>
    %cst_42 = arith.constant 1.000000e+00 : f32
    %102 = vector.broadcast %cst_42 : f32 to vector<4x128xf32>
    %103 = arith.divf %102, %101 : vector<4x128xf32>
    %cst_43 = arith.constant 1.06140542 : f32
    %104 = vector.broadcast %cst_43 : f32 to vector<4x128xf32>
    %105 = arith.mulf %104, %103 : vector<4x128xf32>
    %cst_44 = arith.constant -1.45315206 : f32
    %106 = vector.broadcast %cst_44 : f32 to vector<4x128xf32>
    %107 = arith.addf %105, %106 : vector<4x128xf32>
    %108 = arith.mulf %107, %103 : vector<4x128xf32>
    %cst_45 = arith.constant 1.42141378 : f32
    %109 = vector.broadcast %cst_45 : f32 to vector<4x128xf32>
    %110 = arith.addf %108, %109 : vector<4x128xf32>
    %111 = arith.mulf %110, %103 : vector<4x128xf32>
    %cst_46 = arith.constant -0.284496725 : f32
    %112 = vector.broadcast %cst_46 : f32 to vector<4x128xf32>
    %113 = arith.addf %111, %112 : vector<4x128xf32>
    %114 = arith.mulf %113, %103 : vector<4x128xf32>
    %cst_47 = arith.constant 0.254829586 : f32
    %115 = vector.broadcast %cst_47 : f32 to vector<4x128xf32>
    %116 = arith.addf %114, %115 : vector<4x128xf32>
    %117 = arith.mulf %116, %103 : vector<4x128xf32>
    %cst_48 = arith.constant 0.000000e+00 : f32
    %118 = vector.broadcast %cst_48 : f32 to vector<4x128xf32>
    %119 = arith.subf %118, %97 : vector<4x128xf32>
    %120 = arith.mulf %119, %97 : vector<4x128xf32>
    %121 = math.exp %120 : vector<4x128xf32>
    %122 = arith.mulf %117, %121 : vector<4x128xf32>
    %cst_49 = arith.constant 1.000000e+00 : f32
    %123 = vector.broadcast %cst_49 : f32 to vector<4x128xf32>
    %124 = arith.subf %123, %122 : vector<4x128xf32>
    %125 = arith.mulf %96, %124 : vector<4x128xf32>
    %cst_50 = arith.constant 1.000000e+00 : f32
    %126 = vector.broadcast %cst_50 : f32 to vector<4x128xf32>
    %127 = arith.addf %126, %125 : vector<4x128xf32>
    %128 = arith.mulf %89, %127 : vector<4x128xf32>
    %c0_51 = arith.constant 0 : index
    %c0_52 = arith.constant 0 : index
    %c0_53 = arith.constant 0 : index
    %129 = vector.load %arg8[%c0_51, %c0_52, %c0_53] : memref<3x4x4xf32, #tpu.memory_space<vmem>>, vector<1x4x4xf32>
    %130 = vector.shape_cast %129 : vector<1x4x4xf32> to vector<4x4xf32>
    %cst_54 = arith.constant dense<0.000000e+00> : vector<4x128xf32>
    %131 = tpu.matmul %130, %128, %cst_54 {dimension_numbers = #tpu.dot_dimension_numbers<[1], [0], [0], [1], [0, 0, 1, 1], [], []>} : vector<4x4xf32>, vector<4x128xf32>, vector<4x128xf32> -> vector<4x128xf32>
    %c0_55 = arith.constant 0 : index
    %c0_56 = arith.constant 0 : index
    %c0_57 = arith.constant 0 : index
    %132 = vector.load %arg9[%c0_55, %c0_56, %c0_57] : memref<3x4x1xf32, #tpu.memory_space<vmem>>, vector<1x4x1xf32>
    %133 = vector.shape_cast %132 : vector<1x4x1xf32> to vector<4x1xf32>
    %134 = vector.broadcast %133 : vector<4x1xf32> to vector<4x128xf32>
    %135 = arith.addf %131, %134 : vector<4x128xf32>
    %c0_58 = arith.constant 0 : index
    %c0_59 = arith.constant 0 : index
    %c0_60 = arith.constant 0 : index
    %136 = vector.load %arg12[%c0_58, %c0_59, %c0_60] : memref<3x4x1xf32, #tpu.memory_space<vmem>>, vector<1x4x1xf32>
    %137 = vector.shape_cast %136 : vector<1x4x1xf32> to vector<4x1xf32>
    %c0_61 = arith.constant 0 : index
    %c0_62 = arith.constant 0 : index
    %c0_63 = arith.constant 0 : index
    %138 = vector.load %arg13[%c0_61, %c0_62, %c0_63] : memref<3x4x1xf32, #tpu.memory_space<vmem>>, vector<1x4x1xf32>
    %139 = vector.shape_cast %138 : vector<1x4x1xf32> to vector<4x1xf32>
    %cst_64 = arith.constant dense<0.000000e+00> : vector<128xf32>
    %140 = vector.multi_reduction <add>, %135, %cst_64 [0] : vector<4x128xf32> to vector<128xf32>
    %141 = vector.shape_cast %140 : vector<128xf32> to vector<1x128xf32>
    %cst_65 = arith.constant 4.000000e+00 : f32
    %142 = vector.broadcast %cst_65 : f32 to vector<1x128xf32>
    %143 = arith.divf %141, %142 : vector<1x128xf32>
    %144 = vector.broadcast %143 : vector<1x128xf32> to vector<4x128xf32>
    %145 = arith.subf %135, %144 : vector<4x128xf32>
    %146 = arith.mulf %145, %145 : vector<4x128xf32>
    %cst_66 = arith.constant dense<0.000000e+00> : vector<128xf32>
    %147 = vector.multi_reduction <add>, %146, %cst_66 [0] : vector<4x128xf32> to vector<128xf32>
    %148 = vector.shape_cast %147 : vector<128xf32> to vector<1x128xf32>
    %cst_67 = arith.constant 4.000000e+00 : f32
    %149 = vector.broadcast %cst_67 : f32 to vector<1x128xf32>
    %150 = arith.divf %148, %149 : vector<1x128xf32>
    %151 = vector.broadcast %143 : vector<1x128xf32> to vector<4x128xf32>
    %152 = arith.subf %135, %151 : vector<4x128xf32>
    %cst_68 = arith.constant 9.99999974E-6 : f32
    %153 = vector.broadcast %cst_68 : f32 to vector<1x128xf32>
    %154 = arith.addf %150, %153 : vector<1x128xf32>
    %155 = math.rsqrt %154 : vector<1x128xf32>
    %156 = vector.broadcast %155 : vector<1x128xf32> to vector<4x128xf32>
    %157 = arith.mulf %152, %156 : vector<4x128xf32>
    %158 = vector.broadcast %137 : vector<4x1xf32> to vector<4x128xf32>
    %159 = arith.mulf %157, %158 : vector<4x128xf32>
    %160 = vector.broadcast %139 : vector<4x1xf32> to vector<4x128xf32>
    %161 = arith.addf %159, %160 : vector<4x128xf32>
    %cst_69 = arith.constant 5.000000e-01 : f32
    %162 = vector.broadcast %cst_69 : f32 to vector<4x128xf32>
    %163 = arith.mulf %162, %161 : vector<4x128xf32>
    %cst_70 = arith.constant 0.707106769 : f32
    %164 = vector.broadcast %cst_70 : f32 to vector<4x128xf32>
    %165 = arith.mulf %161, %164 : vector<4x128xf32>
    %cst_71 = arith.constant 0.000000e+00 : f32
    %166 = vector.broadcast %cst_71 : f32 to vector<4x128xf32>
    %167 = arith.cmpf oge, %165, %166 : vector<4x128xf32>
    %cst_72 = arith.constant 1.000000e+00 : f32
    %cst_73 = arith.constant -1.000000e+00 : f32
    %168 = vector.broadcast %cst_72 : f32 to vector<4x128xf32>
    %169 = vector.broadcast %cst_73 : f32 to vector<4x128xf32>
    %170 = arith.select %167, %168, %169 : vector<4x128xi1>, vector<4x128xf32>
    %171 = math.absf %165 : vector<4x128xf32>
    %cst_74 = arith.constant 0.327591091 : f32
    %172 = vector.broadcast %cst_74 : f32 to vector<4x128xf32>
    %173 = arith.mulf %172, %171 : vector<4x128xf32>
    %cst_75 = arith.constant 1.000000e+00 : f32
    %174 = vector.broadcast %cst_75 : f32 to vector<4x128xf32>
    %175 = arith.addf %174, %173 : vector<4x128xf32>
    %cst_76 = arith.constant 1.000000e+00 : f32
    %176 = vector.broadcast %cst_76 : f32 to vector<4x128xf32>
    %177 = arith.divf %176, %175 : vector<4x128xf32>
    %cst_77 = arith.constant 1.06140542 : f32
    %178 = vector.broadcast %cst_77 : f32 to vector<4x128xf32>
    %179 = arith.mulf %178, %177 : vector<4x128xf32>
    %cst_78 = arith.constant -1.45315206 : f32
    %180 = vector.broadcast %cst_78 : f32 to vector<4x128xf32>
    %181 = arith.addf %179, %180 : vector<4x128xf32>
    %182 = arith.mulf %181, %177 : vector<4x128xf32>
    %cst_79 = arith.constant 1.42141378 : f32
    %183 = vector.broadcast %cst_79 : f32 to vector<4x128xf32>
    %184 = arith.addf %182, %183 : vector<4x128xf32>
    %185 = arith.mulf %184, %177 : vector<4x128xf32>
    %cst_80 = arith.constant -0.284496725 : f32
    %186 = vector.broadcast %cst_80 : f32 to vector<4x128xf32>
    %187 = arith.addf %185, %186 : vector<4x128xf32>
    %188 = arith.mulf %187, %177 : vector<4x128xf32>
    %cst_81 = arith.constant 0.254829586 : f32
    %189 = vector.broadcast %cst_81 : f32 to vector<4x128xf32>
    %190 = arith.addf %188, %189 : vector<4x128xf32>
    %191 = arith.mulf %190, %177 : vector<4x128xf32>
    %cst_82 = arith.constant 0.000000e+00 : f32
    %192 = vector.broadcast %cst_82 : f32 to vector<4x128xf32>
    %193 = arith.subf %192, %171 : vector<4x128xf32>
    %194 = arith.mulf %193, %171 : vector<4x128xf32>
    %195 = math.exp %194 : vector<4x128xf32>
    %196 = arith.mulf %191, %195 : vector<4x128xf32>
    %cst_83 = arith.constant 1.000000e+00 : f32
    %197 = vector.broadcast %cst_83 : f32 to vector<4x128xf32>
    %198 = arith.subf %197, %196 : vector<4x128xf32>
    %199 = arith.mulf %170, %198 : vector<4x128xf32>
    %cst_84 = arith.constant 1.000000e+00 : f32
    %200 = vector.broadcast %cst_84 : f32 to vector<4x128xf32>
    %201 = arith.addf %200, %199 : vector<4x128xf32>
    %202 = arith.mulf %163, %201 : vector<4x128xf32>
    %203 = arith.addf %13, %202 : vector<4x128xf32>
    %204 = vector.broadcast %1 : vector<1x128xf32> to vector<4x128xf32>
    %205 = arith.mulf %203, %204 : vector<4x128xf32>
    %c1 = arith.constant 1 : index
    %c0_85 = arith.constant 0 : index
    %c0_86 = arith.constant 0 : index
    %206 = vector.load %arg6[%c1, %c0_85, %c0_86] : memref<3x4x3xf32, #tpu.memory_space<vmem>>, vector<1x4x3xf32>
    %207 = vector.shape_cast %206 : vector<1x4x3xf32> to vector<4x3xf32>
    %208 = vector.extract_strided_slice %207 {offsets = [0, 1], sizes = [4, 1], strides = [1, 1]} : vector<4x3xf32> to vector<4x1xf32>
    %209 = vector.broadcast %208 : vector<4x1xf32> to vector<4x128xf32>
    %210 = arith.mulf %209, %205 : vector<4x128xf32>
    %c3_i32 = arith.constant 3 : i32
    %211 = tpu.dynamic_rotate %205 by %c3_i32 dim 1 : vector<4x128xf32>, i32 -> vector<4x128xf32>
    %c-3_i32 = arith.constant -3 : i32
    %212 = vector.broadcast %c-3_i32 : i32 to vector<1x128xi32>
    %213 = arith.addi %14, %212 : vector<1x128xi32>
    %c0_i32_87 = arith.constant 0 : i32
    %214 = vector.broadcast %c0_i32_87 : i32 to vector<1x128xi32>
    %215 = arith.cmpi sge, %213, %214 : vector<1x128xi32>
    %c-3_i32_88 = arith.constant -3 : i32
    %216 = vector.broadcast %c-3_i32_88 : i32 to vector<1x128xi32>
    %217 = arith.addi %14, %216 : vector<1x128xi32>
    %c128_i32_89 = arith.constant 128 : i32
    %218 = vector.broadcast %c128_i32_89 : i32 to vector<1x128xi32>
    %219 = arith.cmpi slt, %217, %218 : vector<1x128xi32>
    %220 = arith.andi %215, %219 : vector<1x128xi1>
    %cst_90 = arith.constant 0.000000e+00 : f32
    %221 = vector.shape_cast %220 : vector<1x128xi1> to vector<1x128xi1>
    %222 = vector.broadcast %221 : vector<1x128xi1> to vector<4x128xi1>
    %223 = vector.broadcast %cst_90 : f32 to vector<4x128xf32>
    %224 = arith.select %222, %211, %223 : vector<4x128xi1>, vector<4x128xf32>
    %225 = vector.extract_strided_slice %207 {offsets = [0, 0], sizes = [4, 1], strides = [1, 1]} : vector<4x3xf32> to vector<4x1xf32>
    %226 = vector.broadcast %225 : vector<4x1xf32> to vector<4x128xf32>
    %227 = arith.mulf %226, %224 : vector<4x128xf32>
    %228 = arith.addf %210, %227 : vector<4x128xf32>
    %c125_i32 = arith.constant 125 : i32
    %229 = tpu.dynamic_rotate %205 by %c125_i32 dim 1 : vector<4x128xf32>, i32 -> vector<4x128xf32>
    %c3_i32_91 = arith.constant 3 : i32
    %230 = vector.broadcast %c3_i32_91 : i32 to vector<1x128xi32>
    %231 = arith.addi %14, %230 : vector<1x128xi32>
    %c0_i32_92 = arith.constant 0 : i32
    %232 = vector.broadcast %c0_i32_92 : i32 to vector<1x128xi32>
    %233 = arith.cmpi sge, %231, %232 : vector<1x128xi32>
    %c3_i32_93 = arith.constant 3 : i32
    %234 = vector.broadcast %c3_i32_93 : i32 to vector<1x128xi32>
    %235 = arith.addi %14, %234 : vector<1x128xi32>
    %c128_i32_94 = arith.constant 128 : i32
    %236 = vector.broadcast %c128_i32_94 : i32 to vector<1x128xi32>
    %237 = arith.cmpi slt, %235, %236 : vector<1x128xi32>
    %238 = arith.andi %233, %237 : vector<1x128xi1>
    %cst_95 = arith.constant 0.000000e+00 : f32
    %239 = vector.shape_cast %238 : vector<1x128xi1> to vector<1x128xi1>
    %240 = vector.broadcast %239 : vector<1x128xi1> to vector<4x128xi1>
    %241 = vector.broadcast %cst_95 : f32 to vector<4x128xf32>
    %242 = arith.select %240, %229, %241 : vector<4x128xi1>, vector<4x128xf32>
    %243 = vector.extract_strided_slice %207 {offsets = [0, 2], sizes = [4, 1], strides = [1, 1]} : vector<4x3xf32> to vector<4x1xf32>
    %244 = vector.broadcast %243 : vector<4x1xf32> to vector<4x128xf32>
    %245 = arith.mulf %244, %242 : vector<4x128xf32>
    %246 = arith.addf %228, %245 : vector<4x128xf32>
    %c1_96 = arith.constant 1 : index
    %c0_97 = arith.constant 0 : index
    %c0_98 = arith.constant 0 : index
    %247 = vector.load %arg7[%c1_96, %c0_97, %c0_98] : memref<3x4x1xf32, #tpu.memory_space<vmem>>, vector<1x4x1xf32>
    %248 = vector.shape_cast %247 : vector<1x4x1xf32> to vector<4x1xf32>
    %249 = vector.broadcast %248 : vector<4x1xf32> to vector<4x128xf32>
    %250 = arith.addf %246, %249 : vector<4x128xf32>
    %c1_99 = arith.constant 1 : index
    %c0_100 = arith.constant 0 : index
    %c0_101 = arith.constant 0 : index
    %251 = vector.load %arg10[%c1_99, %c0_100, %c0_101] : memref<3x4x1xf32, #tpu.memory_space<vmem>>, vector<1x4x1xf32>
    %252 = vector.shape_cast %251 : vector<1x4x1xf32> to vector<4x1xf32>
    %c1_102 = arith.constant 1 : index
    %c0_103 = arith.constant 0 : index
    %c0_104 = arith.constant 0 : index
    %253 = vector.load %arg11[%c1_102, %c0_103, %c0_104] : memref<3x4x1xf32, #tpu.memory_space<vmem>>, vector<1x4x1xf32>
    %254 = vector.shape_cast %253 : vector<1x4x1xf32> to vector<4x1xf32>
    %cst_105 = arith.constant dense<0.000000e+00> : vector<128xf32>
    %255 = vector.multi_reduction <add>, %250, %cst_105 [0] : vector<4x128xf32> to vector<128xf32>
    %256 = vector.shape_cast %255 : vector<128xf32> to vector<1x128xf32>
    %cst_106 = arith.constant 4.000000e+00 : f32
    %257 = vector.broadcast %cst_106 : f32 to vector<1x128xf32>
    %258 = arith.divf %256, %257 : vector<1x128xf32>
    %259 = vector.broadcast %258 : vector<1x128xf32> to vector<4x128xf32>
    %260 = arith.subf %250, %259 : vector<4x128xf32>
    %261 = arith.mulf %260, %260 : vector<4x128xf32>
    %cst_107 = arith.constant dense<0.000000e+00> : vector<128xf32>
    %262 = vector.multi_reduction <add>, %261, %cst_107 [0] : vector<4x128xf32> to vector<128xf32>
    %263 = vector.shape_cast %262 : vector<128xf32> to vector<1x128xf32>
    %cst_108 = arith.constant 4.000000e+00 : f32
    %264 = vector.broadcast %cst_108 : f32 to vector<1x128xf32>
    %265 = arith.divf %263, %264 : vector<1x128xf32>
    %266 = vector.broadcast %258 : vector<1x128xf32> to vector<4x128xf32>
    %267 = arith.subf %250, %266 : vector<4x128xf32>
    %cst_109 = arith.constant 9.99999974E-6 : f32
    %268 = vector.broadcast %cst_109 : f32 to vector<1x128xf32>
    %269 = arith.addf %265, %268 : vector<1x128xf32>
    %270 = math.rsqrt %269 : vector<1x128xf32>
    %271 = vector.broadcast %270 : vector<1x128xf32> to vector<4x128xf32>
    %272 = arith.mulf %267, %271 : vector<4x128xf32>
    %273 = vector.broadcast %252 : vector<4x1xf32> to vector<4x128xf32>
    %274 = arith.mulf %272, %273 : vector<4x128xf32>
    %275 = vector.broadcast %254 : vector<4x1xf32> to vector<4x128xf32>
    %276 = arith.addf %274, %275 : vector<4x128xf32>
    %cst_110 = arith.constant 5.000000e-01 : f32
    %277 = vector.broadcast %cst_110 : f32 to vector<4x128xf32>
    %278 = arith.mulf %277, %276 : vector<4x128xf32>
    %cst_111 = arith.constant 0.707106769 : f32
    %279 = vector.broadcast %cst_111 : f32 to vector<4x128xf32>
    %280 = arith.mulf %276, %279 : vector<4x128xf32>
    %cst_112 = arith.constant 0.000000e+00 : f32
    %281 = vector.broadcast %cst_112 : f32 to vector<4x128xf32>
    %282 = arith.cmpf oge, %280, %281 : vector<4x128xf32>
    %cst_113 = arith.constant 1.000000e+00 : f32
    %cst_114 = arith.constant -1.000000e+00 : f32
    %283 = vector.broadcast %cst_113 : f32 to vector<4x128xf32>
    %284 = vector.broadcast %cst_114 : f32 to vector<4x128xf32>
    %285 = arith.select %282, %283, %284 : vector<4x128xi1>, vector<4x128xf32>
    %286 = math.absf %280 : vector<4x128xf32>
    %cst_115 = arith.constant 0.327591091 : f32
    %287 = vector.broadcast %cst_115 : f32 to vector<4x128xf32>
    %288 = arith.mulf %287, %286 : vector<4x128xf32>
    %cst_116 = arith.constant 1.000000e+00 : f32
    %289 = vector.broadcast %cst_116 : f32 to vector<4x128xf32>
    %290 = arith.addf %289, %288 : vector<4x128xf32>
    %cst_117 = arith.constant 1.000000e+00 : f32
    %291 = vector.broadcast %cst_117 : f32 to vector<4x128xf32>
    %292 = arith.divf %291, %290 : vector<4x128xf32>
    %cst_118 = arith.constant 1.06140542 : f32
    %293 = vector.broadcast %cst_118 : f32 to vector<4x128xf32>
    %294 = arith.mulf %293, %292 : vector<4x128xf32>
    %cst_119 = arith.constant -1.45315206 : f32
    %295 = vector.broadcast %cst_119 : f32 to vector<4x128xf32>
    %296 = arith.addf %294, %295 : vector<4x128xf32>
    %297 = arith.mulf %296, %292 : vector<4x128xf32>
    %cst_120 = arith.constant 1.42141378 : f32
    %298 = vector.broadcast %cst_120 : f32 to vector<4x128xf32>
    %299 = arith.addf %297, %298 : vector<4x128xf32>
    %300 = arith.mulf %299, %292 : vector<4x128xf32>
    %cst_121 = arith.constant -0.284496725 : f32
    %301 = vector.broadcast %cst_121 : f32 to vector<4x128xf32>
    %302 = arith.addf %300, %301 : vector<4x128xf32>
    %303 = arith.mulf %302, %292 : vector<4x128xf32>
    %cst_122 = arith.constant 0.254829586 : f32
    %304 = vector.broadcast %cst_122 : f32 to vector<4x128xf32>
    %305 = arith.addf %303, %304 : vector<4x128xf32>
    %306 = arith.mulf %305, %292 : vector<4x128xf32>
    %cst_123 = arith.constant 0.000000e+00 : f32
    %307 = vector.broadcast %cst_123 : f32 to vector<4x128xf32>
    %308 = arith.subf %307, %286 : vector<4x128xf32>
    %309 = arith.mulf %308, %286 : vector<4x128xf32>
    %310 = math.exp %309 : vector<4x128xf32>
    %311 = arith.mulf %306, %310 : vector<4x128xf32>
    %cst_124 = arith.constant 1.000000e+00 : f32
    %312 = vector.broadcast %cst_124 : f32 to vector<4x128xf32>
    %313 = arith.subf %312, %311 : vector<4x128xf32>
    %314 = arith.mulf %285, %313 : vector<4x128xf32>
    %cst_125 = arith.constant 1.000000e+00 : f32
    %315 = vector.broadcast %cst_125 : f32 to vector<4x128xf32>
    %316 = arith.addf %315, %314 : vector<4x128xf32>
    %317 = arith.mulf %278, %316 : vector<4x128xf32>
    %c1_126 = arith.constant 1 : index
    %c0_127 = arith.constant 0 : index
    %c0_128 = arith.constant 0 : index
    %318 = vector.load %arg8[%c1_126, %c0_127, %c0_128] : memref<3x4x4xf32, #tpu.memory_space<vmem>>, vector<1x4x4xf32>
    %319 = vector.shape_cast %318 : vector<1x4x4xf32> to vector<4x4xf32>
    %cst_129 = arith.constant dense<0.000000e+00> : vector<4x128xf32>
    %320 = tpu.matmul %319, %317, %cst_129 {dimension_numbers = #tpu.dot_dimension_numbers<[1], [0], [0], [1], [0, 0, 1, 1], [], []>} : vector<4x4xf32>, vector<4x128xf32>, vector<4x128xf32> -> vector<4x128xf32>
    %c1_130 = arith.constant 1 : index
    %c0_131 = arith.constant 0 : index
    %c0_132 = arith.constant 0 : index
    %321 = vector.load %arg9[%c1_130, %c0_131, %c0_132] : memref<3x4x1xf32, #tpu.memory_space<vmem>>, vector<1x4x1xf32>
    %322 = vector.shape_cast %321 : vector<1x4x1xf32> to vector<4x1xf32>
    %323 = vector.broadcast %322 : vector<4x1xf32> to vector<4x128xf32>
    %324 = arith.addf %320, %323 : vector<4x128xf32>
    %c1_133 = arith.constant 1 : index
    %c0_134 = arith.constant 0 : index
    %c0_135 = arith.constant 0 : index
    %325 = vector.load %arg12[%c1_133, %c0_134, %c0_135] : memref<3x4x1xf32, #tpu.memory_space<vmem>>, vector<1x4x1xf32>
    %326 = vector.shape_cast %325 : vector<1x4x1xf32> to vector<4x1xf32>
    %c1_136 = arith.constant 1 : index
    %c0_137 = arith.constant 0 : index
    %c0_138 = arith.constant 0 : index
    %327 = vector.load %arg13[%c1_136, %c0_137, %c0_138] : memref<3x4x1xf32, #tpu.memory_space<vmem>>, vector<1x4x1xf32>
    %328 = vector.shape_cast %327 : vector<1x4x1xf32> to vector<4x1xf32>
    %cst_139 = arith.constant dense<0.000000e+00> : vector<128xf32>
    %329 = vector.multi_reduction <add>, %324, %cst_139 [0] : vector<4x128xf32> to vector<128xf32>
    %330 = vector.shape_cast %329 : vector<128xf32> to vector<1x128xf32>
    %cst_140 = arith.constant 4.000000e+00 : f32
    %331 = vector.broadcast %cst_140 : f32 to vector<1x128xf32>
    %332 = arith.divf %330, %331 : vector<1x128xf32>
    %333 = vector.broadcast %332 : vector<1x128xf32> to vector<4x128xf32>
    %334 = arith.subf %324, %333 : vector<4x128xf32>
    %335 = arith.mulf %334, %334 : vector<4x128xf32>
    %cst_141 = arith.constant dense<0.000000e+00> : vector<128xf32>
    %336 = vector.multi_reduction <add>, %335, %cst_141 [0] : vector<4x128xf32> to vector<128xf32>
    %337 = vector.shape_cast %336 : vector<128xf32> to vector<1x128xf32>
    %cst_142 = arith.constant 4.000000e+00 : f32
    %338 = vector.broadcast %cst_142 : f32 to vector<1x128xf32>
    %339 = arith.divf %337, %338 : vector<1x128xf32>
    %340 = vector.broadcast %332 : vector<1x128xf32> to vector<4x128xf32>
    %341 = arith.subf %324, %340 : vector<4x128xf32>
    %cst_143 = arith.constant 9.99999974E-6 : f32
    %342 = vector.broadcast %cst_143 : f32 to vector<1x128xf32>
    %343 = arith.addf %339, %342 : vector<1x128xf32>
    %344 = math.rsqrt %343 : vector<1x128xf32>
    %345 = vector.broadcast %344 : vector<1x128xf32> to vector<4x128xf32>
    %346 = arith.mulf %341, %345 : vector<4x128xf32>
    %347 = vector.broadcast %326 : vector<4x1xf32> to vector<4x128xf32>
    %348 = arith.mulf %346, %347 : vector<4x128xf32>
    %349 = vector.broadcast %328 : vector<4x1xf32> to vector<4x128xf32>
    %350 = arith.addf %348, %349 : vector<4x128xf32>
    %cst_144 = arith.constant 5.000000e-01 : f32
    %351 = vector.broadcast %cst_144 : f32 to vector<4x128xf32>
    %352 = arith.mulf %351, %350 : vector<4x128xf32>
    %cst_145 = arith.constant 0.707106769 : f32
    %353 = vector.broadcast %cst_145 : f32 to vector<4x128xf32>
    %354 = arith.mulf %350, %353 : vector<4x128xf32>
    %cst_146 = arith.constant 0.000000e+00 : f32
    %355 = vector.broadcast %cst_146 : f32 to vector<4x128xf32>
    %356 = arith.cmpf oge, %354, %355 : vector<4x128xf32>
    %cst_147 = arith.constant 1.000000e+00 : f32
    %cst_148 = arith.constant -1.000000e+00 : f32
    %357 = vector.broadcast %cst_147 : f32 to vector<4x128xf32>
    %358 = vector.broadcast %cst_148 : f32 to vector<4x128xf32>
    %359 = arith.select %356, %357, %358 : vector<4x128xi1>, vector<4x128xf32>
    %360 = math.absf %354 : vector<4x128xf32>
    %cst_149 = arith.constant 0.327591091 : f32
    %361 = vector.broadcast %cst_149 : f32 to vector<4x128xf32>
    %362 = arith.mulf %361, %360 : vector<4x128xf32>
    %cst_150 = arith.constant 1.000000e+00 : f32
    %363 = vector.broadcast %cst_150 : f32 to vector<4x128xf32>
    %364 = arith.addf %363, %362 : vector<4x128xf32>
    %cst_151 = arith.constant 1.000000e+00 : f32
    %365 = vector.broadcast %cst_151 : f32 to vector<4x128xf32>
    %366 = arith.divf %365, %364 : vector<4x128xf32>
    %cst_152 = arith.constant 1.06140542 : f32
    %367 = vector.broadcast %cst_152 : f32 to vector<4x128xf32>
    %368 = arith.mulf %367, %366 : vector<4x128xf32>
    %cst_153 = arith.constant -1.45315206 : f32
    %369 = vector.broadcast %cst_153 : f32 to vector<4x128xf32>
    %370 = arith.addf %368, %369 : vector<4x128xf32>
    %371 = arith.mulf %370, %366 : vector<4x128xf32>
    %cst_154 = arith.constant 1.42141378 : f32
    %372 = vector.broadcast %cst_154 : f32 to vector<4x128xf32>
    %373 = arith.addf %371, %372 : vector<4x128xf32>
    %374 = arith.mulf %373, %366 : vector<4x128xf32>
    %cst_155 = arith.constant -0.284496725 : f32
    %375 = vector.broadcast %cst_155 : f32 to vector<4x128xf32>
    %376 = arith.addf %374, %375 : vector<4x128xf32>
    %377 = arith.mulf %376, %366 : vector<4x128xf32>
    %cst_156 = arith.constant 0.254829586 : f32
    %378 = vector.broadcast %cst_156 : f32 to vector<4x128xf32>
    %379 = arith.addf %377, %378 : vector<4x128xf32>
    %380 = arith.mulf %379, %366 : vector<4x128xf32>
    %cst_157 = arith.constant 0.000000e+00 : f32
    %381 = vector.broadcast %cst_157 : f32 to vector<4x128xf32>
    %382 = arith.subf %381, %360 : vector<4x128xf32>
    %383 = arith.mulf %382, %360 : vector<4x128xf32>
    %384 = math.exp %383 : vector<4x128xf32>
    %385 = arith.mulf %380, %384 : vector<4x128xf32>
    %cst_158 = arith.constant 1.000000e+00 : f32
    %386 = vector.broadcast %cst_158 : f32 to vector<4x128xf32>
    %387 = arith.subf %386, %385 : vector<4x128xf32>
    %388 = arith.mulf %359, %387 : vector<4x128xf32>
    %cst_159 = arith.constant 1.000000e+00 : f32
    %389 = vector.broadcast %cst_159 : f32 to vector<4x128xf32>
    %390 = arith.addf %389, %388 : vector<4x128xf32>
    %391 = arith.mulf %352, %390 : vector<4x128xf32>
    %392 = arith.addf %203, %391 : vector<4x128xf32>
    %393 = vector.broadcast %1 : vector<1x128xf32> to vector<4x128xf32>
    %394 = arith.mulf %392, %393 : vector<4x128xf32>
    %c2 = arith.constant 2 : index
    %c0_160 = arith.constant 0 : index
    %c0_161 = arith.constant 0 : index
    %395 = vector.load %arg6[%c2, %c0_160, %c0_161] : memref<3x4x3xf32, #tpu.memory_space<vmem>>, vector<1x4x3xf32>
    %396 = vector.shape_cast %395 : vector<1x4x3xf32> to vector<4x3xf32>
    %397 = vector.extract_strided_slice %396 {offsets = [0, 1], sizes = [4, 1], strides = [1, 1]} : vector<4x3xf32> to vector<4x1xf32>
    %398 = vector.broadcast %397 : vector<4x1xf32> to vector<4x128xf32>
    %399 = arith.mulf %398, %394 : vector<4x128xf32>
    %c9_i32 = arith.constant 9 : i32
    %400 = tpu.dynamic_rotate %394 by %c9_i32 dim 1 : vector<4x128xf32>, i32 -> vector<4x128xf32>
    %c-9_i32 = arith.constant -9 : i32
    %401 = vector.broadcast %c-9_i32 : i32 to vector<1x128xi32>
    %402 = arith.addi %14, %401 : vector<1x128xi32>
    %c0_i32_162 = arith.constant 0 : i32
    %403 = vector.broadcast %c0_i32_162 : i32 to vector<1x128xi32>
    %404 = arith.cmpi sge, %402, %403 : vector<1x128xi32>
    %c-9_i32_163 = arith.constant -9 : i32
    %405 = vector.broadcast %c-9_i32_163 : i32 to vector<1x128xi32>
    %406 = arith.addi %14, %405 : vector<1x128xi32>
    %c128_i32_164 = arith.constant 128 : i32
    %407 = vector.broadcast %c128_i32_164 : i32 to vector<1x128xi32>
    %408 = arith.cmpi slt, %406, %407 : vector<1x128xi32>
    %409 = arith.andi %404, %408 : vector<1x128xi1>
    %cst_165 = arith.constant 0.000000e+00 : f32
    %410 = vector.shape_cast %409 : vector<1x128xi1> to vector<1x128xi1>
    %411 = vector.broadcast %410 : vector<1x128xi1> to vector<4x128xi1>
    %412 = vector.broadcast %cst_165 : f32 to vector<4x128xf32>
    %413 = arith.select %411, %400, %412 : vector<4x128xi1>, vector<4x128xf32>
    %414 = vector.extract_strided_slice %396 {offsets = [0, 0], sizes = [4, 1], strides = [1, 1]} : vector<4x3xf32> to vector<4x1xf32>
    %415 = vector.broadcast %414 : vector<4x1xf32> to vector<4x128xf32>
    %416 = arith.mulf %415, %413 : vector<4x128xf32>
    %417 = arith.addf %399, %416 : vector<4x128xf32>
    %c119_i32 = arith.constant 119 : i32
    %418 = tpu.dynamic_rotate %394 by %c119_i32 dim 1 : vector<4x128xf32>, i32 -> vector<4x128xf32>
    %c9_i32_166 = arith.constant 9 : i32
    %419 = vector.broadcast %c9_i32_166 : i32 to vector<1x128xi32>
    %420 = arith.addi %14, %419 : vector<1x128xi32>
    %c0_i32_167 = arith.constant 0 : i32
    %421 = vector.broadcast %c0_i32_167 : i32 to vector<1x128xi32>
    %422 = arith.cmpi sge, %420, %421 : vector<1x128xi32>
    %c9_i32_168 = arith.constant 9 : i32
    %423 = vector.broadcast %c9_i32_168 : i32 to vector<1x128xi32>
    %424 = arith.addi %14, %423 : vector<1x128xi32>
    %c128_i32_169 = arith.constant 128 : i32
    %425 = vector.broadcast %c128_i32_169 : i32 to vector<1x128xi32>
    %426 = arith.cmpi slt, %424, %425 : vector<1x128xi32>
    %427 = arith.andi %422, %426 : vector<1x128xi1>
    %cst_170 = arith.constant 0.000000e+00 : f32
    %428 = vector.shape_cast %427 : vector<1x128xi1> to vector<1x128xi1>
    %429 = vector.broadcast %428 : vector<1x128xi1> to vector<4x128xi1>
    %430 = vector.broadcast %cst_170 : f32 to vector<4x128xf32>
    %431 = arith.select %429, %418, %430 : vector<4x128xi1>, vector<4x128xf32>
    %432 = vector.extract_strided_slice %396 {offsets = [0, 2], sizes = [4, 1], strides = [1, 1]} : vector<4x3xf32> to vector<4x1xf32>
    %433 = vector.broadcast %432 : vector<4x1xf32> to vector<4x128xf32>
    %434 = arith.mulf %433, %431 : vector<4x128xf32>
    %435 = arith.addf %417, %434 : vector<4x128xf32>
    %c2_171 = arith.constant 2 : index
    %c0_172 = arith.constant 0 : index
    %c0_173 = arith.constant 0 : index
    %436 = vector.load %arg7[%c2_171, %c0_172, %c0_173] : memref<3x4x1xf32, #tpu.memory_space<vmem>>, vector<1x4x1xf32>
    %437 = vector.shape_cast %436 : vector<1x4x1xf32> to vector<4x1xf32>
    %438 = vector.broadcast %437 : vector<4x1xf32> to vector<4x128xf32>
    %439 = arith.addf %435, %438 : vector<4x128xf32>
    %c2_174 = arith.constant 2 : index
    %c0_175 = arith.constant 0 : index
    %c0_176 = arith.constant 0 : index
    %440 = vector.load %arg10[%c2_174, %c0_175, %c0_176] : memref<3x4x1xf32, #tpu.memory_space<vmem>>, vector<1x4x1xf32>
    %441 = vector.shape_cast %440 : vector<1x4x1xf32> to vector<4x1xf32>
    %c2_177 = arith.constant 2 : index
    %c0_178 = arith.constant 0 : index
    %c0_179 = arith.constant 0 : index
    %442 = vector.load %arg11[%c2_177, %c0_178, %c0_179] : memref<3x4x1xf32, #tpu.memory_space<vmem>>, vector<1x4x1xf32>
    %443 = vector.shape_cast %442 : vector<1x4x1xf32> to vector<4x1xf32>
    %cst_180 = arith.constant dense<0.000000e+00> : vector<128xf32>
    %444 = vector.multi_reduction <add>, %439, %cst_180 [0] : vector<4x128xf32> to vector<128xf32>
    %445 = vector.shape_cast %444 : vector<128xf32> to vector<1x128xf32>
    %cst_181 = arith.constant 4.000000e+00 : f32
    %446 = vector.broadcast %cst_181 : f32 to vector<1x128xf32>
    %447 = arith.divf %445, %446 : vector<1x128xf32>
    %448 = vector.broadcast %447 : vector<1x128xf32> to vector<4x128xf32>
    %449 = arith.subf %439, %448 : vector<4x128xf32>
    %450 = arith.mulf %449, %449 : vector<4x128xf32>
    %cst_182 = arith.constant dense<0.000000e+00> : vector<128xf32>
    %451 = vector.multi_reduction <add>, %450, %cst_182 [0] : vector<4x128xf32> to vector<128xf32>
    %452 = vector.shape_cast %451 : vector<128xf32> to vector<1x128xf32>
    %cst_183 = arith.constant 4.000000e+00 : f32
    %453 = vector.broadcast %cst_183 : f32 to vector<1x128xf32>
    %454 = arith.divf %452, %453 : vector<1x128xf32>
    %455 = vector.broadcast %447 : vector<1x128xf32> to vector<4x128xf32>
    %456 = arith.subf %439, %455 : vector<4x128xf32>
    %cst_184 = arith.constant 9.99999974E-6 : f32
    %457 = vector.broadcast %cst_184 : f32 to vector<1x128xf32>
    %458 = arith.addf %454, %457 : vector<1x128xf32>
    %459 = math.rsqrt %458 : vector<1x128xf32>
    %460 = vector.broadcast %459 : vector<1x128xf32> to vector<4x128xf32>
    %461 = arith.mulf %456, %460 : vector<4x128xf32>
    %462 = vector.broadcast %441 : vector<4x1xf32> to vector<4x128xf32>
    %463 = arith.mulf %461, %462 : vector<4x128xf32>
    %464 = vector.broadcast %443 : vector<4x1xf32> to vector<4x128xf32>
    %465 = arith.addf %463, %464 : vector<4x128xf32>
    %cst_185 = arith.constant 5.000000e-01 : f32
    %466 = vector.broadcast %cst_185 : f32 to vector<4x128xf32>
    %467 = arith.mulf %466, %465 : vector<4x128xf32>
    %cst_186 = arith.constant 0.707106769 : f32
    %468 = vector.broadcast %cst_186 : f32 to vector<4x128xf32>
    %469 = arith.mulf %465, %468 : vector<4x128xf32>
    %cst_187 = arith.constant 0.000000e+00 : f32
    %470 = vector.broadcast %cst_187 : f32 to vector<4x128xf32>
    %471 = arith.cmpf oge, %469, %470 : vector<4x128xf32>
    %cst_188 = arith.constant 1.000000e+00 : f32
    %cst_189 = arith.constant -1.000000e+00 : f32
    %472 = vector.broadcast %cst_188 : f32 to vector<4x128xf32>
    %473 = vector.broadcast %cst_189 : f32 to vector<4x128xf32>
    %474 = arith.select %471, %472, %473 : vector<4x128xi1>, vector<4x128xf32>
    %475 = math.absf %469 : vector<4x128xf32>
    %cst_190 = arith.constant 0.327591091 : f32
    %476 = vector.broadcast %cst_190 : f32 to vector<4x128xf32>
    %477 = arith.mulf %476, %475 : vector<4x128xf32>
    %cst_191 = arith.constant 1.000000e+00 : f32
    %478 = vector.broadcast %cst_191 : f32 to vector<4x128xf32>
    %479 = arith.addf %478, %477 : vector<4x128xf32>
    %cst_192 = arith.constant 1.000000e+00 : f32
    %480 = vector.broadcast %cst_192 : f32 to vector<4x128xf32>
    %481 = arith.divf %480, %479 : vector<4x128xf32>
    %cst_193 = arith.constant 1.06140542 : f32
    %482 = vector.broadcast %cst_193 : f32 to vector<4x128xf32>
    %483 = arith.mulf %482, %481 : vector<4x128xf32>
    %cst_194 = arith.constant -1.45315206 : f32
    %484 = vector.broadcast %cst_194 : f32 to vector<4x128xf32>
    %485 = arith.addf %483, %484 : vector<4x128xf32>
    %486 = arith.mulf %485, %481 : vector<4x128xf32>
    %cst_195 = arith.constant 1.42141378 : f32
    %487 = vector.broadcast %cst_195 : f32 to vector<4x128xf32>
    %488 = arith.addf %486, %487 : vector<4x128xf32>
    %489 = arith.mulf %488, %481 : vector<4x128xf32>
    %cst_196 = arith.constant -0.284496725 : f32
    %490 = vector.broadcast %cst_196 : f32 to vector<4x128xf32>
    %491 = arith.addf %489, %490 : vector<4x128xf32>
    %492 = arith.mulf %491, %481 : vector<4x128xf32>
    %cst_197 = arith.constant 0.254829586 : f32
    %493 = vector.broadcast %cst_197 : f32 to vector<4x128xf32>
    %494 = arith.addf %492, %493 : vector<4x128xf32>
    %495 = arith.mulf %494, %481 : vector<4x128xf32>
    %cst_198 = arith.constant 0.000000e+00 : f32
    %496 = vector.broadcast %cst_198 : f32 to vector<4x128xf32>
    %497 = arith.subf %496, %475 : vector<4x128xf32>
    %498 = arith.mulf %497, %475 : vector<4x128xf32>
    %499 = math.exp %498 : vector<4x128xf32>
    %500 = arith.mulf %495, %499 : vector<4x128xf32>
    %cst_199 = arith.constant 1.000000e+00 : f32
    %501 = vector.broadcast %cst_199 : f32 to vector<4x128xf32>
    %502 = arith.subf %501, %500 : vector<4x128xf32>
    %503 = arith.mulf %474, %502 : vector<4x128xf32>
    %cst_200 = arith.constant 1.000000e+00 : f32
    %504 = vector.broadcast %cst_200 : f32 to vector<4x128xf32>
    %505 = arith.addf %504, %503 : vector<4x128xf32>
    %506 = arith.mulf %467, %505 : vector<4x128xf32>
    %c2_201 = arith.constant 2 : index
    %c0_202 = arith.constant 0 : index
    %c0_203 = arith.constant 0 : index
    %507 = vector.load %arg8[%c2_201, %c0_202, %c0_203] : memref<3x4x4xf32, #tpu.memory_space<vmem>>, vector<1x4x4xf32>
    %508 = vector.shape_cast %507 : vector<1x4x4xf32> to vector<4x4xf32>
    %cst_204 = arith.constant dense<0.000000e+00> : vector<4x128xf32>
    %509 = tpu.matmul %508, %506, %cst_204 {dimension_numbers = #tpu.dot_dimension_numbers<[1], [0], [0], [1], [0, 0, 1, 1], [], []>} : vector<4x4xf32>, vector<4x128xf32>, vector<4x128xf32> -> vector<4x128xf32>
    %c2_205 = arith.constant 2 : index
    %c0_206 = arith.constant 0 : index
    %c0_207 = arith.constant 0 : index
    %510 = vector.load %arg9[%c2_205, %c0_206, %c0_207] : memref<3x4x1xf32, #tpu.memory_space<vmem>>, vector<1x4x1xf32>
    %511 = vector.shape_cast %510 : vector<1x4x1xf32> to vector<4x1xf32>
    %512 = vector.broadcast %511 : vector<4x1xf32> to vector<4x128xf32>
    %513 = arith.addf %509, %512 : vector<4x128xf32>
    %c2_208 = arith.constant 2 : index
    %c0_209 = arith.constant 0 : index
    %c0_210 = arith.constant 0 : index
    %514 = vector.load %arg12[%c2_208, %c0_209, %c0_210] : memref<3x4x1xf32, #tpu.memory_space<vmem>>, vector<1x4x1xf32>
    %515 = vector.shape_cast %514 : vector<1x4x1xf32> to vector<4x1xf32>
    %c2_211 = arith.constant 2 : index
    %c0_212 = arith.constant 0 : index
    %c0_213 = arith.constant 0 : index
    %516 = vector.load %arg13[%c2_211, %c0_212, %c0_213] : memref<3x4x1xf32, #tpu.memory_space<vmem>>, vector<1x4x1xf32>
    %517 = vector.shape_cast %516 : vector<1x4x1xf32> to vector<4x1xf32>
    %cst_214 = arith.constant dense<0.000000e+00> : vector<128xf32>
    %518 = vector.multi_reduction <add>, %513, %cst_214 [0] : vector<4x128xf32> to vector<128xf32>
    %519 = vector.shape_cast %518 : vector<128xf32> to vector<1x128xf32>
    %cst_215 = arith.constant 4.000000e+00 : f32
    %520 = vector.broadcast %cst_215 : f32 to vector<1x128xf32>
    %521 = arith.divf %519, %520 : vector<1x128xf32>
    %522 = vector.broadcast %521 : vector<1x128xf32> to vector<4x128xf32>
    %523 = arith.subf %513, %522 : vector<4x128xf32>
    %524 = arith.mulf %523, %523 : vector<4x128xf32>
    %cst_216 = arith.constant dense<0.000000e+00> : vector<128xf32>
    %525 = vector.multi_reduction <add>, %524, %cst_216 [0] : vector<4x128xf32> to vector<128xf32>
    %526 = vector.shape_cast %525 : vector<128xf32> to vector<1x128xf32>
    %cst_217 = arith.constant 4.000000e+00 : f32
    %527 = vector.broadcast %cst_217 : f32 to vector<1x128xf32>
    %528 = arith.divf %526, %527 : vector<1x128xf32>
    %529 = vector.broadcast %521 : vector<1x128xf32> to vector<4x128xf32>
    %530 = arith.subf %513, %529 : vector<4x128xf32>
    %cst_218 = arith.constant 9.99999974E-6 : f32
    %531 = vector.broadcast %cst_218 : f32 to vector<1x128xf32>
    %532 = arith.addf %528, %531 : vector<1x128xf32>
    %533 = math.rsqrt %532 : vector<1x128xf32>
    %534 = vector.broadcast %533 : vector<1x128xf32> to vector<4x128xf32>
    %535 = arith.mulf %530, %534 : vector<4x128xf32>
    %536 = vector.broadcast %515 : vector<4x1xf32> to vector<4x128xf32>
    %537 = arith.mulf %535, %536 : vector<4x128xf32>
    %538 = vector.broadcast %517 : vector<4x1xf32> to vector<4x128xf32>
    %539 = arith.addf %537, %538 : vector<4x128xf32>
    %cst_219 = arith.constant 5.000000e-01 : f32
    %540 = vector.broadcast %cst_219 : f32 to vector<4x128xf32>
    %541 = arith.mulf %540, %539 : vector<4x128xf32>
    %cst_220 = arith.constant 0.707106769 : f32
    %542 = vector.broadcast %cst_220 : f32 to vector<4x128xf32>
    %543 = arith.mulf %539, %542 : vector<4x128xf32>
    %cst_221 = arith.constant 0.000000e+00 : f32
    %544 = vector.broadcast %cst_221 : f32 to vector<4x128xf32>
    %545 = arith.cmpf oge, %543, %544 : vector<4x128xf32>
    %cst_222 = arith.constant 1.000000e+00 : f32
    %cst_223 = arith.constant -1.000000e+00 : f32
    %546 = vector.broadcast %cst_222 : f32 to vector<4x128xf32>
    %547 = vector.broadcast %cst_223 : f32 to vector<4x128xf32>
    %548 = arith.select %545, %546, %547 : vector<4x128xi1>, vector<4x128xf32>
    %549 = math.absf %543 : vector<4x128xf32>
    %cst_224 = arith.constant 0.327591091 : f32
    %550 = vector.broadcast %cst_224 : f32 to vector<4x128xf32>
    %551 = arith.mulf %550, %549 : vector<4x128xf32>
    %cst_225 = arith.constant 1.000000e+00 : f32
    %552 = vector.broadcast %cst_225 : f32 to vector<4x128xf32>
    %553 = arith.addf %552, %551 : vector<4x128xf32>
    %cst_226 = arith.constant 1.000000e+00 : f32
    %554 = vector.broadcast %cst_226 : f32 to vector<4x128xf32>
    %555 = arith.divf %554, %553 : vector<4x128xf32>
    %cst_227 = arith.constant 1.06140542 : f32
    %556 = vector.broadcast %cst_227 : f32 to vector<4x128xf32>
    %557 = arith.mulf %556, %555 : vector<4x128xf32>
    %cst_228 = arith.constant -1.45315206 : f32
    %558 = vector.broadcast %cst_228 : f32 to vector<4x128xf32>
    %559 = arith.addf %557, %558 : vector<4x128xf32>
    %560 = arith.mulf %559, %555 : vector<4x128xf32>
    %cst_229 = arith.constant 1.42141378 : f32
    %561 = vector.broadcast %cst_229 : f32 to vector<4x128xf32>
    %562 = arith.addf %560, %561 : vector<4x128xf32>
    %563 = arith.mulf %562, %555 : vector<4x128xf32>
    %cst_230 = arith.constant -0.284496725 : f32
    %564 = vector.broadcast %cst_230 : f32 to vector<4x128xf32>
    %565 = arith.addf %563, %564 : vector<4x128xf32>
    %566 = arith.mulf %565, %555 : vector<4x128xf32>
    %cst_231 = arith.constant 0.254829586 : f32
    %567 = vector.broadcast %cst_231 : f32 to vector<4x128xf32>
    %568 = arith.addf %566, %567 : vector<4x128xf32>
    %569 = arith.mulf %568, %555 : vector<4x128xf32>
    %cst_232 = arith.constant 0.000000e+00 : f32
    %570 = vector.broadcast %cst_232 : f32 to vector<4x128xf32>
    %571 = arith.subf %570, %549 : vector<4x128xf32>
    %572 = arith.mulf %571, %549 : vector<4x128xf32>
    %573 = math.exp %572 : vector<4x128xf32>
    %574 = arith.mulf %569, %573 : vector<4x128xf32>
    %cst_233 = arith.constant 1.000000e+00 : f32
    %575 = vector.broadcast %cst_233 : f32 to vector<4x128xf32>
    %576 = arith.subf %575, %574 : vector<4x128xf32>
    %577 = arith.mulf %548, %576 : vector<4x128xf32>
    %cst_234 = arith.constant 1.000000e+00 : f32
    %578 = vector.broadcast %cst_234 : f32 to vector<4x128xf32>
    %579 = arith.addf %578, %577 : vector<4x128xf32>
    %580 = arith.mulf %541, %579 : vector<4x128xf32>
    %581 = arith.addf %392, %580 : vector<4x128xf32>
    %582 = vector.broadcast %1 : vector<1x128xf32> to vector<4x128xf32>
    %583 = arith.mulf %581, %582 : vector<4x128xf32>
    %c0_235 = arith.constant 0 : index
    %c0_236 = arith.constant 0 : index
    %584 = vector.load %arg14[%c0_235, %c0_236] : memref<29x4xf32, #tpu.memory_space<vmem>>, vector<29x4xf32>
    %cst_237 = arith.constant dense<0.000000e+00> : vector<29x128xf32>
    %585 = tpu.matmul %584, %583, %cst_237 {dimension_numbers = #tpu.dot_dimension_numbers<[1], [0], [0], [1], [0, 0, 1, 1], [], []>} : vector<29x4xf32>, vector<4x128xf32>, vector<29x128xf32> -> vector<29x128xf32>
    %c0_238 = arith.constant 0 : index
    %c0_239 = arith.constant 0 : index
    %586 = vector.load %arg15[%c0_238, %c0_239] : memref<29x1xf32, #tpu.memory_space<vmem>>, vector<29x1xf32>
    %587 = vector.broadcast %586 : vector<29x1xf32> to vector<29x128xf32>
    %588 = arith.addf %585, %587 : vector<29x128xf32>
    %589 = vector.broadcast %1 : vector<1x128xf32> to vector<29x128xf32>
    %590 = arith.mulf %588, %589 : vector<29x128xf32>
    %c0_240 = arith.constant 0 : index
    %c0_241 = arith.constant 0 : index
    %c0_242 = arith.constant 0 : index
    %591 = vector.load %arg16[%c0_240, %c0_241, %c0_242] : memref<1x29x128xf32, #tpu.memory_space<vmem>>, vector<1x29x128xf32>
    %592 = vector.shape_cast %591 : vector<1x29x128xf32> to vector<29x128xf32>
    %593 = vector.shape_cast %590 : vector<29x128xf32> to vector<1x29x128xf32>
    tpu.vector_store %arg16[%c0_240, %c0_241, %c0_242], %593 {strides = array<i32>} : memref<1x29x128xf32, #tpu.memory_space<vmem>>, vector<1x29x128xf32>,
    return
  }
  func.func @transform_0(%arg0: i32) -> (i32, i32, i32) {
    %c0_i32 = arith.constant 0 : i32
    %c0_i32_0 = arith.constant 0 : i32
    %c0_i32_1 = arith.constant 0 : i32
    return %arg0, %c0_i32, %c0_i32_0 : i32, i32, i32
  }
  func.func @transform_1(%arg0: i32) -> (i32, i32, i32) {
    %c0_i32 = arith.constant 0 : i32
    %c0_i32_0 = arith.constant 0 : i32
    %c0_i32_1 = arith.constant 0 : i32
    return %arg0, %c0_i32, %c0_i32_0 : i32, i32, i32
  }
  func.func @transform_2(%arg0: i32) -> (i32, i32, i32) {
    %c0_i32 = arith.constant 0 : i32
    %c0_i32_0 = arith.constant 0 : i32
    %c0_i32_1 = arith.constant 0 : i32
    return %arg0, %c0_i32, %c0_i32_0 : i32, i32, i32
  }
  func.func @transform_3(%arg0: i32) -> (i32, i32) {
    %c0_i32 = arith.constant 0 : i32
    %c0_i32_0 = arith.constant 0 : i32
    %c0_i32_1 = arith.constant 0 : i32
    return %c0_i32, %c0_i32_0 : i32, i32
  }
  func.func @transform_4(%arg0: i32) -> (i32, i32) {
    %c0_i32 = arith.constant 0 : i32
    %c0_i32_0 = arith.constant 0 : i32
    %c0_i32_1 = arith.constant 0 : i32
    return %c0_i32, %c0_i32_0 : i32, i32
  }
  func.func @transform_5(%arg0: i32) -> (i32, i32, i32) {
    %c0_i32 = arith.constant 0 : i32
    %c0_i32_0 = arith.constant 0 : i32
    %c0_i32_1 = arith.constant 0 : i32
    %c0_i32_2 = arith.constant 0 : i32
    return %c0_i32, %c0_i32_0, %c0_i32_1 : i32, i32, i32
  }
  func.func @transform_6(%arg0: i32) -> (i32, i32, i32) {
    %c0_i32 = arith.constant 0 : i32
    %c0_i32_0 = arith.constant 0 : i32
    %c0_i32_1 = arith.constant 0 : i32
    %c0_i32_2 = arith.constant 0 : i32
    return %c0_i32, %c0_i32_0, %c0_i32_1 : i32, i32, i32
  }
  func.func @transform_7(%arg0: i32) -> (i32, i32, i32) {
    %c0_i32 = arith.constant 0 : i32
    %c0_i32_0 = arith.constant 0 : i32
    %c0_i32_1 = arith.constant 0 : i32
    %c0_i32_2 = arith.constant 0 : i32
    return %c0_i32, %c0_i32_0, %c0_i32_1 : i32, i32, i32
  }
  func.func @transform_8(%arg0: i32) -> (i32, i32, i32) {
    %c0_i32 = arith.constant 0 : i32
    %c0_i32_0 = arith.constant 0 : i32
    %c0_i32_1 = arith.constant 0 : i32
    %c0_i32_2 = arith.constant 0 : i32
    return %c0_i32, %c0_i32_0, %c0_i32_1 : i32, i32, i32
  }
  func.func @transform_9(%arg0: i32) -> (i32, i32, i32) {
    %c0_i32 = arith.constant 0 : i32
    %c0_i32_0 = arith.constant 0 : i32
    %c0_i32_1 = arith.constant 0 : i32
    %c0_i32_2 = arith.constant 0 : i32
    return %c0_i32, %c0_i32_0, %c0_i32_1 : i32, i32, i32
  }
  func.func @transform_10(%arg0: i32) -> (i32, i32, i32) {
    %c0_i32 = arith.constant 0 : i32
    %c0_i32_0 = arith.constant 0 : i32
    %c0_i32_1 = arith.constant 0 : i32
    %c0_i32_2 = arith.constant 0 : i32
    return %c0_i32, %c0_i32_0, %c0_i32_1 : i32, i32, i32
  }
  func.func @transform_11(%arg0: i32) -> (i32, i32, i32) {
    %c0_i32 = arith.constant 0 : i32
    %c0_i32_0 = arith.constant 0 : i32
    %c0_i32_1 = arith.constant 0 : i32
    %c0_i32_2 = arith.constant 0 : i32
    return %c0_i32, %c0_i32_0, %c0_i32_1 : i32, i32, i32
  }
  func.func @transform_12(%arg0: i32) -> (i32, i32, i32) {
    %c0_i32 = arith.constant 0 : i32
    %c0_i32_0 = arith.constant 0 : i32
    %c0_i32_1 = arith.constant 0 : i32
    %c0_i32_2 = arith.constant 0 : i32
    return %c0_i32, %c0_i32_0, %c0_i32_1 : i32, i32, i32
  }
  func.func @transform_13(%arg0: i32) -> (i32, i32) {
    %c0_i32 = arith.constant 0 : i32
    %c0_i32_0 = arith.constant 0 : i32
    %c0_i32_1 = arith.constant 0 : i32
    return %c0_i32, %c0_i32_0 : i32, i32
  }
  func.func @transform_14(%arg0: i32) -> (i32, i32) {
    %c0_i32 = arith.constant 0 : i32
    %c0_i32_0 = arith.constant 0 : i32
    %c0_i32_1 = arith.constant 0 : i32
    return %c0_i32, %c0_i32_0 : i32, i32
  }
  func.func @transform_15(%arg0: i32) -> (i32, i32, i32) {
    %c0_i32 = arith.constant 0 : i32
    %c0_i32_0 = arith.constant 0 : i32
    %c0_i32_1 = arith.constant 0 : i32
    return %arg0, %c0_i32, %c0_i32_0 : i32, i32, i32
  }
}

</mosaic_0001>

<bundles_post_ra>
// kernel: sdp_forward.2
= control target key start
LH: loop header
LB: loop body
LE: loop exit
PB: predicated region body
PF: predicated region fallthrough
CT: control target
= control target key end

     0   :  { %s1731_s29 = smov 0   ;;  %s1931_s0 = inlined_call_operand.vmem [shape: f32[2,4,128], index: 0, kind: input, shape index: {}]   ;;  %s1932_s1 = inlined_call_operand.vmem [shape: f32[2,1,128], index: 1, kind: input, shape index: {}]   ;;  %s1933_s2 = inlined_call_operand.vmem [shape: f32[4,4], index: 2, kind: input, shape index: {}]   ;;  %s1934_s3 = inlined_call_operand.vmem [shape: f32[4,1], index: 3, kind: input, shape index: {}]   ;;  %s1935_s4 = inlined_call_operand.vmem [shape: f32[3,4,3], index: 4, kind: input, shape index: {}]   ;;  %s1936_s5 = inlined_call_operand.vmem [shape: f32[3,4,1], index: 5, kind: input, shape index: {}]   ;;  %s1937_s6 = inlined_call_operand.vmem [shape: f32[3,4,4], index: 6, kind: input, shape index: {}]   ;;  %s1938_s7 = inlined_call_operand.vmem [shape: f32[3,4,1], index: 7, kind: input, shape index: {}]   ;;  %s1939_s8 = inlined_call_operand.vmem [shape: f32[3,4,1], index: 8, kind: input, shape index: {}]   ;;  %s1940_s9 = inlined_call_operand.vmem [shape: f32[3,4,1], index: 9, kind: input, shape index: {}]   ;;  %s1941_s10 = inlined_call_operand.vmem [shape: f32[3,4,1], index: 10, kind: input, shape index: {}]   ;;  %s1942_s11 = inlined_call_operand.vmem [shape: f32[3,4,1], index: 11, kind: input, shape index: {}]   ;;  %s1943_s12 = inlined_call_operand.vmem [shape: f32[4,4], index: 12, kind: input, shape index: {}]   ;;  %s1944_s13 = inlined_call_operand.vmem [shape: f32[4,1], index: 13, kind: input, shape index: {}]   ;;  %s1945_s14 = inlined_call_operand.vmem [shape: f32[2,4,128], index: 14, kind: output, shape index: {}]  }
   0x1 LB: > { %s1496_s30 = sadd.s32 4294967295, %s1642_s29   ;;  %p1500_p0 = scmp.ge.s32.totalorder %s1642_s29, 1  ;;  %s1642_s29 = sphi %s1731_s29, %s24_s29  }
   0x2   : > { %p419_p1 = scmp.lt.s32.totalorder %s1642_s29, 3 }
   0x4   : > { %p420_p2 = pnand %p1500_p0, %p419_p1 }
   0x5   : > { %p466_p3 = scmp.lt.s32.totalorder (!%p420_p2), %s1496_s30, 1  ;;  %v1644_v0 = vmov (!%p420_p2), 0.0   ;;  %vm1645_vm0 = vmmov (!%p420_p2), 0   ;;  %v480_v1 = vld [vmem:[%s1934_s3] sm:$0xf] (!%p420_p2)  ;;  %v1646_v2 = vmov (!%p420_p2), 0   ;;  %v564_v21 = vlaneseq (!%p420_p2) }
   0x6   : > { %423 = sbr.rel (%p420_p2) target bundleno = 2087 (0x827), region = 76  ;;  %1542 = vmatprep.subr.mxu0 (!%p420_p2), %v1644_v0  ;;  %1544 = vmatprep.mubr.msk.f32.mxu0 (!%p420_p2), %vm1645_vm0, %v1644_v0  ;;  %v573_v3 = vld [vmem:[%s1935_s4] sm:$0xf] (!%p420_p2)  ;;  %vm490_vm1 = vcmask (!%p420_p2), 1043456   ;;  %vm486_vm2 = vcmask (!%p420_p2), 31744   ;;  %v1647_v6 = vmov (!%p420_p2), 1  }
   0x7   : > { %1587 = vset.pattern.permute.xlu0 (!%p420_p2), %v1646_v2  ;;  %1589 = vset.pattern.permute.xlu1 (!%p420_p2), %v1646_v2  ;;  %v479_v4 = vld [vmem:[%s1933_s2] sm:$0xf] (!%p420_p2)  ;;  %v1648_v7 = vmov (!%p420_p2), 2   ;;  %v1508_v11 = vld [vmem:[%s1935_s4 + $0x4] sm:$0xf] (!%p420_p2)  ;;  %s1649_s23 = smov (!%p420_p2), 1  }
   0x8   : > { %483 = vperm.xlu0 (!%p420_p2), %1587, %v480_v1   ;;  %590 = vperm.xlu1 (!%p420_p2), %1589, %v573_v3   ;;  %v610_v8 = vld [vmem:[%s1936_s5] sm:$0xf] (!%p420_p2)  ;;  %s1650_s24 = smov (!%p420_p2), 127   ;;  %v1808_v23 = vand.u32 (!%p420_p2), 127, %v564_v21  ;;  %s1652_s16 = smov (!%p420_p2), 3  }
   0x9   : > { %1547 = vmatprep.subr.mxu1 (!%p420_p2), %v1644_v0  ;;  %1549 = vmatprep.mubr.msk.f32.mxu1 (!%p420_p2), %vm1645_vm0, %v1644_v0  ;;  %v618_v9 = vld [vmem:[%s1940_s9] sm:$0xf] (!%p420_p2)  ;;  %s1653_s17 = smov (!%p420_p2), 125   ;;  %s1654_s20 = smov (!%p420_p2), 9  }
   0xa   : > { %v763_v10 = vld [vmem:[%s1941_s10] sm:$0xf] (!%p420_p2)  ;;  %v582_v25 = vadd.s32 (!%p420_p2), 4294967295, %v1808_v23  ;;  %v597_v26 = vadd.s32 (!%p420_p2), 1, %v1808_v23  ;;  %s1655_s21 = smov (!%p420_p2), 119  }
   0xb   : > { %v617_v18 = vld [vmem:[%s1939_s8] sm:$0xf] (!%p420_p2) }
   0xc   : > { %1588 = vset.pattern.permute.xlu0 (!%p420_p2), %v1647_v6  ;;  %1590 = vset.pattern.permute.xlu1 (!%p420_p2), %v1648_v7  ;;  %v681_v19 = vld [vmem:[%s1938_s7] sm:$0xf] (!%p420_p2)  ;;  %vm583_vm3 = vcmp.ge.s32.totalorder (!%p420_p2), %v582_v25, 0  ;;  %vm599_vm4 = vcmp.lt.s32.totalorder (!%p420_p2), %v597_v26, 128 }
   0xd   : > { %s1947_s30 = smov (!%p466_p3, %s1496_s30), 1  ;;  %576 = vperm.xlu0 %1588, %v573_v3   ;;  %605 = vperm.xlu1 %1590, %v573_v3   ;;  %v764_v20 = vld [vmem:[%s1942_s11] sm:$0xf] }
   0xe   : > { %s1501_s19 = sshll.u32 %s1947_s30, 2 }
   0xf   : > { %s469_s22 = scalar_lea.vmem %s1931_s0, %s1501_s19 }
  0x10   : > { %v478_v5 = vld [vmem:[%s469_s22] sm:$0xf]  ;;  %s472_s22 = scalar_lea.vmem %s1932_s1, %s1947_s30 }
  0x11   : > { %1543 = vmatpush3.msk.msra.mxu0 %vm490_vm1, %v478_v5  ;;  %1591 = vset.pattern.permute.xlu0 %v1646_v2  ;;  %v1791_v13 = vld [vmem:[%s472_s22] ss:$0 sm:$0xff] }
  0x12   : > { %1545 = vmatmul.mubr.msk.f32.vlgmr.msra.gmra.mrb[0].mxu0 %vm486_vm2, %v479_v4  ;;  %1552 = vmatprep.subr.mxu0 %v1644_v0 }
  0x13   : > { %1554 = vmatprep.mubr.msk.f32.mxu0 %vm1645_vm0, %v1644_v0  ;;  %613 = vperm.xlu0 %1591, %v610_v8  }
  0x14   : > { %1592 = vset.pattern.permute.xlu1 %v1646_v2 }
  0x17   : > { %649 = vperm.xlu0 %1591, %v618_v9  }
  0x1b   : > { %788 = vperm.xlu0 %1591, %v763_v10  }
  0x1f   : > { %1593 = vset.pattern.permute.xlu0 %v1647_v6 }
  0x20   : > { %831 = vperm.xlu0 %1593, %v1508_v11  }
  0x24   : > { %1596 = vset.pattern.permute.xlu0 %v1646_v2 }
  0x87   : > { %v484_v12 = vpop.permute.xlu0 %483  ;;  %v591_v22 = vpop.permute.xlu1 %590 }
  0x8c   : > { %v606_v24 = vpop.permute.xlu1 %605  ;;  %v577_v28 = vpop.permute.xlu0 %576 }
  0x92   : > { %v614_v37 = vpop.permute.xlu0 %613 }
  0x96   : > { %v650_v62 = vpop.permute.xlu0 %649 }
  0xe5   : > { %v560_v14 = vpop.f32.mrb[0].mxu0 }
  0xe6   : > { %v1793_v15 = vadd.f32 %v560_v14, %v484_v12  ;;  %v1546_v16 = vpop.f32.mrb[1].mxu0 }
  0xe8   : > { %v572_v17 = vmul.f32 %v1791_v13, %v1793_v15 }
  0xea   : > { %580 = vrot.lane.b32.xlu1 %v572_v17, %s1649_s23  ;;  %v579_v31 = vmul.f32 %v577_v28, %v572_v17 }
  0xee   : > { %595 = vrot.lane.b32.xlu1 %v572_v17, %s1650_s24 }
  0xf2   : > { %643 = vperm.xlu1 %1592, %v617_v18  }
  0xf6   : > { %684 = vperm.xlu1 %1592, %v681_v19  }
  0xfa   : > { %794 = vperm.xlu1 %1592, %v764_v20  }
  0xfe   : > { %845 = vperm.xlu1 %1592, %v1508_v11  }
 0x102   : > { %1594 = vset.pattern.permute.xlu1 %v1648_v7 }
 0x103   : > { %860 = vperm.xlu1 %1594, %v1508_v11  }
 0x107   : > { %1595 = vset.pattern.permute.xlu1 %v1646_v2 }
 0x15c   : > { %v581_v27 = vpop.permute.xlu1 %580 }
 0x15d   : > { %v588_v29 = vsel %vm583_vm3, %v581_v27, 0.0  ;;  %v1651_v27 = vmov -1.0  }
 0x15e   : > { %v593_v30 = vmul.f32 %v591_v22, %v588_v29 }
 0x160   : > { %v596_v32 = vpop.permute.xlu1 %595  ;;  %v594_v34 = vadd.f32 %v593_v30, %v579_v31 }
 0x161   : > { %v603_v33 = vsel %vm599_vm4, %v596_v32, 0.0 }
 0x162   : > { %v608_v35 = vmul.f32 %v606_v24, %v603_v33  ;;  %v680_v33 = vld [vmem:[%s1937_s6] sm:$0xf] }
 0x164   : > { %v609_v36 = vadd.f32 %v608_v35, %v594_v34  ;;  %v1509_v34 = vld [vmem:[%s1936_s5 + $0x4] sm:$0xf] }
 0x165   : > { %869 = vperm.xlu1 %1595, %v1509_v34   ;;  %v1510_v35 = vld [vmem:[%s1939_s8 + $0x4] sm:$0xf] }
 0x166   : > { %v616_v38 = vadd.f32 %v614_v37, %v609_v36  ;;  %v1513_v36 = vld [vmem:[%s1938_s7 + $0x4] sm:$0xf] }
 0x167   : > { %v1516_v37 = vld [vmem:[%s1941_s10 + $0x4] sm:$0xf] }
 0x168   : > { %v619_v39 = vsel %vm490_vm1, %v616_v38, 0.0 }
 0x169   : > { %v620_v40 = vrot.slane %v619_v39, 4  ;;  %900 = vperm.xlu1 %1595, %v1510_v35  }
 0x16b   : > { %v621_v41 = vadd.f32 %v620_v40, %v619_v39 }
 0x16d   : > { %v622_v42 = vrot.slane %v621_v41, 2  ;;  %943 = vperm.xlu1 %1595, %v1513_v36   ;;  %v1511_v36 = vld [vmem:[%s1940_s9 + $0x4] sm:$0xf] }
 0x16f   : > { %v623_v43 = vadd.f32 %v622_v42, %v621_v41 }
 0x171   : > { %v624_v44 = vrot.slane %v623_v43, 1  ;;  %v644_v60 = vpop.permute.xlu1 %643  ;;  %1049 = vperm.xlu1 %1595, %v1516_v37   ;;  %v1517_v37 = vld [vmem:[%s1942_s11 + $0x4] sm:$0xf] }
 0x173   : > { %v625_v45 = vadd.f32 %v624_v44, %v623_v43 }
 0x175   : > { %v627_v46 = vmul.f32 0.25, %v625_v45  ;;  %1597 = vset.pattern.permute.xlu1 %v1647_v6  ;;  %v685_v39 = vpop.permute.xlu1 %684 }
 0x177   : > { %v628_v47 = vsub.f32 %v616_v38, %v627_v46  ;;  %v1839_v38 = vld [vmem:[%s1935_s4 + $0x8] sm:$0xf] }
 0x178   : > { %1092 = vperm.xlu1 %1597, %v1839_v38  }
 0x179   : > { %v629_v48 = vmul.f32 %v628_v47, %v628_v47 }
 0x17b   : > { %v630_v49 = vsel %vm490_vm1, %v629_v48, 0.0 }
 0x17c   : > { %v631_v50 = vrot.slane %v630_v49, 4  ;;  %1598 = vset.pattern.permute.xlu1 %v1648_v7 }
 0x17d   : > { %1121 = vperm.xlu1 %1598, %v1839_v38  }
 0x17e   : > { %v632_v51 = vadd.f32 %v631_v50, %v630_v49 }
 0x180   : > { %v633_v52 = vrot.slane %v632_v51, 2 }
 0x181   : > { %1599 = vset.pattern.permute.xlu1 %v1646_v2 }
 0x182   : > { %v634_v53 = vadd.f32 %v633_v52, %v632_v51 }
 0x184   : > { %v635_v54 = vrot.slane %v634_v53, 1 }
 0x186   : > { %v636_v55 = vadd.f32 %v635_v54, %v634_v53 }
 0x188   : > { %v637_v56 = vmul.f32 0.25, %v636_v55 }
 0x18a   : > { %v638_v57 = vadd.f32 1e-05, %v637_v56 }
 0x18c   : > { %1600 = vrsqrt.f32 %v638_v57 }
 0x196   : > { %v1601_v58 = vpop.eup %1600 }
 0x197   : > { %v640_v59 = vmul.f32 %v1601_v58, %v628_v47 }
 0x199   : > { %v646_v61 = vmul.f32 %v644_v60, %v640_v59 }
 0x19b   : > { %v652_v63 = vadd.f32 %v650_v62, %v646_v61  ;;  %v789_v61 = vpop.permute.xlu0 %788 }
 0x19d   : > { %v654_v1 = vmul.f32 0.70710677, %v652_v63  ;;  %v653_v30 = vmul.f32 0.5, %v652_v63  ;;  %v795_v63 = vpop.permute.xlu1 %794 }
 0x19f   : > { %v657_v3 = vand.u32 2147483647, %v654_v1  ;;  %vm655_vm5 = vcmp.ge.f32.partialorder %v654_v1, 0.0 }
 0x1a0   : > { %v656_v28 = vsel %vm655_vm5, 1.0, %v1651_v27 }
 0x1a1   : > { %v658_v4 = vmul.f32 0.3275911, %v657_v3  ;;  %v671_v8 = vsub.f32 0.0, %v657_v3 }
 0x1a3   : > { %v659_v5 = vadd.f32 1.0, %v658_v4  ;;  %v672_v10 = vmul.f32 %v671_v8, %v657_v3 }
 0x1a5   : > { %1602 = vrcp.f32 %v659_v5  ;;  %v673_v14 = vmul.f32 1.442695, %v672_v10 }
 0x1a7   : > { %1604 = vpow2.f32 %v673_v14 }
 0x1af   : > { %v1603_v9 = vpop.eup %1602 }
 0x1b0   : > { %v662_v11 = vmul.f32 1.0614054, %v1603_v9 }
 0x1b1   : > { %v1605_v24 = vpop.eup %1604 }
 0x1b2   : > { %v663_v12 = vadd.f32 -1.4531521, %v662_v11 }
 0x1b4   : > { %v664_v16 = vmul.f32 %v1603_v9, %v663_v12 }
 0x1b6   : > { %v665_v17 = vadd.f32 1.4214138, %v664_v16 }
 0x1b8   : > { %v666_v18 = vmul.f32 %v1603_v9, %v665_v17 }
 0x1ba   : > { %v667_v19 = vadd.f32 -0.28449672, %v666_v18 }
 0x1bc   : > { %v668_v20 = vmul.f32 %v1603_v9, %v667_v19 }
 0x1be   : > { %v669_v21 = vadd.f32 0.2548296, %v668_v20 }
 0x1c0   : > { %v670_v22 = vmul.f32 %v1603_v9, %v669_v21 }
 0x1c2   : > { %v675_v25 = vmul.f32 %v1605_v24, %v670_v22 }
 0x1c4   : > { %v676_v26 = vsub.f32 1.0, %v675_v25 }
 0x1c6   : > { %v677_v29 = vmul.f32 %v676_v26, %v656_v28 }
 0x1c8   : > { %v678_v31 = vadd.f32 1.0, %v677_v29 }
 0x1ca   : > { %v679_v32 = vmul.f32 %v678_v31, %v653_v30 }
 0x1cc   : > { %1548 = vmatpush3.msk.msra.mxu1 %vm490_vm1, %v679_v32 }
 0x1cd   : > { %1550 = vmatmul.mubr.msk.f32.vlgmr.msra.gmra.mrb[0].mxu1 %vm486_vm2, %v680_v33  ;;  %1557 = vmatprep.subr.mxu1 %v1644_v0 }
 0x1ce   : > { %1559 = vmatprep.mubr.msk.f32.mxu1 %vm1645_vm0, %v1644_v0 }
 0x2a0   : > { %v759_v40 = vpop.f32.mrb[0].mxu1 }
 0x2a1   : > { %v760_v41 = vadd.f32 %v759_v40, %v685_v39  ;;  %v1551_v42 = vpop.f32.mrb[1].mxu1  ;;  %v832_v39 = vpop.permute.xlu0 %831  ;;  %v852_v40 = vadd.s32 3, %v1808_v23 }
 0x2a3   : > { %v765_v43 = vsel %vm490_vm1, %v760_v41, 0.0  ;;  %vm854_vm8 = vcmp.lt.s32.totalorder %v852_v40, 128 }
 0x2a4   : > { %v766_v6 = vrot.slane %v765_v43, 4 }
 0x2a6   : > { %v767_v44 = vadd.f32 %v766_v6, %v765_v43 }
 0x2a8   : > { %v768_v45 = vrot.slane %v767_v44, 2 }
 0x2aa   : > { %v769_v46 = vadd.f32 %v768_v45, %v767_v44 }
 0x2ac   : > { %v770_v47 = vrot.slane %v769_v46, 1 }
 0x2ae   : > { %v771_v48 = vadd.f32 %v770_v47, %v769_v46 }
 0x2b0   : > { %v772_v49 = vmul.f32 0.25, %v771_v48 }
 0x2b2   : > { %v773_v50 = vsub.f32 %v760_v41, %v772_v49  ;;  %v846_v41 = vpop.permute.xlu1 %845 }
 0x2b4   : > { %v774_v51 = vmul.f32 %v773_v50, %v773_v50 }
 0x2b6   : > { %v775_v7 = vsel %vm490_vm1, %v774_v51, 0.0  ;;  %v861_v44 = vpop.permute.xlu1 %860 }
 0x2b7   : > { %v776_v52 = vrot.slane %v775_v7, 4 }
 0x2b9   : > { %v777_v53 = vadd.f32 %v776_v52, %v775_v7 }
 0x2ba   : > { %v870_v51 = vpop.permute.xlu1 %869 }
 0x2bb   : > { %v778_v54 = vrot.slane %v777_v53, 2 }
 0x2bd   : > { %v779_v55 = vadd.f32 %v778_v54, %v777_v53 }
 0x2bf   : > { %v780_v56 = vrot.slane %v779_v55, 1 }
 0x2c1   : > { %v781_v57 = vadd.f32 %v780_v56, %v779_v55 }
 0x2c3   : > { %v782_v2 = vmul.f32 0.25, %v781_v57 }
 0x2c5   : > { %v783_v58 = vadd.f32 1e-05, %v782_v2 }
 0x2c7   : > { %1606 = vrsqrt.f32 %v783_v58 }
 0x2d1   : > { %v1607_v59 = vpop.eup %1606 }
 0x2d2   : > { %v785_v60 = vmul.f32 %v1607_v59, %v773_v50 }
 0x2d4   : > { %v791_v62 = vmul.f32 %v789_v61, %v785_v60 }
 0x2d6   : > { %v797_v1 = vadd.f32 %v795_v63, %v791_v62 }
 0x2d8   : > { %v799_v3 = vmul.f32 0.70710677, %v797_v1  ;;  %v798_v31 = vmul.f32 0.5, %v797_v1 }
 0x2da   : > { %v802_v4 = vand.u32 2147483647, %v799_v3  ;;  %vm800_vm6 = vcmp.ge.f32.partialorder %v799_v3, 0.0 }
 0x2db   : > { %v801_v29 = vsel %vm800_vm6, 1.0, %v1651_v27 }
 0x2dc   : > { %v803_v5 = vmul.f32 0.3275911, %v802_v4  ;;  %v816_v9 = vsub.f32 0.0, %v802_v4 }
 0x2de   : > { %v804_v8 = vadd.f32 1.0, %v803_v5  ;;  %v817_v11 = vmul.f32 %v816_v9, %v802_v4 }
 0x2e0   : > { %1608 = vrcp.f32 %v804_v8  ;;  %v818_v16 = vmul.f32 1.442695, %v817_v11  ;;  %v901_v11 = vpop.permute.xlu1 %900 }
 0x2e2   : > { %1610 = vpow2.f32 %v818_v16 }
 0x2ea   : > { %v1609_v10 = vpop.eup %1608 }
 0x2eb   : > { %v807_v12 = vmul.f32 1.0614054, %v1609_v10 }
 0x2ec   : > { %v1611_v25 = vpop.eup %1610 }
 0x2ed   : > { %v808_v14 = vadd.f32 -1.4531521, %v807_v12 }
 0x2ef   : > { %v809_v17 = vmul.f32 %v1609_v10, %v808_v14 }
 0x2f1   : > { %v810_v18 = vadd.f32 1.4214138, %v809_v17 }
 0x2f3   : > { %v811_v19 = vmul.f32 %v1609_v10, %v810_v18 }
 0x2f5   : > { %v812_v20 = vadd.f32 -0.28449672, %v811_v19 }
 0x2f7   : > { %v813_v21 = vmul.f32 %v1609_v10, %v812_v20 }
 0x2f9   : > { %v814_v22 = vadd.f32 0.2548296, %v813_v21 }
 0x2fb   : > { %v815_v24 = vmul.f32 %v1609_v10, %v814_v22 }
 0x2fd   : > { %v820_v26 = vmul.f32 %v1611_v25, %v815_v24 }
 0x2ff   : > { %v821_v28 = vsub.f32 1.0, %v820_v26 }
 0x301   : > { %v822_v30 = vmul.f32 %v821_v28, %v801_v29 }
 0x303   : > { %v823_v32 = vadd.f32 1.0, %v822_v30 }
 0x305   : > { %v824_v33 = vmul.f32 %v823_v32, %v798_v31 }
 0x307   : > { %v1849_v34 = vadd.f32 %v824_v33, %v1793_v15  ;;  %v837_v15 = vadd.s32 4294967293, %v1808_v23 }
 0x309   : > { %v826_v35 = vmul.f32 %v1791_v13, %v1849_v34  ;;  %vm838_vm7 = vcmp.ge.s32.totalorder %v837_v15, 0 }
 0x30b   : > { %835 = vrot.lane.b32.xlu0 %v826_v35, %s1652_s16  ;;  %v834_v45 = vmul.f32 %v832_v39, %v826_v35 }
 0x30f   : > { %850 = vrot.lane.b32.xlu0 %v826_v35, %s1653_s17 }
 0x313   : > { %906 = vperm.xlu0 %1596, %v1511_v36  }
 0x317   : > { %1055 = vperm.xlu0 %1596, %v1517_v37  }
 0x31b   : > { %1106 = vperm.xlu0 %1596, %v1839_v38  }
 0x37d   : > { %v836_v42 = vpop.permute.xlu0 %835 }
 0x37e   : > { %v843_v43 = vsel %vm838_vm7, %v836_v42, 0.0 }
 0x37f   : > { %v848_v6 = vmul.f32 %v846_v41, %v843_v43 }
 0x381   : > { %v851_v46 = vpop.permute.xlu0 %850  ;;  %v849_v48 = vadd.f32 %v848_v6, %v834_v45  ;;  %v1519_v45 = vld [vmem:[%s1936_s5 + $0x8] sm:$0xf] }
 0x382   : > { %v858_v47 = vsel %vm854_vm8, %v851_v46, 0.0  ;;  %1130 = vperm.xlu1 %1599, %v1519_v45   ;;  %v1520_v46 = vld [vmem:[%s1939_s8 + $0x8] sm:$0xf] }
 0x383   : > { %v863_v49 = vmul.f32 %v861_v44, %v858_v47  ;;  %v1512_v44 = vld [vmem:[%s1937_s6 + $0x4] sm:$0xf]  ;;  %v1523_v47 = vld [vmem:[%s1938_s7 + $0x8] sm:$0xf] }
 0x384   : > { %v1521_v45 = vld [vmem:[%s1940_s9 + $0x8] sm:$0xf] }
 0x385   : > { %v864_v50 = vadd.f32 %v863_v49, %v849_v48  ;;  %v1527_v48 = vld [vmem:[%s1942_s11 + $0x8] sm:$0xf] }
 0x386   : > { %1161 = vperm.xlu1 %1599, %v1520_v46   ;;  %v1526_v46 = vld [vmem:[%s1941_s10 + $0x8] sm:$0xf] }
 0x387   : > { %v872_v38 = vadd.f32 %v870_v51, %v864_v50 }
 0x389   : > { %v877_v7 = vsel %vm490_vm1, %v872_v38, 0.0 }
 0x38a   : > { %v878_v52 = vrot.slane %v877_v7, 4  ;;  %1204 = vperm.xlu1 %1599, %v1523_v47   ;;  %v1098_v47 = vadd.s32 4294967287, %v1808_v23 }
 0x38c   : > { %v879_v53 = vadd.f32 %v878_v52, %v877_v7  ;;  %vm1099_vm11 = vcmp.ge.s32.totalorder %v1098_v47, 0 }
 0x38e   : > { %v880_v54 = vrot.slane %v879_v53, 2  ;;  %1316 = vperm.xlu1 %1599, %v1527_v48  }
 0x390   : > { %v881_v55 = vadd.f32 %v880_v54, %v879_v53 }
 0x392   : > { %v882_v56 = vrot.slane %v881_v55, 1  ;;  %v907_v14 = vpop.permute.xlu0 %906 }
 0x394   : > { %v883_v57 = vadd.f32 %v882_v56, %v881_v55 }
 0x396   : > { %v884_v2 = vmul.f32 0.25, %v883_v57 }
 0x398   : > { %v885_v58 = vsub.f32 %v872_v38, %v884_v2 }
 0x39a   : > { %v886_v59 = vmul.f32 %v885_v58, %v885_v58 }
 0x39c   : > { %v887_v60 = vsel %vm490_vm1, %v886_v59, 0.0 }
 0x39d   : > { %v888_v61 = vrot.slane %v887_v60, 4 }
 0x39f   : > { %v889_v62 = vadd.f32 %v888_v61, %v887_v60 }
 0x3a1   : > { %v890_v63 = vrot.slane %v889_v62, 2 }
 0x3a3   : > { %v891_v1 = vadd.f32 %v890_v63, %v889_v62 }
 0x3a5   : > { %v892_v3 = vrot.slane %v891_v1, 1 }
 0x3a7   : > { %v893_v4 = vadd.f32 %v892_v3, %v891_v1 }
 0x3a9   : > { %v894_v5 = vmul.f32 0.25, %v893_v4 }
 0x3ab   : > { %v895_v8 = vadd.f32 1e-05, %v894_v5 }
 0x3ad   : > { %1612 = vrsqrt.f32 %v895_v8 }
 0x3b7   : > { %v1613_v9 = vpop.eup %1612 }
 0x3b8   : > { %v897_v10 = vmul.f32 %v1613_v9, %v885_v58 }
 0x3ba   : > { %v903_v12 = vmul.f32 %v901_v11, %v897_v10 }
 0x3bc   : > { %v909_v16 = vadd.f32 %v907_v14, %v903_v12  ;;  %v1056_v12 = vpop.permute.xlu0 %1055 }
 0x3be   : > { %v911_v17 = vmul.f32 0.70710677, %v909_v16  ;;  %v910_v42 = vmul.f32 0.5, %v909_v16 }
 0x3c0   : > { %v914_v18 = vand.u32 2147483647, %v911_v17  ;;  %vm912_vm9 = vcmp.ge.f32.partialorder %v911_v17, 0.0  ;;  %v1107_v48 = vpop.permute.xlu0 %1106 }
 0x3c1   : > { %v913_v40 = vsel %vm912_vm9, 1.0, %v1651_v27 }
 0x3c2   : > { %v915_v19 = vmul.f32 0.3275911, %v914_v18  ;;  %v928_v21 = vsub.f32 0.0, %v914_v18 }
 0x3c4   : > { %v916_v20 = vadd.f32 1.0, %v915_v19  ;;  %v929_v24 = vmul.f32 %v928_v21, %v914_v18 }
 0x3c6   : > { %1614 = vrcp.f32 %v916_v20  ;;  %v930_v28 = vmul.f32 1.442695, %v929_v24 }
 0x3c8   : > { %1616 = vpow2.f32 %v930_v28 }
 0x3d0   : > { %v1615_v22 = vpop.eup %1614 }
 0x3d1   : > { %v919_v25 = vmul.f32 1.0614054, %v1615_v22 }
 0x3d2   : > { %v1617_v37 = vpop.eup %1616 }
 0x3d3   : > { %v920_v26 = vadd.f32 -1.4531521, %v919_v25 }
 0x3d5   : > { %v921_v29 = vmul.f32 %v1615_v22, %v920_v26 }
 0x3d7   : > { %v922_v30 = vadd.f32 1.4214138, %v921_v29 }
 0x3d9   : > { %v923_v31 = vmul.f32 %v1615_v22, %v922_v30 }
 0x3db   : > { %v924_v32 = vadd.f32 -0.28449672, %v923_v31 }
 0x3dd   : > { %v925_v33 = vmul.f32 %v1615_v22, %v924_v32 }
 0x3df   : > { %v926_v35 = vadd.f32 0.2548296, %v925_v33 }
 0x3e1   : > { %v927_v36 = vmul.f32 %v1615_v22, %v926_v35 }
 0x3e3   : > { %v932_v15 = vmul.f32 %v1617_v37, %v927_v36 }
 0x3e5   : > { %v933_v39 = vsub.f32 1.0, %v932_v15 }
 0x3e7   : > { %v934_v41 = vmul.f32 %v933_v39, %v913_v40 }
 0x3e9   : > { %v935_v43 = vadd.f32 1.0, %v934_v41 }
 0x3eb   : > { %v936_v6 = vmul.f32 %v935_v43, %v910_v42 }
 0x3ed   : > { %1553 = vmatpush3.msk.msra.mxu0 %vm490_vm1, %v936_v6 }
 0x3ee   : > { %1555 = vmatmul.mubr.msk.f32.vlgmr.msra.gmra.mrb[2].mxu0 %vm486_vm2, %v1512_v44  ;;  %1562 = vmatprep.subr.mxu0 %v1644_v0 }
 0x3ef   : > { %1564 = vmatprep.mubr.msk.f32.mxu0 %vm1645_vm0, %v1644_v0  ;;  %v944_v0 = vpop.permute.xlu1 %943 }
 0x3f3   : > { %v1050_v10 = vpop.permute.xlu1 %1049 }
 0x4c1   : > { %v1018_v49 = vpop.f32.mrb[2].mxu0 }
 0x4c2   : > { %v1019_v50 = vadd.f32 %v1018_v49, %v944_v0  ;;  %v1556_v51 = vpop.f32.mrb[3].mxu0  ;;  %v1113_v0 = vadd.s32 9, %v1808_v23  ;;  %v1093_v49 = vpop.permute.xlu1 %1092 }
 0x4c4   : > { %v1026_v38 = vsel %vm490_vm1, %v1019_v50, 0.0  ;;  %vm1115_vm12 = vcmp.lt.s32.totalorder %v1113_v0, 128 }
 0x4c5   : > { %v1027_v7 = vrot.slane %v1026_v38, 4 }
 0x4c7   : > { %v1028_v52 = vadd.f32 %v1027_v7, %v1026_v38  ;;  %v1122_v7 = vpop.permute.xlu1 %1121 }
 0x4c9   : > { %v1029_v53 = vrot.slane %v1028_v52, 2 }
 0x4cb   : > { %v1030_v54 = vadd.f32 %v1029_v53, %v1028_v52 }
 0x4cd   : > { %v1031_v55 = vrot.slane %v1030_v54, 1 }
 0x4cf   : > { %v1032_v56 = vadd.f32 %v1031_v55, %v1030_v54 }
 0x4d1   : > { %v1033_v57 = vmul.f32 0.25, %v1032_v56 }
 0x4d3   : > { %v1034_v2 = vsub.f32 %v1019_v50, %v1033_v57 }
 0x4d5   : > { %v1035_v58 = vmul.f32 %v1034_v2, %v1034_v2 }
 0x4d7   : > { %v1036_v59 = vsel %vm490_vm1, %v1035_v58, 0.0 }
 0x4d8   : > { %v1037_v60 = vrot.slane %v1036_v59, 4 }
 0x4da   : > { %v1038_v61 = vadd.f32 %v1037_v60, %v1036_v59 }
 0x4dc   : > { %v1039_v62 = vrot.slane %v1038_v61, 2 }
 0x4de   : > { %v1040_v63 = vadd.f32 %v1039_v62, %v1038_v61 }
 0x4e0   : > { %v1041_v1 = vrot.slane %v1040_v63, 1 }
 0x4e2   : > { %v1042_v3 = vadd.f32 %v1041_v1, %v1040_v63 }
 0x4e4   : > { %v1043_v4 = vmul.f32 0.25, %v1042_v3 }
 0x4e6   : > { %v1044_v5 = vadd.f32 1e-05, %v1043_v4 }
 0x4e8   : > { %1618 = vrsqrt.f32 %v1044_v5 }
 0x4f2   : > { %v1619_v8 = vpop.eup %1618 }
 0x4f3   : > { %v1046_v9 = vmul.f32 %v1619_v8, %v1034_v2  ;;  %v1131_v2 = vpop.permute.xlu1 %1130 }
 0x4f5   : > { %v1052_v11 = vmul.f32 %v1050_v10, %v1046_v9 }
 0x4f7   : > { %v1058_v14 = vadd.f32 %v1056_v12, %v1052_v11 }
 0x4f9   : > { %v1060_v16 = vmul.f32 0.70710677, %v1058_v14  ;;  %v1059_v41 = vmul.f32 0.5, %v1058_v14 }
 0x4fb   : > { %v1063_v17 = vand.u32 2147483647, %v1060_v16  ;;  %vm1061_vm10 = vcmp.ge.f32.partialorder %v1060_v16, 0.0 }
 0x4fc   : > { %v1062_v39 = vsel %vm1061_vm10, 1.0, %v1651_v27 }
 0x4fd   : > { %v1064_v18 = vmul.f32 0.3275911, %v1063_v17  ;;  %v1077_v20 = vsub.f32 0.0, %v1063_v17 }
 0x4ff   : > { %v1065_v19 = vadd.f32 1.0, %v1064_v18  ;;  %v1078_v22 = vmul.f32 %v1077_v20, %v1063_v17 }
 0x501   : > { %1620 = vrcp.f32 %v1065_v19  ;;  %v1079_v26 = vmul.f32 1.442695, %v1078_v22 }
 0x503   : > { %1622 = vpow2.f32 %v1079_v26 }
 0x50b   : > { %v1621_v21 = vpop.eup %1620 }
 0x50c   : > { %v1068_v24 = vmul.f32 1.0614054, %v1621_v21 }
 0x50d   : > { %v1623_v36 = vpop.eup %1622 }
 0x50e   : > { %v1069_v25 = vadd.f32 -1.4531521, %v1068_v24 }
 0x510   : > { %v1070_v28 = vmul.f32 %v1621_v21, %v1069_v25 }
 0x512   : > { %v1071_v29 = vadd.f32 1.4214138, %v1070_v28 }
 0x514   : > { %v1072_v30 = vmul.f32 %v1621_v21, %v1071_v29 }
 0x516   : > { %v1073_v31 = vadd.f32 -0.28449672, %v1072_v30 }
 0x518   : > { %v1074_v32 = vmul.f32 %v1621_v21, %v1073_v31 }
 0x51a   : > { %v1075_v33 = vadd.f32 0.2548296, %v1074_v32 }
 0x51c   : > { %v1076_v35 = vmul.f32 %v1621_v21, %v1075_v33  ;;  %v1162_v21 = vpop.permute.xlu1 %1161 }
 0x51e   : > { %v1081_v37 = vmul.f32 %v1623_v36, %v1076_v35 }
 0x520   : > { %v1082_v15 = vsub.f32 1.0, %v1081_v37 }
 0x522   : > { %v1083_v40 = vmul.f32 %v1082_v15, %v1062_v39 }
 0x524   : > { %v1084_v42 = vadd.f32 1.0, %v1083_v40 }
 0x526   : > { %v1085_v43 = vmul.f32 %v1084_v42, %v1059_v41 }
 0x528   : > { %v1889_v6 = vadd.f32 %v1085_v43, %v1849_v34  ;;  %v1350_v34 = vld [vmem:[%s1944_s13] sm:$0xf] }
 0x52a   : > { %v1087_v44 = vmul.f32 %v1791_v13, %v1889_v6 }
 0x52c   : > { %1096 = vrot.lane.b32.xlu0 %v1087_v44, %s1654_s20  ;;  %v1095_v52 = vmul.f32 %v1093_v49, %v1087_v44 }
 0x530   : > { %1111 = vrot.lane.b32.xlu0 %v1087_v44, %s1655_s21  ;;  %s476_s21 = scalar_lea.vmem %s1945_s14, %s1501_s19 }
 0x534   : > { %1167 = vperm.xlu0 %1596, %v1521_v45  }
 0x538   : > { %1310 = vperm.xlu0 %1596, %v1526_v46  }
 0x53c   : > { %1353 = vperm.xlu0 %1596, %v1350_v34  }
 0x59e   : > { %v1097_v50 = vpop.permute.xlu0 %1096 }
 0x59f   : > { %v1104_v51 = vsel %vm1099_vm11, %v1097_v50, 0.0 }
 0x5a0   : > { %v1109_v38 = vmul.f32 %v1107_v48, %v1104_v51  ;;  %v1522_v51 = vld [vmem:[%s1937_s6 + $0x8] sm:$0xf] }
 0x5a2   : > { %v1112_v53 = vpop.permute.xlu0 %1111  ;;  %v1110_v55 = vadd.f32 %v1109_v38, %v1095_v52  ;;  %v1205_v38 = vpop.permute.xlu1 %1204 }
 0x5a3   : > { %v1119_v54 = vsel %vm1115_vm12, %v1112_v53, 0.0 }
 0x5a4   : > { %v1124_v56 = vmul.f32 %v1122_v7, %v1119_v54 }
 0x5a6   : > { %v1125_v57 = vadd.f32 %v1124_v56, %v1110_v55 }
 0x5a8   : > { %v1133_v58 = vadd.f32 %v1131_v2, %v1125_v57 }
 0x5aa   : > { %v1138_v59 = vsel %vm490_vm1, %v1133_v58, 0.0 }
 0x5ab   : > { %v1139_v60 = vrot.slane %v1138_v59, 4 }
 0x5ad   : > { %v1140_v61 = vadd.f32 %v1139_v60, %v1138_v59 }
 0x5af   : > { %v1141_v62 = vrot.slane %v1140_v61, 2 }
 0x5b1   : > { %v1142_v23 = vadd.f32 %v1141_v62, %v1140_v61 }
 0x5b3   : > { %v1143_v63 = vrot.slane %v1142_v23, 1  ;;  %v1168_v24 = vpop.permute.xlu0 %1167 }
 0x5b5   : > { %v1144_v1 = vadd.f32 %v1143_v63, %v1142_v23 }
 0x5b7   : > { %v1145_v3 = vmul.f32 0.25, %v1144_v1 }
 0x5b9   : > { %v1146_v4 = vsub.f32 %v1133_v58, %v1145_v3 }
 0x5bb   : > { %v1147_v5 = vmul.f32 %v1146_v4, %v1146_v4 }
 0x5bd   : > { %v1148_v8 = vsel %vm490_vm1, %v1147_v5, 0.0 }
 0x5be   : > { %v1149_v9 = vrot.slane %v1148_v8, 4 }
 0x5c0   : > { %v1150_v10 = vadd.f32 %v1149_v9, %v1148_v8 }
 0x5c2   : > { %v1151_v11 = vrot.slane %v1150_v10, 2 }
 0x5c4   : > { %v1152_v12 = vadd.f32 %v1151_v11, %v1150_v10 }
 0x5c6   : > { %v1153_v14 = vrot.slane %v1152_v12, 1 }
 0x5c8   : > { %v1154_v16 = vadd.f32 %v1153_v14, %v1152_v12  ;;  %v1311_v14 = vpop.permute.xlu0 %1310 }
 0x5ca   : > { %v1155_v17 = vmul.f32 0.25, %v1154_v16 }
 0x5cc   : > { %v1156_v18 = vadd.f32 1e-05, %v1155_v17  ;;  %v1317_v17 = vpop.permute.xlu1 %1316 }
 0x5ce   : > { %1624 = vrsqrt.f32 %v1156_v18 }
 0x5d8   : > { %v1625_v19 = vpop.eup %1624 }
 0x5d9   : > { %v1158_v20 = vmul.f32 %v1625_v19, %v1146_v4 }
 0x5db   : > { %v1164_v22 = vmul.f32 %v1162_v21, %v1158_v20 }
 0x5dd   : > { %v1170_v25 = vadd.f32 %v1168_v24, %v1164_v22 }
 0x5df   : > { %v1172_v26 = vmul.f32 0.70710677, %v1170_v25  ;;  %v1171_v0 = vmul.f32 0.5, %v1170_v25 }
 0x5e1   : > { %v1175_v28 = vand.u32 2147483647, %v1172_v26  ;;  %vm1173_vm13 = vcmp.ge.f32.partialorder %v1172_v26, 0.0 }
 0x5e2   : > { %v1174_v47 = vsel %vm1173_vm13, 1.0, %v1651_v27 }
 0x5e3   : > { %v1176_v29 = vmul.f32 0.3275911, %v1175_v28  ;;  %v1189_v31 = vsub.f32 0.0, %v1175_v28 }
 0x5e5   : > { %v1177_v30 = vadd.f32 1.0, %v1176_v29  ;;  %v1190_v33 = vmul.f32 %v1189_v31, %v1175_v28 }
 0x5e7   : > { %1626 = vrcp.f32 %v1177_v30  ;;  %v1191_v37 = vmul.f32 1.442695, %v1190_v33 }
 0x5e9   : > { %1628 = vpow2.f32 %v1191_v37 }
 0x5f1   : > { %v1627_v32 = vpop.eup %1626 }
 0x5f2   : > { %v1180_v35 = vmul.f32 1.0614054, %v1627_v32 }
 0x5f3   : > { %v1629_v45 = vpop.eup %1628 }
 0x5f4   : > { %v1181_v36 = vadd.f32 -1.4531521, %v1180_v35 }
 0x5f6   : > { %v1182_v15 = vmul.f32 %v1627_v32, %v1181_v36 }
 0x5f8   : > { %v1183_v39 = vadd.f32 1.4214138, %v1182_v15 }
 0x5fa   : > { %v1184_v40 = vmul.f32 %v1627_v32, %v1183_v39 }
 0x5fc   : > { %v1185_v41 = vadd.f32 -0.28449672, %v1184_v40 }
 0x5fe   : > { %v1186_v42 = vmul.f32 %v1627_v32, %v1185_v41 }
 0x600   : > { %v1187_v43 = vadd.f32 0.2548296, %v1186_v42 }
 0x602   : > { %v1188_v44 = vmul.f32 %v1627_v32, %v1187_v43 }
 0x604   : > { %v1193_v46 = vmul.f32 %v1629_v45, %v1188_v44 }
 0x606   : > { %v1194_v34 = vsub.f32 1.0, %v1193_v46 }
 0x608   : > { %v1195_v48 = vmul.f32 %v1194_v34, %v1174_v47 }
 0x60a   : > { %v1196_v49 = vadd.f32 1.0, %v1195_v48  ;;  %v1349_v48 = vld [vmem:[%s1943_s12] sm:$0xf] }
 0x60c   : > { %v1197_v50 = vmul.f32 %v1196_v49, %v1171_v0  ;;  %v1354_v0 = vpop.permute.xlu0 %1353 }
 0x60e   : > { %1558 = vmatpush3.msk.msra.mxu1 %vm490_vm1, %v1197_v50 }
 0x60f   : > { %1560 = vmatmul.mubr.msk.f32.vlgmr.msra.gmra.mrb[2].mxu1 %vm486_vm2, %v1522_v51 }
 0x6e2   : > { %v1279_v7 = vpop.f32.mrb[2].mxu1 }
 0x6e3   : > { %v1280_v52 = vadd.f32 %v1279_v7, %v1205_v38  ;;  %v1561_v53 = vpop.f32.mrb[3].mxu1 }
 0x6e5   : > { %v1287_v54 = vsel %vm490_vm1, %v1280_v52, 0.0 }
 0x6e6   : > { %v1288_v55 = vrot.slane %v1287_v54, 4 }
 0x6e8   : > { %v1289_v56 = vadd.f32 %v1288_v55, %v1287_v54 }
 0x6ea   : > { %v1290_v57 = vrot.slane %v1289_v56, 2 }
 0x6ec   : > { %v1291_v2 = vadd.f32 %v1290_v57, %v1289_v56 }
 0x6ee   : > { %v1292_v58 = vrot.slane %v1291_v2, 1 }
 0x6f0   : > { %v1293_v59 = vadd.f32 %v1292_v58, %v1291_v2 }
 0x6f2   : > { %v1294_v60 = vmul.f32 0.25, %v1293_v59 }
 0x6f4   : > { %v1295_v61 = vsub.f32 %v1280_v52, %v1294_v60 }
 0x6f6   : > { %v1296_v62 = vmul.f32 %v1295_v61, %v1295_v61 }
 0x6f8   : > { %v1297_v23 = vsel %vm490_vm1, %v1296_v62, 0.0 }
 0x6f9   : > { %v1298_v63 = vrot.slane %v1297_v23, 4 }
 0x6fb   : > { %v1299_v1 = vadd.f32 %v1298_v63, %v1297_v23 }
 0x6fd   : > { %v1300_v3 = vrot.slane %v1299_v1, 2 }
 0x6ff   : > { %v1301_v4 = vadd.f32 %v1300_v3, %v1299_v1 }
 0x701   : > { %v1302_v5 = vrot.slane %v1301_v4, 1 }
 0x703   : > { %v1303_v8 = vadd.f32 %v1302_v5, %v1301_v4 }
 0x705   : > { %v1304_v9 = vmul.f32 0.25, %v1303_v8 }
 0x707   : > { %v1305_v10 = vadd.f32 1e-05, %v1304_v9 }
 0x709   : > { %1630 = vrsqrt.f32 %v1305_v10 }
 0x713   : > { %v1631_v11 = vpop.eup %1630 }
 0x714   : > { %v1307_v12 = vmul.f32 %v1631_v11, %v1295_v61 }
 0x716   : > { %v1313_v16 = vmul.f32 %v1311_v14, %v1307_v12 }
 0x718   : > { %v1319_v18 = vadd.f32 %v1317_v17, %v1313_v16 }
 0x71a   : > { %v1321_v19 = vmul.f32 0.70710677, %v1319_v18  ;;  %v1320_v44 = vmul.f32 0.5, %v1319_v18 }
 0x71c   : > { %v1324_v20 = vand.u32 2147483647, %v1321_v19  ;;  %vm1322_vm14 = vcmp.ge.f32.partialorder %v1321_v19, 0.0 }
 0x71d   : > { %v1323_v42 = vsel %vm1322_vm14, 1.0, %v1651_v27 }
 0x71e   : > { %v1325_v21 = vmul.f32 0.3275911, %v1324_v20  ;;  %v1338_v24 = vsub.f32 0.0, %v1324_v20 }
 0x720   : > { %v1326_v22 = vadd.f32 1.0, %v1325_v21  ;;  %v1339_v26 = vmul.f32 %v1338_v24, %v1324_v20 }
 0x722   : > { %1632 = vrcp.f32 %v1326_v22  ;;  %v1340_v30 = vmul.f32 1.442695, %v1339_v26 }
 0x724   : > { %1634 = vpow2.f32 %v1340_v30 }
 0x72c   : > { %v1633_v25 = vpop.eup %1632 }
 0x72d   : > { %v1329_v28 = vmul.f32 1.0614054, %v1633_v25 }
 0x72e   : > { %v1635_v39 = vpop.eup %1634 }
 0x72f   : > { %v1330_v29 = vadd.f32 -1.4531521, %v1329_v28 }
 0x731   : > { %v1331_v31 = vmul.f32 %v1633_v25, %v1330_v29 }
 0x733   : > { %v1332_v32 = vadd.f32 1.4214138, %v1331_v31 }
 0x735   : > { %v1333_v33 = vmul.f32 %v1633_v25, %v1332_v32 }
 0x737   : > { %v1334_v35 = vadd.f32 -0.28449672, %v1333_v33 }
 0x739   : > { %v1335_v36 = vmul.f32 %v1633_v25, %v1334_v35 }
 0x73b   : > { %v1336_v37 = vadd.f32 0.2548296, %v1335_v36 }
 0x73d   : > { %v1337_v15 = vmul.f32 %v1633_v25, %v1336_v37 }
 0x73f   : > { %v1342_v40 = vmul.f32 %v1635_v39, %v1337_v15 }
 0x741   : > { %v1343_v41 = vsub.f32 1.0, %v1342_v40 }
 0x743   : > { %v1344_v43 = vmul.f32 %v1343_v41, %v1323_v42 }
 0x745   : > { %v1345_v45 = vadd.f32 1.0, %v1344_v43 }
 0x747   : > { %v1346_v46 = vmul.f32 %v1345_v45, %v1320_v44 }
 0x749   : > { %v1347_v34 = vadd.f32 %v1346_v46, %v1889_v6 }
 0x74b   : > { %v1348_v47 = vmul.f32 %v1791_v13, %v1347_v34 }
 0x74d   : > { %1563 = vmatpush3.msk.msra.mxu0 %vm490_vm1, %v1348_v47 }
 0x74e   : > { %1565 = vmatmul.mubr.msk.f32.vlgmr.msra.gmra.mrb[4].mxu0 %vm486_vm2, %v1349_v48 }
 0x821   : > { %v1428_v49 = vpop.f32.mrb[4].mxu0 }
 0x822   : > { %v1429_v50 = vadd.f32 %v1428_v49, %v1354_v0  ;;  %v1566_v27 = vpop.f32.mrb[5].mxu0 }
 0x824   : > { %v1432_v6 = vmul.f32 %v1791_v13, %v1429_v50 }
 0x826   : > { %1433 = vst [vmem:[%s476_s21] sm:$0xf] %v1432_v6 }
 0x827 PF: > { %s24_s29 = sadd.s32 1, %s1642_s29  }
 0x828   : > { %p21_p4 = scmp.ge.s32.totalorder %s24_s29, 4  }
 0x82a   :  { %23 = sbr.rel (!%p21_p4) target bundleno = 1 (0x1), region = 125 }

// kernel: sdp_forward.3
= control target key start
LH: loop header
LB: loop body
LE: loop exit
PB: predicated region body
PF: predicated region fallthrough
CT: control target
= control target key end

     0   :  { %s1652_s29 = smov 0   ;;  %s1843_s0 = inlined_call_operand.vmem [shape: f32[2,1,128], index: 0, kind: input, shape index: {}]   ;;  %s1844_s1 = inlined_call_operand.vmem [shape: f32[2,1,128], index: 1, kind: input, shape index: {}]   ;;  %s1845_s2 = inlined_call_operand.vmem [shape: f32[4,1], index: 2, kind: input, shape index: {}]   ;;  %s1846_s3 = inlined_call_operand.vmem [shape: f32[4,1], index: 3, kind: input, shape index: {}]   ;;  %s1847_s4 = inlined_call_operand.vmem [shape: f32[3,4,3], index: 4, kind: input, shape index: {}]   ;;  %s1848_s5 = inlined_call_operand.vmem [shape: f32[3,4,1], index: 5, kind: input, shape index: {}]   ;;  %s1849_s6 = inlined_call_operand.vmem [shape: f32[3,4,4], index: 6, kind: input, shape index: {}]   ;;  %s1850_s7 = inlined_call_operand.vmem [shape: f32[3,4,1], index: 7, kind: input, shape index: {}]   ;;  %s1851_s8 = inlined_call_operand.vmem [shape: f32[3,4,1], index: 8, kind: input, shape index: {}]   ;;  %s1852_s9 = inlined_call_operand.vmem [shape: f32[3,4,1], index: 9, kind: input, shape index: {}]   ;;  %s1853_s10 = inlined_call_operand.vmem [shape: f32[3,4,1], index: 10, kind: input, shape index: {}]   ;;  %s1854_s11 = inlined_call_operand.vmem [shape: f32[3,4,1], index: 11, kind: input, shape index: {}]   ;;  %s1855_s12 = inlined_call_operand.vmem [shape: f32[4,4], index: 12, kind: input, shape index: {}]   ;;  %s1856_s13 = inlined_call_operand.vmem [shape: f32[4,1], index: 13, kind: input, shape index: {}]   ;;  %s1857_s14 = inlined_call_operand.vmem [shape: f32[2,4,128], index: 14, kind: output, shape index: {}]  }
   0x1 LB: > { %s1427_s30 = sadd.s32 4294967295, %s1563_s29   ;;  %p1431_p0 = scmp.ge.s32.totalorder %s1563_s29, 1  ;;  %s1563_s29 = sphi %s1652_s29, %s24_s29  }
   0x2   : > { %p418_p1 = scmp.lt.s32.totalorder %s1563_s29, 3 }
   0x4   : > { %p419_p2 = pnand %p1431_p0, %p418_p1 }
   0x5   : > { %v476_v0 = vld [vmem:[%s1845_s2] sm:$0xf] (!%p419_p2)  ;;  %v1565_v1 = vmov (!%p419_p2), 0   ;;  %v1566_v2 = vmov (!%p419_p2), 1   ;;  %v1567_v5 = vmov (!%p419_p2), 2   ;;  %p464_p3 = scmp.lt.s32.totalorder (!%p419_p2), %s1427_s30, 1  ;;  %v496_v21 = vlaneseq (!%p419_p2) }
   0x6   : > { %422 = sbr.rel (%p419_p2) target bundleno = 2004 (0x7d4), region = 76  ;;  %1509 = vset.pattern.permute.xlu0 (!%p419_p2), %v1565_v1  ;;  %1510 = vset.pattern.permute.xlu1 (!%p419_p2), %v1566_v2  ;;  %v505_v3 = vld [vmem:[%s1847_s4] sm:$0xf] (!%p419_p2)  ;;  %s1568_s27 = smov (!%p419_p2), 127   ;;  %v1437_v18 = vld [vmem:[%s1847_s4 + $0x4] sm:$0xf] (!%p419_p2) }
   0x7   : > { %479 = vperm.xlu0 (!%p419_p2), %1509, %v476_v0   ;;  %508 = vperm.xlu1 (!%p419_p2), %1510, %v505_v3   ;;  %v489_v4 = vld [vmem:[%s1846_s3] sm:$0xf] (!%p419_p2)  ;;  %s1569_s28 = smov (!%p419_p2), 1   ;;  %v1570_v20 = vmov (!%p419_p2), 0.0   ;;  %vm1571_vm0 = vmmov (!%p419_p2), 0   ;;  %v1720_v23 = vand.u32 (!%p419_p2), 127, %v496_v21 }
   0x8   : > { %v542_v13 = vld [vmem:[%s1848_s5] sm:$0xf] (!%p419_p2)  ;;  %1469 = vmatprep.subr.mxu0 (!%p419_p2), %v1570_v20  ;;  %1474 = vmatprep.subr.mxu1 (!%p419_p2), %v1570_v20  ;;  %vm551_vm3 = vcmask (!%p419_p2), 1043456   ;;  %vm620_vm5 = vcmask (!%p419_p2), 31744   ;;  %s1575_s17 = smov (!%p419_p2), 9   ;;  %s1576_s18 = smov (!%p419_p2), 119  }
   0x9   : > { %v550_v14 = vld [vmem:[%s1852_s9] sm:$0xf] (!%p419_p2)  ;;  %1471 = vmatprep.mubr.msk.f32.mxu0 (!%p419_p2), %vm1571_vm0, %v1570_v20  ;;  %1476 = vmatprep.mubr.msk.f32.mxu1 (!%p419_p2), %vm1571_vm0, %v1570_v20  ;;  %v514_v25 = vadd.s32 (!%p419_p2), 4294967295, %v1720_v23  ;;  %v529_v28 = vadd.s32 (!%p419_p2), 1, %v1720_v23 }
   0xa   : > { %v549_v15 = vld [vmem:[%s1851_s8] sm:$0xf] (!%p419_p2) }
   0xb   : > { %492 = vperm.xlu0 (!%p419_p2), %1509, %v489_v4   ;;  %1511 = vset.pattern.permute.xlu1 (!%p419_p2), %v1565_v1  ;;  %v698_v16 = vld [vmem:[%s1854_s11] sm:$0xf] (!%p419_p2)  ;;  %vm515_vm1 = vcmp.ge.s32.totalorder (!%p419_p2), %v514_v25, 0  ;;  %vm531_vm2 = vcmp.lt.s32.totalorder (!%p419_p2), %v529_v28, 128 }
   0xc   : > { %522 = vperm.xlu1 (!%p419_p2), %1511, %v505_v3   ;;  %v614_v17 = vld [vmem:[%s1850_s7] sm:$0xf] (!%p419_p2) }
   0xd   : > { %s1859_s30 = smov (!%p464_p3, %s1427_s30), 1  ;;  %v697_v19 = vld [vmem:[%s1853_s10] sm:$0xf] }
   0xe   : > { %s466_s23 = scalar_lea.vmem %s1843_s0, %s1859_s30  ;;  %s469_s26 = scalar_lea.vmem %s1844_s1, %s1859_s30 }
   0xf   : > { %1512 = vset.pattern.permute.xlu0 %v1567_v5  ;;  %v1433_v7 = vld [vmem:[%s466_s23] ss:$0 sm:$0xff] }
  0x10   : > { %537 = vperm.xlu0 %1512, %v505_v3   ;;  %v1684_v10 = vld [vmem:[%s469_s26] ss:$0 sm:$0xff] }
  0x14   : > { %1513 = vset.pattern.permute.xlu0 %v1565_v1 }
  0x86   : > { %v480_v6 = vpop.permute.xlu0 %479  ;;  %v509_v22 = vpop.permute.xlu1 %508 }
  0x87   : > { %v488_v8 = vmul.f32 %v1433_v7, %v480_v6 }
  0x8a   : > { %v493_v9 = vpop.permute.xlu0 %492 }
  0x8b   : > { %v1686_v11 = vadd.f32 %v493_v9, %v488_v8  ;;  %v523_v24 = vpop.permute.xlu1 %522 }
  0x8d   : > { %v504_v12 = vmul.f32 %v1684_v10, %v1686_v11 }
  0x8f   : > { %527 = vrot.lane.b32.xlu0 %v504_v12, %s1568_s27  ;;  %512 = vrot.lane.b32.xlu1 %v504_v12, %s1569_s28  ;;  %v538_v26 = vpop.permute.xlu0 %537  ;;  %v511_v32 = vmul.f32 %v509_v22, %v504_v12  ;;  %s1573_s27 = smov 3   ;;  %s1574_s28 = smov 125  }
  0x93   : > { %545 = vperm.xlu1 %1511, %v542_v13   ;;  %582 = vperm.xlu0 %1513, %v550_v14  }
  0x97   : > { %576 = vperm.xlu1 %1511, %v549_v15   ;;  %728 = vperm.xlu0 %1513, %v698_v16  }
  0x9b   : > { %617 = vperm.xlu1 %1511, %v614_v17   ;;  %779 = vperm.xlu0 %1513, %v1437_v18  }
  0x9f   : > { %722 = vperm.xlu1 %1511, %v697_v19  }
  0xa3   : > { %1514 = vset.pattern.permute.xlu1 %v1566_v2 }
  0xa4   : > { %765 = vperm.xlu1 %1514, %v1437_v18  }
  0xa8   : > { %1515 = vset.pattern.permute.xlu1 %v1567_v5 }
  0xa9   : > { %794 = vperm.xlu1 %1515, %v1437_v18  }
  0xad   : > { %1516 = vset.pattern.permute.xlu1 %v1565_v1 }
 0x101   : > { %v513_v27 = vpop.permute.xlu1 %512  ;;  %v528_v30 = vpop.permute.xlu0 %527 }
 0x102   : > { %v520_v29 = vsel %vm515_vm1, %v513_v27, 0.0  ;;  %v535_v33 = vsel %vm531_vm2, %v528_v30, 0.0  ;;  %v1572_v27 = vmov -1.0  }
 0x103   : > { %v525_v31 = vmul.f32 %v523_v24, %v520_v29  ;;  %v540_v35 = vmul.f32 %v538_v26, %v535_v33  ;;  %v613_v33 = vld [vmem:[%s1849_s6] sm:$0xf] }
 0x105   : > { %v526_v34 = vadd.f32 %v525_v31, %v511_v32 }
 0x107   : > { %v541_v36 = vadd.f32 %v540_v35, %v526_v34  ;;  %v1438_v34 = vld [vmem:[%s1848_s5 + $0x4] sm:$0xf] }
 0x108   : > { %803 = vperm.xlu1 %1516, %v1438_v34   ;;  %v1439_v35 = vld [vmem:[%s1851_s8 + $0x4] sm:$0xf] }
 0x10c   : > { %834 = vperm.xlu1 %1516, %v1439_v35  }
 0x112   : > { %v546_v37 = vpop.permute.xlu1 %545  ;;  %v583_v62 = vpop.permute.xlu0 %582 }
 0x113   : > { %v548_v38 = vadd.f32 %v546_v37, %v541_v36  ;;  %v1442_v36 = vld [vmem:[%s1850_s7 + $0x4] sm:$0xf] }
 0x114   : > { %877 = vperm.xlu1 %1516, %v1442_v36   ;;  %v1446_v37 = vld [vmem:[%s1854_s11 + $0x4] sm:$0xf] }
 0x115   : > { %v552_v39 = vsel %vm551_vm3, %v548_v38, 0.0 }
 0x116   : > { %v553_v40 = vrot.slane %v552_v39, 4  ;;  %v577_v60 = vpop.permute.xlu1 %576 }
 0x118   : > { %v554_v41 = vadd.f32 %v553_v40, %v552_v39  ;;  %989 = vperm.xlu1 %1516, %v1446_v37  }
 0x11a   : > { %v555_v42 = vrot.slane %v554_v41, 2  ;;  %v618_v39 = vpop.permute.xlu1 %617 }
 0x11c   : > { %v556_v43 = vadd.f32 %v555_v42, %v554_v41 }
 0x11e   : > { %v557_v44 = vrot.slane %v556_v43, 1 }
 0x120   : > { %v558_v45 = vadd.f32 %v557_v44, %v556_v43 }
 0x122   : > { %v560_v46 = vmul.f32 0.25, %v558_v45 }
 0x124   : > { %v561_v47 = vsub.f32 %v548_v38, %v560_v46  ;;  %v1750_v38 = vld [vmem:[%s1847_s4 + $0x8] sm:$0xf] }
 0x125   : > { %1040 = vperm.xlu1 %1516, %v1750_v38  }
 0x126   : > { %v562_v48 = vmul.f32 %v561_v47, %v561_v47 }
 0x128   : > { %v563_v49 = vsel %vm551_vm3, %v562_v48, 0.0 }
 0x129   : > { %v564_v50 = vrot.slane %v563_v49, 4  ;;  %1518 = vset.pattern.permute.xlu1 %v1567_v5 }
 0x12a   : > { %1055 = vperm.xlu1 %1518, %v1750_v38  }
 0x12b   : > { %v565_v51 = vadd.f32 %v564_v50, %v563_v49 }
 0x12d   : > { %v566_v52 = vrot.slane %v565_v51, 2 }
 0x12e   : > { %1519 = vset.pattern.permute.xlu1 %v1565_v1 }
 0x12f   : > { %v567_v53 = vadd.f32 %v566_v52, %v565_v51 }
 0x131   : > { %v568_v54 = vrot.slane %v567_v53, 1 }
 0x133   : > { %v569_v55 = vadd.f32 %v568_v54, %v567_v53 }
 0x135   : > { %v570_v56 = vmul.f32 0.25, %v569_v55 }
 0x137   : > { %v571_v57 = vadd.f32 1e-05, %v570_v56 }
 0x139   : > { %1521 = vrsqrt.f32 %v571_v57 }
 0x143   : > { %v1522_v58 = vpop.eup %1521 }
 0x144   : > { %v573_v59 = vmul.f32 %v1522_v58, %v561_v47 }
 0x146   : > { %v579_v61 = vmul.f32 %v577_v60, %v573_v59 }
 0x148   : > { %v585_v63 = vadd.f32 %v583_v62, %v579_v61 }
 0x14a   : > { %v587_v0 = vmul.f32 0.70710677, %v585_v63  ;;  %v586_v30 = vmul.f32 0.5, %v585_v63  ;;  %v723_v63 = vpop.permute.xlu1 %722 }
 0x14c   : > { %v590_v3 = vand.u32 2147483647, %v587_v0  ;;  %vm588_vm4 = vcmp.ge.f32.partialorder %v587_v0, 0.0 }
 0x14d   : > { %v589_v28 = vsel %vm588_vm4, 1.0, %v1572_v27 }
 0x14e   : > { %v591_v4 = vmul.f32 0.3275911, %v590_v3  ;;  %v604_v7 = vsub.f32 0.0, %v590_v3 }
 0x150   : > { %v592_v6 = vadd.f32 1.0, %v591_v4  ;;  %v605_v9 = vmul.f32 %v604_v7, %v590_v3  ;;  %v729_v3 = vpop.permute.xlu0 %728 }
 0x152   : > { %1523 = vrcp.f32 %v592_v6  ;;  %v606_v14 = vmul.f32 1.442695, %v605_v9 }
 0x154   : > { %1525 = vpow2.f32 %v606_v14 }
 0x15c   : > { %v1524_v8 = vpop.eup %1523 }
 0x15d   : > { %v595_v12 = vmul.f32 1.0614054, %v1524_v8 }
 0x15e   : > { %v1526_v24 = vpop.eup %1525 }
 0x15f   : > { %v596_v13 = vadd.f32 -1.4531521, %v595_v12 }
 0x161   : > { %v597_v15 = vmul.f32 %v1524_v8, %v596_v13 }
 0x163   : > { %v598_v16 = vadd.f32 1.4214138, %v597_v15 }
 0x165   : > { %v599_v17 = vmul.f32 %v1524_v8, %v598_v16 }
 0x167   : > { %v600_v18 = vadd.f32 -0.28449672, %v599_v17 }
 0x169   : > { %v601_v19 = vmul.f32 %v1524_v8, %v600_v18 }
 0x16b   : > { %v602_v21 = vadd.f32 0.2548296, %v601_v19 }
 0x16d   : > { %v603_v22 = vmul.f32 %v1524_v8, %v602_v21 }
 0x16f   : > { %v608_v25 = vmul.f32 %v1526_v24, %v603_v22 }
 0x171   : > { %v609_v26 = vsub.f32 1.0, %v608_v25 }
 0x173   : > { %v610_v29 = vmul.f32 %v609_v26, %v589_v28 }
 0x175   : > { %v611_v31 = vadd.f32 1.0, %v610_v29 }
 0x177   : > { %v612_v32 = vmul.f32 %v611_v31, %v586_v30 }
 0x179   : > { %1470 = vmatpush3.msk.msra.mxu0 %vm551_vm3, %v612_v32 }
 0x17a   : > { %1472 = vmatmul.mubr.msk.f32.vlgmr.msra.gmra.mrb[0].mxu0 %vm620_vm5, %v613_v33  ;;  %1479 = vmatprep.subr.mxu0 %v1570_v20 }
 0x17b   : > { %1481 = vmatprep.mubr.msk.f32.mxu0 %vm1571_vm0, %v1570_v20 }
 0x24d   : > { %v693_v40 = vpop.f32.mrb[0].mxu0 }
 0x24e   : > { %v694_v41 = vadd.f32 %v693_v40, %v618_v39  ;;  %v1473_v42 = vpop.f32.mrb[1].mxu0  ;;  %v1440_v39 = vld [vmem:[%s1852_s9 + $0x4] sm:$0xf] }
 0x24f   : > { %v1445_v40 = vld [vmem:[%s1853_s10 + $0x4] sm:$0xf]  ;;  %v786_v42 = vadd.s32 3, %v1720_v23 }
 0x250   : > { %v699_v43 = vsel %vm551_vm3, %v694_v41, 0.0 }
 0x251   : > { %v700_v44 = vrot.slane %v699_v43, 4  ;;  %vm788_vm8 = vcmp.lt.s32.totalorder %v786_v42, 128 }
 0x253   : > { %v701_v45 = vadd.f32 %v700_v44, %v699_v43  ;;  %v766_v43 = vpop.permute.xlu1 %765 }
 0x255   : > { %v702_v46 = vrot.slane %v701_v45, 2 }
 0x257   : > { %v703_v47 = vadd.f32 %v702_v46, %v701_v45 }
 0x259   : > { %v704_v48 = vrot.slane %v703_v47, 1 }
 0x25b   : > { %v705_v49 = vadd.f32 %v704_v48, %v703_v47  ;;  %v795_v47 = vpop.permute.xlu1 %794 }
 0x25d   : > { %v706_v50 = vmul.f32 0.25, %v705_v49 }
 0x25f   : > { %v707_v51 = vsub.f32 %v694_v41, %v706_v50  ;;  %v780_v41 = vpop.permute.xlu0 %779 }
 0x261   : > { %v708_v52 = vmul.f32 %v707_v51, %v707_v51 }
 0x263   : > { %v709_v5 = vsel %vm551_vm3, %v708_v52, 0.0  ;;  %v804_v52 = vpop.permute.xlu1 %803 }
 0x264   : > { %v710_v53 = vrot.slane %v709_v5, 4 }
 0x266   : > { %v711_v54 = vadd.f32 %v710_v53, %v709_v5 }
 0x268   : > { %v712_v55 = vrot.slane %v711_v54, 2 }
 0x26a   : > { %v713_v56 = vadd.f32 %v712_v55, %v711_v54 }
 0x26c   : > { %v714_v57 = vrot.slane %v713_v56, 1 }
 0x26e   : > { %v715_v58 = vadd.f32 %v714_v57, %v713_v56 }
 0x270   : > { %v716_v59 = vmul.f32 0.25, %v715_v58 }
 0x272   : > { %v717_v60 = vadd.f32 1e-05, %v716_v59 }
 0x274   : > { %1527 = vrsqrt.f32 %v717_v60 }
 0x27e   : > { %v1528_v61 = vpop.eup %1527 }
 0x27f   : > { %v719_v62 = vmul.f32 %v1528_v61, %v707_v51 }
 0x281   : > { %v725_v0 = vmul.f32 %v723_v63, %v719_v62 }
 0x283   : > { %v731_v4 = vadd.f32 %v729_v3, %v725_v0 }
 0x285   : > { %v733_v6 = vmul.f32 0.70710677, %v731_v4  ;;  %v732_v33 = vmul.f32 0.5, %v731_v4 }
 0x287   : > { %v736_v7 = vand.u32 2147483647, %v733_v6  ;;  %vm734_vm6 = vcmp.ge.f32.partialorder %v733_v6, 0.0 }
 0x288   : > { %v735_v31 = vsel %vm734_vm6, 1.0, %v1572_v27 }
 0x289   : > { %v737_v8 = vmul.f32 0.3275911, %v736_v7  ;;  %v750_v12 = vsub.f32 0.0, %v736_v7 }
 0x28b   : > { %v738_v9 = vadd.f32 1.0, %v737_v8  ;;  %v751_v14 = vmul.f32 %v750_v12, %v736_v7 }
 0x28d   : > { %1529 = vrcp.f32 %v738_v9  ;;  %v752_v17 = vmul.f32 1.442695, %v751_v14  ;;  %v835_v14 = vpop.permute.xlu1 %834 }
 0x28f   : > { %1531 = vpow2.f32 %v752_v17 }
 0x297   : > { %v1530_v13 = vpop.eup %1529 }
 0x298   : > { %v741_v15 = vmul.f32 1.0614054, %v1530_v13 }
 0x299   : > { %v1532_v28 = vpop.eup %1531 }
 0x29a   : > { %v742_v16 = vadd.f32 -1.4531521, %v741_v15 }
 0x29c   : > { %v743_v18 = vmul.f32 %v1530_v13, %v742_v16 }
 0x29e   : > { %v744_v19 = vadd.f32 1.4214138, %v743_v18 }
 0x2a0   : > { %v745_v21 = vmul.f32 %v1530_v13, %v744_v19 }
 0x2a2   : > { %v746_v22 = vadd.f32 -0.28449672, %v745_v21 }
 0x2a4   : > { %v747_v24 = vmul.f32 %v1530_v13, %v746_v22 }
 0x2a6   : > { %v748_v25 = vadd.f32 0.2548296, %v747_v24 }
 0x2a8   : > { %v749_v26 = vmul.f32 %v1530_v13, %v748_v25 }
 0x2aa   : > { %v754_v29 = vmul.f32 %v1532_v28, %v749_v26 }
 0x2ac   : > { %v755_v30 = vsub.f32 1.0, %v754_v29 }
 0x2ae   : > { %v756_v32 = vmul.f32 %v755_v30, %v735_v31 }
 0x2b0   : > { %v757_v34 = vadd.f32 1.0, %v756_v32 }
 0x2b2   : > { %v758_v35 = vmul.f32 %v757_v34, %v732_v33 }
 0x2b4   : > { %v1760_v36 = vadd.f32 %v758_v35, %v1686_v11  ;;  %v771_v11 = vadd.s32 4294967293, %v1720_v23 }
 0x2b6   : > { %v760_v37 = vmul.f32 %v1684_v10, %v1760_v36  ;;  %vm772_vm7 = vcmp.ge.s32.totalorder %v771_v11, 0 }
 0x2b8   : > { %769 = vrot.lane.b32.xlu0 %v760_v37, %s1573_s27  ;;  %v768_v48 = vmul.f32 %v766_v43, %v760_v37  ;;  %s1432_s27 = sshll.u32 %s1859_s30, 2 }
 0x2b9   : > { %s473_s16 = scalar_lea.vmem %s1857_s14, %s1432_s27 }
 0x2bc   : > { %784 = vrot.lane.b32.xlu0 %v760_v37, %s1574_s28 }
 0x2c0   : > { %840 = vperm.xlu0 %1513, %v1440_v39  }
 0x2c4   : > { %983 = vperm.xlu0 %1513, %v1445_v40  }
 0x2c8   : > { %1517 = vset.pattern.permute.xlu0 %v1566_v2 }
 0x2c9   : > { %1026 = vperm.xlu0 %1517, %v1750_v38  }
 0x2cd   : > { %1520 = vset.pattern.permute.xlu0 %v1565_v1 }
 0x32a   : > { %v770_v44 = vpop.permute.xlu0 %769 }
 0x32b   : > { %v777_v45 = vsel %vm772_vm7, %v770_v44, 0.0 }
 0x32c   : > { %v782_v46 = vmul.f32 %v780_v41, %v777_v45 }
 0x32e   : > { %v785_v49 = vpop.permute.xlu0 %784  ;;  %v783_v2 = vadd.f32 %v782_v46, %v768_v48  ;;  %v1448_v48 = vld [vmem:[%s1848_s5 + $0x8] sm:$0xf] }
 0x32f   : > { %v792_v50 = vsel %vm788_vm8, %v785_v49, 0.0  ;;  %1064 = vperm.xlu1 %1519, %v1448_v48   ;;  %v1449_v49 = vld [vmem:[%s1851_s8 + $0x8] sm:$0xf] }
 0x330   : > { %v797_v51 = vmul.f32 %v795_v47, %v792_v50  ;;  %v1441_v47 = vld [vmem:[%s1849_s6 + $0x4] sm:$0xf]  ;;  %v1452_v50 = vld [vmem:[%s1850_s7 + $0x8] sm:$0xf] }
 0x332   : > { %v798_v38 = vadd.f32 %v797_v51, %v783_v2  ;;  %v1455_v2 = vld [vmem:[%s1853_s10 + $0x8] sm:$0xf]  ;;  %v878_v51 = vpop.permute.xlu1 %877 }
 0x333   : > { %1095 = vperm.xlu1 %1519, %v1449_v49   ;;  %v1450_v49 = vld [vmem:[%s1852_s9 + $0x8] sm:$0xf] }
 0x334   : > { %v806_v1 = vadd.f32 %v804_v52, %v798_v38 }
 0x336   : > { %v811_v5 = vsel %vm551_vm3, %v806_v1, 0.0 }
 0x337   : > { %v812_v53 = vrot.slane %v811_v5, 4  ;;  %1138 = vperm.xlu1 %1519, %v1452_v50   ;;  %v1456_v50 = vld [vmem:[%s1854_s11 + $0x8] sm:$0xf] }
 0x339   : > { %v813_v54 = vadd.f32 %v812_v53, %v811_v5 }
 0x33b   : > { %v814_v55 = vrot.slane %v813_v54, 2  ;;  %1244 = vperm.xlu1 %1519, %v1455_v2  }
 0x33d   : > { %v815_v56 = vadd.f32 %v814_v55, %v813_v54 }
 0x33f   : > { %v816_v57 = vrot.slane %v815_v56, 1  ;;  %v841_v16 = vpop.permute.xlu0 %840 }
 0x341   : > { %v817_v58 = vadd.f32 %v816_v57, %v815_v56 }
 0x343   : > { %v818_v59 = vmul.f32 0.25, %v817_v58 }
 0x345   : > { %v819_v60 = vsub.f32 %v806_v1, %v818_v59 }
 0x347   : > { %v820_v61 = vmul.f32 %v819_v60, %v819_v60 }
 0x349   : > { %v821_v62 = vsel %vm551_vm3, %v820_v61, 0.0 }
 0x34a   : > { %v822_v63 = vrot.slane %v821_v62, 4 }
 0x34c   : > { %v823_v0 = vadd.f32 %v822_v63, %v821_v62 }
 0x34e   : > { %v824_v3 = vrot.slane %v823_v0, 2 }
 0x350   : > { %v825_v4 = vadd.f32 %v824_v3, %v823_v0 }
 0x352   : > { %v826_v6 = vrot.slane %v825_v4, 1 }
 0x354   : > { %v827_v7 = vadd.f32 %v826_v6, %v825_v4 }
 0x356   : > { %v828_v8 = vmul.f32 0.25, %v827_v7 }
 0x358   : > { %v829_v9 = vadd.f32 1e-05, %v828_v8 }
 0x35a   : > { %1533 = vrsqrt.f32 %v829_v9 }
 0x364   : > { %v1534_v12 = vpop.eup %1533 }
 0x365   : > { %v831_v13 = vmul.f32 %v1534_v12, %v819_v60 }
 0x367   : > { %v837_v15 = vmul.f32 %v835_v14, %v831_v13  ;;  %v984_v14 = vpop.permute.xlu0 %983 }
 0x369   : > { %v843_v17 = vadd.f32 %v841_v16, %v837_v15  ;;  %v990_v16 = vpop.permute.xlu1 %989 }
 0x36b   : > { %v845_v18 = vmul.f32 0.70710677, %v843_v17  ;;  %v844_v44 = vmul.f32 0.5, %v843_v17  ;;  %v1027_v2 = vpop.permute.xlu0 %1026 }
 0x36d   : > { %v848_v19 = vand.u32 2147483647, %v845_v18  ;;  %vm846_vm9 = vcmp.ge.f32.partialorder %v845_v18, 0.0 }
 0x36e   : > { %v847_v42 = vsel %vm846_vm9, 1.0, %v1572_v27 }
 0x36f   : > { %v849_v21 = vmul.f32 0.3275911, %v848_v19  ;;  %v862_v24 = vsub.f32 0.0, %v848_v19 }
 0x371   : > { %v850_v22 = vadd.f32 1.0, %v849_v21  ;;  %v863_v26 = vmul.f32 %v862_v24, %v848_v19 }
 0x373   : > { %1535 = vrcp.f32 %v850_v22  ;;  %v864_v30 = vmul.f32 1.442695, %v863_v26 }
 0x375   : > { %1537 = vpow2.f32 %v864_v30 }
 0x37d   : > { %v1536_v25 = vpop.eup %1535 }
 0x37e   : > { %v853_v28 = vmul.f32 1.0614054, %v1536_v25 }
 0x37f   : > { %v1538_v40 = vpop.eup %1537 }
 0x380   : > { %v854_v29 = vadd.f32 -1.4531521, %v853_v28 }
 0x382   : > { %v855_v31 = vmul.f32 %v1536_v25, %v854_v29 }
 0x384   : > { %v856_v32 = vadd.f32 1.4214138, %v855_v31 }
 0x386   : > { %v857_v33 = vmul.f32 %v1536_v25, %v856_v32 }
 0x388   : > { %v858_v34 = vadd.f32 -0.28449672, %v857_v33 }
 0x38a   : > { %v859_v35 = vmul.f32 %v1536_v25, %v858_v34 }
 0x38c   : > { %v860_v37 = vadd.f32 0.2548296, %v859_v35 }
 0x38e   : > { %v861_v39 = vmul.f32 %v1536_v25, %v860_v37 }
 0x390   : > { %v866_v11 = vmul.f32 %v1538_v40, %v861_v39 }
 0x392   : > { %v867_v41 = vsub.f32 1.0, %v866_v11 }
 0x394   : > { %v868_v43 = vmul.f32 %v867_v41, %v847_v42 }
 0x396   : > { %v869_v45 = vadd.f32 1.0, %v868_v43 }
 0x398   : > { %v870_v46 = vmul.f32 %v869_v45, %v844_v44 }
 0x39a   : > { %1475 = vmatpush3.msk.msra.mxu1 %vm551_vm3, %v870_v46 }
 0x39b   : > { %1477 = vmatmul.mubr.msk.f32.vlgmr.msra.gmra.mrb[0].mxu1 %vm620_vm5, %v1441_v47  ;;  %1484 = vmatprep.subr.mxu1 %v1570_v20 }
 0x39c   : > { %1486 = vmatprep.mubr.msk.f32.mxu1 %vm1571_vm0, %v1570_v20  ;;  %v1284_v20 = vld [vmem:[%s1856_s13] sm:$0xf] }
 0x39d   : > { %1287 = vperm.xlu1 %1519, %v1284_v20   ;;  %v1047_v20 = vadd.s32 9, %v1720_v23 }
 0x39f   : > { %vm1049_vm12 = vcmp.lt.s32.totalorder %v1047_v20, 128 }
 0x46e   : > { %v952_v38 = vpop.f32.mrb[0].mxu1 }
 0x46f   : > { %v953_v52 = vadd.f32 %v952_v38, %v878_v51  ;;  %v1478_v1 = vpop.f32.mrb[1].mxu1  ;;  %v1041_v51 = vpop.permute.xlu1 %1040 }
 0x471   : > { %v960_v5 = vsel %vm551_vm3, %v953_v52, 0.0 }
 0x472   : > { %v961_v53 = vrot.slane %v960_v5, 4 }
 0x474   : > { %v962_v54 = vadd.f32 %v961_v53, %v960_v5  ;;  %v1056_v5 = vpop.permute.xlu1 %1055 }
 0x476   : > { %v963_v55 = vrot.slane %v962_v54, 2 }
 0x478   : > { %v964_v56 = vadd.f32 %v963_v55, %v962_v54 }
 0x47a   : > { %v965_v57 = vrot.slane %v964_v56, 1 }
 0x47c   : > { %v966_v58 = vadd.f32 %v965_v57, %v964_v56 }
 0x47e   : > { %v967_v59 = vmul.f32 0.25, %v966_v58 }
 0x480   : > { %v968_v60 = vsub.f32 %v953_v52, %v967_v59  ;;  %v1065_v59 = vpop.permute.xlu1 %1064 }
 0x482   : > { %v969_v61 = vmul.f32 %v968_v60, %v968_v60 }
 0x484   : > { %v970_v62 = vsel %vm551_vm3, %v969_v61, 0.0 }
 0x485   : > { %v971_v63 = vrot.slane %v970_v62, 4 }
 0x487   : > { %v972_v0 = vadd.f32 %v971_v63, %v970_v62 }
 0x489   : > { %v973_v3 = vrot.slane %v972_v0, 2 }
 0x48b   : > { %v974_v4 = vadd.f32 %v973_v3, %v972_v0 }
 0x48d   : > { %v975_v6 = vrot.slane %v974_v4, 1 }
 0x48f   : > { %v976_v7 = vadd.f32 %v975_v6, %v974_v4 }
 0x491   : > { %v977_v8 = vmul.f32 0.25, %v976_v7 }
 0x493   : > { %v978_v9 = vadd.f32 1e-05, %v977_v8 }
 0x495   : > { %1539 = vrsqrt.f32 %v978_v9 }
 0x49f   : > { %v1540_v12 = vpop.eup %1539 }
 0x4a0   : > { %v980_v13 = vmul.f32 %v1540_v12, %v968_v60 }
 0x4a2   : > { %v986_v15 = vmul.f32 %v984_v14, %v980_v13 }
 0x4a4   : > { %v992_v17 = vadd.f32 %v990_v16, %v986_v15 }
 0x4a6   : > { %v994_v18 = vmul.f32 0.70710677, %v992_v17  ;;  %v993_v44 = vmul.f32 0.5, %v992_v17 }
 0x4a8   : > { %v997_v19 = vand.u32 2147483647, %v994_v18  ;;  %vm995_vm10 = vcmp.ge.f32.partialorder %v994_v18, 0.0 }
 0x4a9   : > { %v996_v42 = vsel %vm995_vm10, 1.0, %v1572_v27 }
 0x4aa   : > { %v998_v21 = vmul.f32 0.3275911, %v997_v19  ;;  %v1011_v24 = vsub.f32 0.0, %v997_v19 }
 0x4ac   : > { %v999_v22 = vadd.f32 1.0, %v998_v21  ;;  %v1012_v26 = vmul.f32 %v1011_v24, %v997_v19  ;;  %v1096_v24 = vpop.permute.xlu1 %1095 }
 0x4ae   : > { %1541 = vrcp.f32 %v999_v22  ;;  %v1013_v30 = vmul.f32 1.442695, %v1012_v26 }
 0x4b0   : > { %1543 = vpow2.f32 %v1013_v30 }
 0x4b8   : > { %v1542_v25 = vpop.eup %1541 }
 0x4b9   : > { %v1002_v28 = vmul.f32 1.0614054, %v1542_v25 }
 0x4ba   : > { %v1544_v40 = vpop.eup %1543 }
 0x4bb   : > { %v1003_v29 = vadd.f32 -1.4531521, %v1002_v28 }
 0x4bd   : > { %v1004_v31 = vmul.f32 %v1542_v25, %v1003_v29 }
 0x4bf   : > { %v1005_v32 = vadd.f32 1.4214138, %v1004_v31 }
 0x4c1   : > { %v1006_v33 = vmul.f32 %v1542_v25, %v1005_v32 }
 0x4c3   : > { %v1007_v34 = vadd.f32 -0.28449672, %v1006_v33 }
 0x4c5   : > { %v1008_v35 = vmul.f32 %v1542_v25, %v1007_v34 }
 0x4c7   : > { %v1009_v37 = vadd.f32 0.2548296, %v1008_v35 }
 0x4c9   : > { %v1010_v39 = vmul.f32 %v1542_v25, %v1009_v37 }
 0x4cb   : > { %v1015_v11 = vmul.f32 %v1544_v40, %v1010_v39 }
 0x4cd   : > { %v1016_v41 = vsub.f32 1.0, %v1015_v11 }
 0x4cf   : > { %v1017_v43 = vmul.f32 %v1016_v41, %v996_v42 }
 0x4d1   : > { %v1018_v45 = vadd.f32 1.0, %v1017_v43 }
 0x4d3   : > { %v1019_v46 = vmul.f32 %v1018_v45, %v993_v44 }
 0x4d5   : > { %v1805_v47 = vadd.f32 %v1019_v46, %v1760_v36  ;;  %v1032_v36 = vadd.s32 4294967287, %v1720_v23 }
 0x4d7   : > { %v1021_v48 = vmul.f32 %v1684_v10, %v1805_v47  ;;  %vm1033_vm11 = vcmp.ge.s32.totalorder %v1032_v36, 0 }
 0x4d9   : > { %1030 = vrot.lane.b32.xlu0 %v1021_v48, %s1575_s17  ;;  %v1029_v53 = vmul.f32 %v1027_v2, %v1021_v48 }
 0x4dd   : > { %1045 = vrot.lane.b32.xlu0 %v1021_v48, %s1576_s18 }
 0x4e1   : > { %1101 = vperm.xlu0 %1520, %v1450_v49  }
 0x4e5   : > { %1250 = vperm.xlu0 %1520, %v1456_v50  }
 0x54b   : > { %v1031_v38 = vpop.permute.xlu0 %1030 }
 0x54c   : > { %v1038_v52 = vsel %vm1033_vm11, %v1031_v38, 0.0 }
 0x54d   : > { %v1043_v1 = vmul.f32 %v1041_v51, %v1038_v52  ;;  %v1451_v52 = vld [vmem:[%s1849_s6 + $0x8] sm:$0xf] }
 0x54f   : > { %v1046_v54 = vpop.permute.xlu0 %1045  ;;  %v1044_v56 = vadd.f32 %v1043_v1, %v1029_v53  ;;  %v1139_v1 = vpop.permute.xlu1 %1138 }
 0x550   : > { %v1053_v55 = vsel %vm1049_vm12, %v1046_v54, 0.0 }
 0x551   : > { %v1058_v57 = vmul.f32 %v1056_v5, %v1053_v55 }
 0x553   : > { %v1059_v58 = vadd.f32 %v1058_v57, %v1044_v56 }
 0x555   : > { %v1067_v60 = vadd.f32 %v1065_v59, %v1059_v58 }
 0x557   : > { %v1072_v61 = vsel %vm551_vm3, %v1067_v60, 0.0 }
 0x558   : > { %v1073_v62 = vrot.slane %v1072_v61, 4 }
 0x55a   : > { %v1074_v63 = vadd.f32 %v1073_v62, %v1072_v61 }
 0x55c   : > { %v1075_v0 = vrot.slane %v1074_v63, 2 }
 0x55e   : > { %v1076_v23 = vadd.f32 %v1075_v0, %v1074_v63 }
 0x560   : > { %v1077_v3 = vrot.slane %v1076_v23, 1  ;;  %v1102_v26 = vpop.permute.xlu0 %1101 }
 0x562   : > { %v1078_v4 = vadd.f32 %v1077_v3, %v1076_v23 }
 0x564   : > { %v1079_v6 = vmul.f32 0.25, %v1078_v4 }
 0x566   : > { %v1080_v7 = vsub.f32 %v1067_v60, %v1079_v6 }
 0x568   : > { %v1081_v8 = vmul.f32 %v1080_v7, %v1080_v7 }
 0x56a   : > { %v1082_v9 = vsel %vm551_vm3, %v1081_v8, 0.0 }
 0x56b   : > { %v1083_v12 = vrot.slane %v1082_v9, 4 }
 0x56d   : > { %v1084_v13 = vadd.f32 %v1083_v12, %v1082_v9 }
 0x56f   : > { %v1085_v14 = vrot.slane %v1084_v13, 2 }
 0x571   : > { %v1086_v15 = vadd.f32 %v1085_v14, %v1084_v13 }
 0x573   : > { %v1087_v16 = vrot.slane %v1086_v15, 1 }
 0x575   : > { %v1088_v17 = vadd.f32 %v1087_v16, %v1086_v15  ;;  %v1245_v16 = vpop.permute.xlu1 %1244 }
 0x577   : > { %v1089_v18 = vmul.f32 0.25, %v1088_v17 }
 0x579   : > { %v1090_v19 = vadd.f32 1e-05, %v1089_v18  ;;  %v1251_v18 = vpop.permute.xlu0 %1250 }
 0x57b   : > { %1545 = vrsqrt.f32 %v1090_v19 }
 0x585   : > { %v1546_v21 = vpop.eup %1545 }
 0x586   : > { %v1092_v22 = vmul.f32 %v1546_v21, %v1080_v7 }
 0x588   : > { %v1098_v25 = vmul.f32 %v1096_v24, %v1092_v22 }
 0x58a   : > { %v1104_v28 = vadd.f32 %v1102_v26, %v1098_v25 }
 0x58c   : > { %v1106_v29 = vmul.f32 0.70710677, %v1104_v28  ;;  %v1105_v20 = vmul.f32 0.5, %v1104_v28 }
 0x58e   : > { %v1109_v30 = vand.u32 2147483647, %v1106_v29  ;;  %vm1107_vm13 = vcmp.ge.f32.partialorder %v1106_v29, 0.0 }
 0x58f   : > { %v1108_v36 = vsel %vm1107_vm13, 1.0, %v1572_v27 }
 0x590   : > { %v1110_v31 = vmul.f32 0.3275911, %v1109_v30  ;;  %v1123_v33 = vsub.f32 0.0, %v1109_v30 }
 0x592   : > { %v1111_v32 = vadd.f32 1.0, %v1110_v31  ;;  %v1124_v35 = vmul.f32 %v1123_v33, %v1109_v30 }
 0x594   : > { %1547 = vrcp.f32 %v1111_v32  ;;  %v1125_v40 = vmul.f32 1.442695, %v1124_v35 }
 0x596   : > { %1549 = vpow2.f32 %v1125_v40 }
 0x59e   : > { %v1548_v34 = vpop.eup %1547 }
 0x59f   : > { %v1114_v37 = vmul.f32 1.0614054, %v1548_v34 }
 0x5a0   : > { %v1550_v48 = vpop.eup %1549 }
 0x5a1   : > { %v1115_v39 = vadd.f32 -1.4531521, %v1114_v37 }
 0x5a3   : > { %v1116_v11 = vmul.f32 %v1548_v34, %v1115_v39 }
 0x5a5   : > { %v1117_v41 = vadd.f32 1.4214138, %v1116_v11 }
 0x5a7   : > { %v1118_v42 = vmul.f32 %v1548_v34, %v1117_v41 }
 0x5a9   : > { %v1119_v43 = vadd.f32 -0.28449672, %v1118_v42 }
 0x5ab   : > { %v1120_v44 = vmul.f32 %v1548_v34, %v1119_v43 }
 0x5ad   : > { %v1121_v45 = vadd.f32 0.2548296, %v1120_v44 }
 0x5af   : > { %v1122_v46 = vmul.f32 %v1548_v34, %v1121_v45 }
 0x5b1   : > { %v1127_v49 = vmul.f32 %v1550_v48, %v1122_v46 }
 0x5b3   : > { %v1128_v50 = vsub.f32 1.0, %v1127_v49 }
 0x5b5   : > { %v1129_v2 = vmul.f32 %v1128_v50, %v1108_v36 }
 0x5b7   : > { %v1130_v51 = vadd.f32 1.0, %v1129_v2  ;;  %v1283_v2 = vld [vmem:[%s1855_s12] sm:$0xf] }
 0x5b9   : > { %v1131_v38 = vmul.f32 %v1130_v51, %v1105_v20  ;;  %v1288_v20 = vpop.permute.xlu1 %1287 }
 0x5bb   : > { %1480 = vmatpush3.msk.msra.mxu0 %vm551_vm3, %v1131_v38 }
 0x5bc   : > { %1482 = vmatmul.mubr.msk.f32.vlgmr.msra.gmra.mrb[2].mxu0 %vm620_vm5, %v1451_v52 }
 0x68f   : > { %v1213_v5 = vpop.f32.mrb[2].mxu0 }
 0x690   : > { %v1214_v53 = vadd.f32 %v1213_v5, %v1139_v1  ;;  %v1483_v54 = vpop.f32.mrb[3].mxu0 }
 0x692   : > { %v1221_v55 = vsel %vm551_vm3, %v1214_v53, 0.0 }
 0x693   : > { %v1222_v56 = vrot.slane %v1221_v55, 4 }
 0x695   : > { %v1223_v57 = vadd.f32 %v1222_v56, %v1221_v55 }
 0x697   : > { %v1224_v58 = vrot.slane %v1223_v57, 2 }
 0x699   : > { %v1225_v59 = vadd.f32 %v1224_v58, %v1223_v57 }
 0x69b   : > { %v1226_v60 = vrot.slane %v1225_v59, 1 }
 0x69d   : > { %v1227_v61 = vadd.f32 %v1226_v60, %v1225_v59 }
 0x69f   : > { %v1228_v62 = vmul.f32 0.25, %v1227_v61 }
 0x6a1   : > { %v1229_v63 = vsub.f32 %v1214_v53, %v1228_v62 }
 0x6a3   : > { %v1230_v0 = vmul.f32 %v1229_v63, %v1229_v63 }
 0x6a5   : > { %v1231_v23 = vsel %vm551_vm3, %v1230_v0, 0.0 }
 0x6a6   : > { %v1232_v3 = vrot.slane %v1231_v23, 4 }
 0x6a8   : > { %v1233_v4 = vadd.f32 %v1232_v3, %v1231_v23 }
 0x6aa   : > { %v1234_v6 = vrot.slane %v1233_v4, 2 }
 0x6ac   : > { %v1235_v7 = vadd.f32 %v1234_v6, %v1233_v4 }
 0x6ae   : > { %v1236_v8 = vrot.slane %v1235_v7, 1 }
 0x6b0   : > { %v1237_v9 = vadd.f32 %v1236_v8, %v1235_v7 }
 0x6b2   : > { %v1238_v12 = vmul.f32 0.25, %v1237_v9 }
 0x6b4   : > { %v1239_v13 = vadd.f32 1e-05, %v1238_v12 }
 0x6b6   : > { %1551 = vrsqrt.f32 %v1239_v13 }
 0x6c0   : > { %v1552_v14 = vpop.eup %1551 }
 0x6c1   : > { %v1241_v15 = vmul.f32 %v1552_v14, %v1229_v63 }
 0x6c3   : > { %v1247_v17 = vmul.f32 %v1245_v16, %v1241_v15 }
 0x6c5   : > { %v1253_v19 = vadd.f32 %v1251_v18, %v1247_v17 }
 0x6c7   : > { %v1255_v21 = vmul.f32 0.70710677, %v1253_v19  ;;  %v1254_v46 = vmul.f32 0.5, %v1253_v19 }
 0x6c9   : > { %v1258_v22 = vand.u32 2147483647, %v1255_v21  ;;  %vm1256_vm14 = vcmp.ge.f32.partialorder %v1255_v21, 0.0 }
 0x6ca   : > { %v1257_v44 = vsel %vm1256_vm14, 1.0, %v1572_v27 }
 0x6cb   : > { %v1259_v24 = vmul.f32 0.3275911, %v1258_v22  ;;  %v1272_v26 = vsub.f32 0.0, %v1258_v22 }
 0x6cd   : > { %v1260_v25 = vadd.f32 1.0, %v1259_v24  ;;  %v1273_v29 = vmul.f32 %v1272_v26, %v1258_v22 }
 0x6cf   : > { %1553 = vrcp.f32 %v1260_v25  ;;  %v1274_v32 = vmul.f32 1.442695, %v1273_v29 }
 0x6d1   : > { %1555 = vpow2.f32 %v1274_v32 }
 0x6d9   : > { %v1554_v28 = vpop.eup %1553 }
 0x6da   : > { %v1263_v30 = vmul.f32 1.0614054, %v1554_v28 }
 0x6db   : > { %v1556_v41 = vpop.eup %1555 }
 0x6dc   : > { %v1264_v31 = vadd.f32 -1.4531521, %v1263_v30 }
 0x6de   : > { %v1265_v33 = vmul.f32 %v1554_v28, %v1264_v31 }
 0x6e0   : > { %v1266_v34 = vadd.f32 1.4214138, %v1265_v33 }
 0x6e2   : > { %v1267_v35 = vmul.f32 %v1554_v28, %v1266_v34 }
 0x6e4   : > { %v1268_v37 = vadd.f32 -0.28449672, %v1267_v35 }
 0x6e6   : > { %v1269_v39 = vmul.f32 %v1554_v28, %v1268_v37 }
 0x6e8   : > { %v1270_v40 = vadd.f32 0.2548296, %v1269_v39 }
 0x6ea   : > { %v1271_v11 = vmul.f32 %v1554_v28, %v1270_v40 }
 0x6ec   : > { %v1276_v42 = vmul.f32 %v1556_v41, %v1271_v11 }
 0x6ee   : > { %v1277_v43 = vsub.f32 1.0, %v1276_v42 }
 0x6f0   : > { %v1278_v45 = vmul.f32 %v1277_v43, %v1257_v44 }
 0x6f2   : > { %v1279_v48 = vadd.f32 1.0, %v1278_v45 }
 0x6f4   : > { %v1280_v49 = vmul.f32 %v1279_v48, %v1254_v46 }
 0x6f6   : > { %v1281_v50 = vadd.f32 %v1280_v49, %v1805_v47 }
 0x6f8   : > { %v1282_v36 = vmul.f32 %v1684_v10, %v1281_v50 }
 0x6fa   : > { %1485 = vmatpush3.msk.msra.mxu1 %vm551_vm3, %v1282_v36 }
 0x6fb   : > { %1487 = vmatmul.mubr.msk.f32.vlgmr.msra.gmra.mrb[2].mxu1 %vm620_vm5, %v1283_v2 }
 0x7ce   : > { %v1362_v51 = vpop.f32.mrb[2].mxu1 }
 0x7cf   : > { %v1363_v27 = vadd.f32 %v1362_v51, %v1288_v20  ;;  %v1488_v38 = vpop.f32.mrb[3].mxu1 }
 0x7d1   : > { %v1366_v47 = vmul.f32 %v1684_v10, %v1363_v27 }
 0x7d3   : > { %1367 = vst [vmem:[%s473_s16] sm:$0xf] %v1366_v47 }
 0x7d4 PF: > { %s24_s29 = sadd.s32 1, %s1563_s29  }
 0x7d5   : > { %p21_p4 = scmp.ge.s32.totalorder %s24_s29, 4  }
 0x7d7   :  { %23 = sbr.rel (!%p21_p4) target bundleno = 1 (0x1), region = 125 }

// kernel: closed_call.18
= control target key start
LH: loop header
LB: loop body
LE: loop exit
PB: predicated region body
PF: predicated region fallthrough
CT: control target
= control target key end

     0   :  { %s1783_s18 = smov 0   ;;  %s2001_s0 = inlined_call_operand.vmem [shape: f32[2,1,128], index: 0, kind: input, shape index: {}]   ;;  %s2002_s1 = inlined_call_operand.vmem [shape: f32[2,1,128], index: 1, kind: input, shape index: {}]   ;;  %s2003_s2 = inlined_call_operand.vmem [shape: f32[2,4,128], index: 2, kind: input, shape index: {}]   ;;  %s2004_s3 = inlined_call_operand.vmem [shape: f32[4,1], index: 3, kind: input, shape index: {}]   ;;  %s2005_s4 = inlined_call_operand.vmem [shape: f32[4,1], index: 4, kind: input, shape index: {}]   ;;  %s2006_s5 = inlined_call_operand.vmem [shape: f32[3,4,3], index: 5, kind: input, shape index: {}]   ;;  %s2007_s6 = inlined_call_operand.vmem [shape: f32[3,4,1], index: 6, kind: input, shape index: {}]   ;;  %s2008_s7 = inlined_call_operand.vmem [shape: f32[3,4,4], index: 7, kind: input, shape index: {}]   ;;  %s2009_s8 = inlined_call_operand.vmem [shape: f32[3,4,1], index: 8, kind: input, shape index: {}]   ;;  %s2010_s9 = inlined_call_operand.vmem [shape: f32[3,4,1], index: 9, kind: input, shape index: {}]   ;;  %s2011_s10 = inlined_call_operand.vmem [shape: f32[3,4,1], index: 10, kind: input, shape index: {}]   ;;  %s2012_s11 = inlined_call_operand.vmem [shape: f32[3,4,1], index: 11, kind: input, shape index: {}]   ;;  %s2013_s12 = inlined_call_operand.vmem [shape: f32[3,4,1], index: 12, kind: input, shape index: {}]   ;;  %s2014_s13 = inlined_call_operand.vmem [shape: f32[29,4], index: 13, kind: input, shape index: {}]   ;;  %s2015_s14 = inlined_call_operand.vmem [shape: f32[29,1], index: 14, kind: input, shape index: {}]   ;;  %s2016_s15 = inlined_call_operand.vmem [shape: f32[2,29,128], index: 15, kind: output, shape index: {}]  }
   0x1 LB: > { %s1540_s19 = sadd.s32 4294967295, %s1689_s18   ;;  %p1544_p0 = scmp.ge.s32.totalorder %s1689_s18, 1  ;;  %s1689_s18 = sphi %s1783_s18, %s25_s18  }
   0x2   : > { %p452_p1 = scmp.lt.s32.totalorder %s1689_s18, 3 }
   0x4   : > { %p453_p2 = pnand %p1544_p0, %p452_p1 }
   0x5   : > { %v522_v0 = vld [vmem:[%s2004_s3] sm:$0xf] (!%p453_p2)  ;;  %v1691_v1 = vmov (!%p453_p2), 0   ;;  %v1692_v2 = vmov (!%p453_p2), 1   ;;  %v1693_v5 = vmov (!%p453_p2), 2   ;;  %p505_p3 = scmp.lt.s32.totalorder (!%p453_p2), %s1540_s19, 1  ;;  %v544_v23 = vlaneseq (!%p453_p2) }
   0x6   : > { %456 = sbr.rel (%p453_p2) target bundleno = 2012 (0x7dc), region = 80  ;;  %1634 = vset.pattern.permute.xlu0 (!%p453_p2), %v1691_v1  ;;  %1635 = vset.pattern.permute.xlu1 (!%p453_p2), %v1692_v2  ;;  %v553_v3 = vld [vmem:[%s2006_s5] sm:$0xf] (!%p453_p2)  ;;  %s1694_s23 = smov (!%p453_p2), 127   ;;  %v1552_v20 = vld [vmem:[%s2006_s5 + $0x4] sm:$0xf] (!%p453_p2) }
   0x7   : > { %525 = vperm.xlu0 (!%p453_p2), %1634, %v522_v0   ;;  %556 = vperm.xlu1 (!%p453_p2), %1635, %v553_v3   ;;  %v535_v4 = vld [vmem:[%s2005_s4] sm:$0xf] (!%p453_p2)  ;;  %s1695_s24 = smov (!%p453_p2), 1   ;;  %v1696_v22 = vmov (!%p453_p2), 0.0   ;;  %vm1697_vm0 = vmmov (!%p453_p2), 0   ;;  %v1858_v25 = vand.u32 (!%p453_p2), 127, %v544_v23 }
   0x8   : > { %v590_v15 = vld [vmem:[%s2007_s6] sm:$0xf] (!%p453_p2)  ;;  %1591 = vmatprep.subr.mxu0 (!%p453_p2), %v1696_v22  ;;  %1596 = vmatprep.subr.mxu1 (!%p453_p2), %v1696_v22  ;;  %vm599_vm3 = vcmask (!%p453_p2), 1043456   ;;  %vm668_vm5 = vcmask (!%p453_p2), 31744   ;;  %s1699_s27 = smov (!%p453_p2), 3  }
   0x9   : > { %v598_v16 = vld [vmem:[%s2011_s10] sm:$0xf] (!%p453_p2)  ;;  %1593 = vmatprep.mubr.msk.f32.mxu0 (!%p453_p2), %vm1697_vm0, %v1696_v22  ;;  %1598 = vmatprep.mubr.msk.f32.mxu1 (!%p453_p2), %vm1697_vm0, %v1696_v22  ;;  %v562_v27 = vadd.s32 (!%p453_p2), 4294967295, %v1858_v25  ;;  %v577_v30 = vadd.s32 (!%p453_p2), 1, %v1858_v25 }
   0xa   : > { %v597_v17 = vld [vmem:[%s2010_s9] sm:$0xf] (!%p453_p2) }
   0xb   : > { %538 = vperm.xlu0 (!%p453_p2), %1634, %v535_v4   ;;  %1636 = vset.pattern.permute.xlu1 (!%p453_p2), %v1691_v1  ;;  %v746_v18 = vld [vmem:[%s2013_s12] sm:$0xf] (!%p453_p2)  ;;  %vm563_vm1 = vcmp.ge.s32.totalorder (!%p453_p2), %v562_v27, 0  ;;  %vm579_vm2 = vcmp.lt.s32.totalorder (!%p453_p2), %v577_v30, 128 }
   0xc   : > { %570 = vperm.xlu1 (!%p453_p2), %1636, %v553_v3   ;;  %v662_v19 = vld [vmem:[%s2009_s8] sm:$0xf] (!%p453_p2) }
   0xd   : > { %s2018_s19 = smov (!%p505_p3, %s1540_s19), 1  ;;  %v745_v21 = vld [vmem:[%s2012_s11] sm:$0xf] }
   0xe   : > { %s507_s28 = scalar_lea.vmem %s2001_s0, %s2018_s19  ;;  %s1545_s29 = sshll.u32 %s2018_s19, 2 }
   0xf   : > { %1637 = vset.pattern.permute.xlu0 %v1693_v5  ;;  %v1548_v7 = vld [vmem:[%s507_s28] ss:$0 sm:$0xff]  ;;  %s514_s17 = scalar_lea.vmem %s2003_s2, %s1545_s29  ;;  %s1819_s22 = scalar_lea.vmem %s2002_s1, %s2018_s19 }
  0x10   : > { %585 = vperm.xlu0 %1637, %v553_v3   ;;  %v542_v10 = vld [vmem:[%s514_s17] sm:$0xf]  ;;  %s1700_s28 = smov 125   ;;  %s1579_s16 = sshll.u32 %s2018_s19, 5 }
  0x11   : > { %v1822_v12 = vld [vmem:[%s1819_s22] ss:$0 sm:$0xff]  ;;  %s519_s21 = scalar_lea.vmem %s2016_s15, %s1579_s16 }
  0x14   : > { %1638 = vset.pattern.permute.xlu0 %v1691_v1 }
  0x86   : > { %v526_v6 = vpop.permute.xlu0 %525  ;;  %v557_v24 = vpop.permute.xlu1 %556 }
  0x87   : > { %v534_v8 = vmul.f32 %v1548_v7, %v526_v6 }
  0x8a   : > { %v539_v9 = vpop.permute.xlu0 %538 }
  0x8b   : > { %v541_v11 = vadd.f32 %v539_v9, %v534_v8  ;;  %v571_v26 = vpop.permute.xlu1 %570 }
  0x8d   : > { %v1824_v13 = vadd.f32 %v542_v10, %v541_v11 }
  0x8f   : > { %v552_v14 = vmul.f32 %v1822_v12, %v1824_v13  ;;  %v586_v28 = vpop.permute.xlu0 %585 }
  0x91   : > { %575 = vrot.lane.b32.xlu0 %v552_v14, %s1694_s23  ;;  %560 = vrot.lane.b32.xlu1 %v552_v14, %s1695_s24  ;;  %v559_v34 = vmul.f32 %v557_v24, %v552_v14  ;;  %s1701_s23 = smov 9   ;;  %s1702_s24 = smov 119  }
  0x95   : > { %593 = vperm.xlu1 %1636, %v590_v15   ;;  %630 = vperm.xlu0 %1638, %v598_v16  }
  0x99   : > { %624 = vperm.xlu1 %1636, %v597_v17   ;;  %776 = vperm.xlu0 %1638, %v746_v18  }
  0x9d   : > { %665 = vperm.xlu1 %1636, %v662_v19   ;;  %827 = vperm.xlu0 %1638, %v1552_v20  }
  0xa1   : > { %770 = vperm.xlu1 %1636, %v745_v21  }
  0xa5   : > { %1639 = vset.pattern.permute.xlu1 %v1692_v2 }
  0xa6   : > { %813 = vperm.xlu1 %1639, %v1552_v20  }
  0xaa   : > { %1640 = vset.pattern.permute.xlu1 %v1693_v5 }
  0xab   : > { %842 = vperm.xlu1 %1640, %v1552_v20  }
  0xaf   : > { %1641 = vset.pattern.permute.xlu1 %v1691_v1 }
 0x103   : > { %v561_v29 = vpop.permute.xlu1 %560  ;;  %v576_v32 = vpop.permute.xlu0 %575 }
 0x104   : > { %v568_v31 = vsel %vm563_vm1, %v561_v29, 0.0  ;;  %v583_v35 = vsel %vm579_vm2, %v576_v32, 0.0  ;;  %v1698_v29 = vmov -1.0  }
 0x105   : > { %v573_v33 = vmul.f32 %v571_v26, %v568_v31  ;;  %v588_v37 = vmul.f32 %v586_v28, %v583_v35  ;;  %v661_v35 = vld [vmem:[%s2008_s7] sm:$0xf] }
 0x107   : > { %v574_v36 = vadd.f32 %v573_v33, %v559_v34 }
 0x109   : > { %v589_v38 = vadd.f32 %v588_v37, %v574_v36  ;;  %v1553_v36 = vld [vmem:[%s2007_s6 + $0x4] sm:$0xf] }
 0x10a   : > { %851 = vperm.xlu1 %1641, %v1553_v36   ;;  %v1554_v37 = vld [vmem:[%s2010_s9 + $0x4] sm:$0xf] }
 0x10e   : > { %882 = vperm.xlu1 %1641, %v1554_v37  }
 0x114   : > { %v594_v39 = vpop.permute.xlu1 %593  ;;  %v631_v0 = vpop.permute.xlu0 %630 }
 0x115   : > { %v596_v40 = vadd.f32 %v594_v39, %v589_v38  ;;  %v1557_v38 = vld [vmem:[%s2009_s8 + $0x4] sm:$0xf] }
 0x116   : > { %925 = vperm.xlu1 %1641, %v1557_v38   ;;  %v1561_v39 = vld [vmem:[%s2013_s12 + $0x4] sm:$0xf] }
 0x117   : > { %v600_v41 = vsel %vm599_vm3, %v596_v40, 0.0 }
 0x118   : > { %v601_v42 = vrot.slane %v600_v41, 4  ;;  %v625_v62 = vpop.permute.xlu1 %624 }
 0x11a   : > { %v602_v43 = vadd.f32 %v601_v42, %v600_v41  ;;  %1037 = vperm.xlu1 %1641, %v1561_v39   ;;  %v1555_v39 = vld [vmem:[%s2011_s10 + $0x4] sm:$0xf] }
 0x11c   : > { %v603_v44 = vrot.slane %v602_v43, 2 }
 0x11e   : > { %v604_v45 = vadd.f32 %v603_v44, %v602_v43 }
 0x120   : > { %v605_v46 = vrot.slane %v604_v45, 1 }
 0x122   : > { %v606_v47 = vadd.f32 %v605_v46, %v604_v45 }
 0x124   : > { %v608_v48 = vmul.f32 0.25, %v606_v47 }
 0x126   : > { %v609_v49 = vsub.f32 %v596_v40, %v608_v48  ;;  %v666_v40 = vpop.permute.xlu1 %665 }
 0x128   : > { %v610_v50 = vmul.f32 %v609_v49, %v609_v49 }
 0x12a   : > { %v611_v51 = vsel %vm599_vm3, %v610_v50, 0.0 }
 0x12b   : > { %v612_v52 = vrot.slane %v611_v51, 4 }
 0x12d   : > { %v613_v53 = vadd.f32 %v612_v52, %v611_v51 }
 0x12f   : > { %v614_v54 = vrot.slane %v613_v53, 2 }
 0x131   : > { %v615_v55 = vadd.f32 %v614_v54, %v613_v53 }
 0x133   : > { %v616_v56 = vrot.slane %v615_v55, 1 }
 0x135   : > { %v617_v57 = vadd.f32 %v616_v56, %v615_v55 }
 0x137   : > { %v618_v58 = vmul.f32 0.25, %v617_v57 }
 0x139   : > { %v619_v59 = vadd.f32 1e-05, %v618_v58 }
 0x13b   : > { %1646 = vrsqrt.f32 %v619_v59 }
 0x145   : > { %v1647_v60 = vpop.eup %1646 }
 0x146   : > { %v621_v61 = vmul.f32 %v1647_v60, %v609_v49 }
 0x148   : > { %v627_v63 = vmul.f32 %v625_v62, %v621_v61 }
 0x14a   : > { %v633_v3 = vadd.f32 %v631_v0, %v627_v63  ;;  %v771_v0 = vpop.permute.xlu1 %770 }
 0x14c   : > { %v635_v4 = vmul.f32 0.70710677, %v633_v3  ;;  %v634_v32 = vmul.f32 0.5, %v633_v3 }
 0x14e   : > { %v638_v6 = vand.u32 2147483647, %v635_v4  ;;  %vm636_vm4 = vcmp.ge.f32.partialorder %v635_v4, 0.0  ;;  %v777_v4 = vpop.permute.xlu0 %776 }
 0x14f   : > { %v637_v30 = vsel %vm636_vm4, 1.0, %v1698_v29 }
 0x150   : > { %v639_v7 = vmul.f32 0.3275911, %v638_v6  ;;  %v652_v9 = vsub.f32 0.0, %v638_v6 }
 0x152   : > { %v640_v8 = vadd.f32 1.0, %v639_v7  ;;  %v653_v11 = vmul.f32 %v652_v9, %v638_v6 }
 0x154   : > { %1648 = vrcp.f32 %v640_v8  ;;  %v654_v16 = vmul.f32 1.442695, %v653_v11 }
 0x156   : > { %1650 = vpow2.f32 %v654_v16 }
 0x15e   : > { %v1649_v10 = vpop.eup %1648 }
 0x15f   : > { %v643_v14 = vmul.f32 1.0614054, %v1649_v10 }
 0x160   : > { %v1651_v26 = vpop.eup %1650 }
 0x161   : > { %v644_v15 = vadd.f32 -1.4531521, %v643_v14 }
 0x163   : > { %v645_v17 = vmul.f32 %v1649_v10, %v644_v15 }
 0x165   : > { %v646_v18 = vadd.f32 1.4214138, %v645_v17 }
 0x167   : > { %v647_v19 = vmul.f32 %v1649_v10, %v646_v18 }
 0x169   : > { %v648_v20 = vadd.f32 -0.28449672, %v647_v19 }
 0x16b   : > { %v649_v21 = vmul.f32 %v1649_v10, %v648_v20 }
 0x16d   : > { %v650_v23 = vadd.f32 0.2548296, %v649_v21 }
 0x16f   : > { %v651_v24 = vmul.f32 %v1649_v10, %v650_v23 }
 0x171   : > { %v656_v27 = vmul.f32 %v1651_v26, %v651_v24 }
 0x173   : > { %v657_v28 = vsub.f32 1.0, %v656_v27 }
 0x175   : > { %v658_v31 = vmul.f32 %v657_v28, %v637_v30 }
 0x177   : > { %v659_v33 = vadd.f32 1.0, %v658_v31 }
 0x179   : > { %v660_v34 = vmul.f32 %v659_v33, %v634_v32 }
 0x17b   : > { %1592 = vmatpush3.msk.msra.mxu0 %vm599_vm3, %v660_v34 }
 0x17c   : > { %1594 = vmatmul.mubr.msk.f32.vlgmr.msra.gmra.mrb[0].mxu0 %vm668_vm5, %v661_v35  ;;  %1601 = vmatprep.subr.mxu0 %v1696_v22 }
 0x17d   : > { %1603 = vmatprep.mubr.msk.f32.mxu0 %vm1697_vm0, %v1696_v22  ;;  %v1888_v22 = vld [vmem:[%s2006_s5 + $0x8] sm:$0xf] }
 0x17e   : > { %1088 = vperm.xlu1 %1641, %v1888_v22  }
 0x182   : > { %1643 = vset.pattern.permute.xlu1 %v1693_v5 }
 0x183   : > { %1103 = vperm.xlu1 %1643, %v1888_v22  }
 0x187   : > { %1644 = vset.pattern.permute.xlu1 %v1691_v1 }
 0x24f   : > { %v741_v41 = vpop.f32.mrb[0].mxu0 }
 0x250   : > { %v742_v42 = vadd.f32 %v741_v41, %v666_v40  ;;  %v1595_v43 = vpop.f32.mrb[1].mxu0  ;;  %v1560_v40 = vld [vmem:[%s2012_s11 + $0x4] sm:$0xf]  ;;  %v828_v41 = vpop.permute.xlu0 %827 }
 0x251   : > { %v814_v43 = vpop.permute.xlu1 %813 }
 0x252   : > { %v747_v44 = vsel %vm599_vm3, %v742_v42, 0.0 }
 0x253   : > { %v748_v45 = vrot.slane %v747_v44, 4 }
 0x255   : > { %v749_v46 = vadd.f32 %v748_v45, %v747_v44 }
 0x257   : > { %v750_v47 = vrot.slane %v749_v46, 2 }
 0x259   : > { %v751_v48 = vadd.f32 %v750_v47, %v749_v46  ;;  %v843_v47 = vpop.permute.xlu1 %842 }
 0x25b   : > { %v752_v49 = vrot.slane %v751_v48, 1 }
 0x25d   : > { %v753_v50 = vadd.f32 %v752_v49, %v751_v48 }
 0x25f   : > { %v754_v51 = vmul.f32 0.25, %v753_v50 }
 0x261   : > { %v755_v52 = vsub.f32 %v742_v42, %v754_v51  ;;  %v834_v42 = vadd.s32 3, %v1858_v25 }
 0x263   : > { %v756_v53 = vmul.f32 %v755_v52, %v755_v52  ;;  %vm836_vm8 = vcmp.lt.s32.totalorder %v834_v42, 128 }
 0x265   : > { %v757_v5 = vsel %vm599_vm3, %v756_v53, 0.0 }
 0x266   : > { %v758_v54 = vrot.slane %v757_v5, 4 }
 0x268   : > { %v759_v55 = vadd.f32 %v758_v54, %v757_v5 }
 0x26a   : > { %v760_v56 = vrot.slane %v759_v55, 2 }
 0x26c   : > { %v761_v57 = vadd.f32 %v760_v56, %v759_v55 }
 0x26e   : > { %v762_v58 = vrot.slane %v761_v57, 1 }
 0x270   : > { %v763_v59 = vadd.f32 %v762_v58, %v761_v57 }
 0x272   : > { %v764_v60 = vmul.f32 0.25, %v763_v59 }
 0x274   : > { %v765_v61 = vadd.f32 1e-05, %v764_v60 }
 0x276   : > { %1652 = vrsqrt.f32 %v765_v61 }
 0x280   : > { %v1653_v62 = vpop.eup %1652 }
 0x281   : > { %v767_v63 = vmul.f32 %v1653_v62, %v755_v52  ;;  %v852_v52 = vpop.permute.xlu1 %851 }
 0x283   : > { %v773_v3 = vmul.f32 %v771_v0, %v767_v63 }
 0x285   : > { %v779_v6 = vadd.f32 %v777_v4, %v773_v3 }
 0x287   : > { %v781_v7 = vmul.f32 0.70710677, %v779_v6  ;;  %v780_v34 = vmul.f32 0.5, %v779_v6 }
 0x289   : > { %v784_v8 = vand.u32 2147483647, %v781_v7  ;;  %vm782_vm6 = vcmp.ge.f32.partialorder %v781_v7, 0.0 }
 0x28a   : > { %v783_v32 = vsel %vm782_vm6, 1.0, %v1698_v29 }
 0x28b   : > { %v785_v9 = vmul.f32 0.3275911, %v784_v8  ;;  %v798_v11 = vsub.f32 0.0, %v784_v8 }
 0x28d   : > { %v786_v10 = vadd.f32 1.0, %v785_v9  ;;  %v799_v15 = vmul.f32 %v798_v11, %v784_v8 }
 0x28f   : > { %1654 = vrcp.f32 %v786_v10  ;;  %v800_v18 = vmul.f32 1.442695, %v799_v15 }
 0x291   : > { %1656 = vpow2.f32 %v800_v18 }
 0x299   : > { %v1655_v14 = vpop.eup %1654 }
 0x29a   : > { %v789_v16 = vmul.f32 1.0614054, %v1655_v14 }
 0x29b   : > { %v1657_v28 = vpop.eup %1656 }
 0x29c   : > { %v790_v17 = vadd.f32 -1.4531521, %v789_v16 }
 0x29e   : > { %v791_v19 = vmul.f32 %v1655_v14, %v790_v17 }
 0x2a0   : > { %v792_v20 = vadd.f32 1.4214138, %v791_v19 }
 0x2a2   : > { %v793_v21 = vmul.f32 %v1655_v14, %v792_v20 }
 0x2a4   : > { %v794_v23 = vadd.f32 -0.28449672, %v793_v21 }
 0x2a6   : > { %v795_v24 = vmul.f32 %v1655_v14, %v794_v23 }
 0x2a8   : > { %v796_v26 = vadd.f32 0.2548296, %v795_v24 }
 0x2aa   : > { %v797_v27 = vmul.f32 %v1655_v14, %v796_v26  ;;  %v883_v14 = vpop.permute.xlu1 %882 }
 0x2ac   : > { %v802_v30 = vmul.f32 %v1657_v28, %v797_v27 }
 0x2ae   : > { %v803_v31 = vsub.f32 1.0, %v802_v30 }
 0x2b0   : > { %v804_v33 = vmul.f32 %v803_v31, %v783_v32 }
 0x2b2   : > { %v805_v35 = vadd.f32 1.0, %v804_v33 }
 0x2b4   : > { %v806_v36 = vmul.f32 %v805_v35, %v780_v34 }
 0x2b6   : > { %v1898_v37 = vadd.f32 %v806_v36, %v1824_v13  ;;  %v819_v13 = vadd.s32 4294967293, %v1858_v25 }
 0x2b8   : > { %v808_v38 = vmul.f32 %v1822_v12, %v1898_v37  ;;  %vm820_vm7 = vcmp.ge.s32.totalorder %v819_v13, 0 }
 0x2ba   : > { %817 = vrot.lane.b32.xlu0 %v808_v38, %s1699_s27  ;;  %v816_v48 = vmul.f32 %v814_v43, %v808_v38 }
 0x2be   : > { %832 = vrot.lane.b32.xlu0 %v808_v38, %s1700_s28 }
 0x2c2   : > { %888 = vperm.xlu0 %1638, %v1555_v39  }
 0x2c6   : > { %1031 = vperm.xlu0 %1638, %v1560_v40  }
 0x2ca   : > { %1642 = vset.pattern.permute.xlu0 %v1692_v2 }
 0x2cb   : > { %1074 = vperm.xlu0 %1642, %v1888_v22  }
 0x2cf   : > { %1645 = vset.pattern.permute.xlu0 %v1691_v1 }
 0x32c   : > { %v818_v44 = vpop.permute.xlu0 %817 }
 0x32d   : > { %v825_v45 = vsel %vm820_vm7, %v818_v44, 0.0 }
 0x32e   : > { %v830_v46 = vmul.f32 %v828_v41, %v825_v45 }
 0x330   : > { %v833_v49 = vpop.permute.xlu0 %832  ;;  %v831_v2 = vadd.f32 %v830_v46, %v816_v48  ;;  %v1556_v46 = vld [vmem:[%s2008_s7 + $0x4] sm:$0xf]  ;;  %v1564_v48 = vld [vmem:[%s2010_s9 + $0x8] sm:$0xf] }
 0x331   : > { %v840_v50 = vsel %vm836_vm8, %v833_v49, 0.0  ;;  %v1567_v49 = vld [vmem:[%s2009_s8 + $0x8] sm:$0xf] }
 0x332   : > { %v845_v51 = vmul.f32 %v843_v47, %v840_v50  ;;  %v1563_v47 = vld [vmem:[%s2007_s6 + $0x8] sm:$0xf] }
 0x333   : > { %1112 = vperm.xlu1 %1644, %v1563_v47   ;;  %v1570_v50 = vld [vmem:[%s2012_s11 + $0x8] sm:$0xf] }
 0x334   : > { %v846_v22 = vadd.f32 %v845_v51, %v831_v2  ;;  %v1335_v2 = vld [vmem:[%s2015_s14] sm:$0xff]  ;;  %v1337_v51 = vld [vmem:[%s2015_s14 + $0x10] sm:$0xff] }
 0x336   : > { %v854_v1 = vadd.f32 %v852_v52, %v846_v22  ;;  %v926_v22 = vpop.permute.xlu1 %925 }
 0x337   : > { %1143 = vperm.xlu1 %1644, %v1564_v48  }
 0x338   : > { %v859_v53 = vsel %vm599_vm3, %v854_v1, 0.0 }
 0x339   : > { %v860_v5 = vrot.slane %v859_v53, 4 }
 0x33b   : > { %v861_v54 = vadd.f32 %v860_v5, %v859_v53  ;;  %1186 = vperm.xlu1 %1644, %v1567_v49   ;;  %v1565_v49 = vld [vmem:[%s2011_s10 + $0x8] sm:$0xf] }
 0x33d   : > { %v862_v55 = vrot.slane %v861_v54, 2 }
 0x33f   : > { %v863_v56 = vadd.f32 %v862_v55, %v861_v54  ;;  %1292 = vperm.xlu1 %1644, %v1570_v50   ;;  %v1571_v50 = vld [vmem:[%s2013_s12 + $0x8] sm:$0xf] }
 0x341   : > { %v864_v57 = vrot.slane %v863_v56, 1  ;;  %v889_v16 = vpop.permute.xlu0 %888 }
 0x343   : > { %v865_v58 = vadd.f32 %v864_v57, %v863_v56  ;;  %1341 = vperm.xlu1 %1644, %v1335_v2   ;;  %v1338_v2 = vld [vmem:[%s2015_s14 + $0x18] sm:$0x1f] }
 0x345   : > { %v866_v59 = vmul.f32 0.25, %v865_v58 }
 0x347   : > { %v867_v60 = vsub.f32 %v854_v1, %v866_v59  ;;  %1351 = vperm.xlu1 %1644, %v1337_v51   ;;  %v1080_v51 = vadd.s32 4294967287, %v1858_v25 }
 0x349   : > { %v868_v61 = vmul.f32 %v867_v60, %v867_v60  ;;  %vm1081_vm11 = vcmp.ge.s32.totalorder %v1080_v51, 0 }
 0x34b   : > { %v869_v62 = vsel %vm599_vm3, %v868_v61, 0.0 }
 0x34c   : > { %v870_v63 = vrot.slane %v869_v62, 4 }
 0x34e   : > { %v871_v0 = vadd.f32 %v870_v63, %v869_v62 }
 0x350   : > { %v872_v3 = vrot.slane %v871_v0, 2 }
 0x352   : > { %v873_v4 = vadd.f32 %v872_v3, %v871_v0 }
 0x354   : > { %v874_v6 = vrot.slane %v873_v4, 1 }
 0x356   : > { %v875_v7 = vadd.f32 %v874_v6, %v873_v4 }
 0x358   : > { %v876_v8 = vmul.f32 0.25, %v875_v7 }
 0x35a   : > { %v877_v9 = vadd.f32 1e-05, %v876_v8 }
 0x35c   : > { %1658 = vrsqrt.f32 %v877_v9 }
 0x366   : > { %v1659_v10 = vpop.eup %1658 }
 0x367   : > { %v879_v11 = vmul.f32 %v1659_v10, %v867_v60 }
 0x369   : > { %v885_v15 = vmul.f32 %v883_v14, %v879_v11 }
 0x36b   : > { %v891_v17 = vadd.f32 %v889_v16, %v885_v15  ;;  %v1032_v15 = vpop.permute.xlu0 %1031 }
 0x36d   : > { %v893_v18 = vmul.f32 0.70710677, %v891_v17  ;;  %v892_v43 = vmul.f32 0.5, %v891_v17  ;;  %v1038_v17 = vpop.permute.xlu1 %1037 }
 0x36f   : > { %v896_v19 = vand.u32 2147483647, %v893_v18  ;;  %vm894_vm9 = vcmp.ge.f32.partialorder %v893_v18, 0.0 }
 0x370   : > { %v895_v41 = vsel %vm894_vm9, 1.0, %v1698_v29 }
 0x371   : > { %v897_v20 = vmul.f32 0.3275911, %v896_v19  ;;  %v910_v23 = vsub.f32 0.0, %v896_v19 }
 0x373   : > { %v898_v21 = vadd.f32 1.0, %v897_v20  ;;  %v911_v26 = vmul.f32 %v910_v23, %v896_v19 }
 0x375   : > { %1660 = vrcp.f32 %v898_v21  ;;  %v912_v30 = vmul.f32 1.442695, %v911_v26 }
 0x377   : > { %1662 = vpow2.f32 %v912_v30 }
 0x37f   : > { %v1661_v24 = vpop.eup %1660 }
 0x380   : > { %v901_v27 = vmul.f32 1.0614054, %v1661_v24 }
 0x381   : > { %v1663_v39 = vpop.eup %1662 }
 0x382   : > { %v902_v28 = vadd.f32 -1.4531521, %v901_v27 }
 0x384   : > { %v903_v31 = vmul.f32 %v1661_v24, %v902_v28 }
 0x386   : > { %v904_v32 = vadd.f32 1.4214138, %v903_v31 }
 0x388   : > { %v905_v33 = vmul.f32 %v1661_v24, %v904_v32 }
 0x38a   : > { %v906_v34 = vadd.f32 -0.28449672, %v905_v33 }
 0x38c   : > { %v907_v35 = vmul.f32 %v1661_v24, %v906_v34 }
 0x38e   : > { %v908_v36 = vadd.f32 0.2548296, %v907_v35 }
 0x390   : > { %v909_v38 = vmul.f32 %v1661_v24, %v908_v36 }
 0x392   : > { %v914_v40 = vmul.f32 %v1663_v39, %v909_v38 }
 0x394   : > { %v915_v13 = vsub.f32 1.0, %v914_v40 }
 0x396   : > { %v916_v42 = vmul.f32 %v915_v13, %v895_v41 }
 0x398   : > { %v917_v44 = vadd.f32 1.0, %v916_v42 }
 0x39a   : > { %v918_v45 = vmul.f32 %v917_v44, %v892_v43 }
 0x39c   : > { %1597 = vmatpush3.msk.msra.mxu1 %vm599_vm3, %v918_v45 }
 0x39d   : > { %1599 = vmatmul.mubr.msk.f32.vlgmr.msra.gmra.mrb[0].mxu1 %vm668_vm5, %v1556_v46 }
 0x470   : > { %v1000_v52 = vpop.f32.mrb[0].mxu1 }
 0x471   : > { %v1001_v1 = vadd.f32 %v1000_v52, %v926_v22  ;;  %v1600_v53 = vpop.f32.mrb[1].mxu1  ;;  %v1075_v22 = vpop.permute.xlu0 %1074  ;;  %v1095_v52 = vadd.s32 9, %v1858_v25 }
 0x473   : > { %v1008_v5 = vsel %vm599_vm3, %v1001_v1, 0.0  ;;  %vm1097_vm12 = vcmp.lt.s32.totalorder %v1095_v52, 128 }
 0x474   : > { %v1009_v54 = vrot.slane %v1008_v5, 4 }
 0x476   : > { %v1010_v55 = vadd.f32 %v1009_v54, %v1008_v5 }
 0x478   : > { %v1011_v56 = vrot.slane %v1010_v55, 2 }
 0x47a   : > { %v1012_v57 = vadd.f32 %v1011_v56, %v1010_v55 }
 0x47c   : > { %v1013_v58 = vrot.slane %v1012_v57, 1 }
 0x47e   : > { %v1014_v59 = vadd.f32 %v1013_v58, %v1012_v57 }
 0x480   : > { %v1015_v60 = vmul.f32 0.25, %v1014_v59 }
 0x482   : > { %v1016_v61 = vsub.f32 %v1001_v1, %v1015_v60  ;;  %v1089_v1 = vpop.permute.xlu1 %1088 }
 0x484   : > { %v1017_v62 = vmul.f32 %v1016_v61, %v1016_v61 }
 0x486   : > { %v1018_v63 = vsel %vm599_vm3, %v1017_v62, 0.0  ;;  %v1104_v55 = vpop.permute.xlu1 %1103 }
 0x487   : > { %v1019_v0 = vrot.slane %v1018_v63, 4 }
 0x489   : > { %v1020_v3 = vadd.f32 %v1019_v0, %v1018_v63 }
 0x48a   : > { %v1113_v62 = vpop.permute.xlu1 %1112 }
 0x48b   : > { %v1021_v4 = vrot.slane %v1020_v3, 2 }
 0x48d   : > { %v1022_v6 = vadd.f32 %v1021_v4, %v1020_v3 }
 0x48f   : > { %v1023_v7 = vrot.slane %v1022_v6, 1 }
 0x491   : > { %v1024_v8 = vadd.f32 %v1023_v7, %v1022_v6 }
 0x493   : > { %v1025_v9 = vmul.f32 0.25, %v1024_v8 }
 0x495   : > { %v1026_v10 = vadd.f32 1e-05, %v1025_v9 }
 0x497   : > { %1664 = vrsqrt.f32 %v1026_v10 }
 0x4a1   : > { %v1665_v11 = vpop.eup %1664 }
 0x4a2   : > { %v1028_v14 = vmul.f32 %v1665_v11, %v1016_v61 }
 0x4a4   : > { %v1034_v16 = vmul.f32 %v1032_v15, %v1028_v14 }
 0x4a6   : > { %v1040_v18 = vadd.f32 %v1038_v17, %v1034_v16 }
 0x4a8   : > { %v1042_v19 = vmul.f32 0.70710677, %v1040_v18  ;;  %v1041_v44 = vmul.f32 0.5, %v1040_v18 }
 0x4aa   : > { %v1045_v20 = vand.u32 2147483647, %v1042_v19  ;;  %vm1043_vm10 = vcmp.ge.f32.partialorder %v1042_v19, 0.0 }
 0x4ab   : > { %v1044_v42 = vsel %vm1043_vm10, 1.0, %v1698_v29 }
 0x4ac   : > { %v1046_v21 = vmul.f32 0.3275911, %v1045_v20  ;;  %v1059_v24 = vsub.f32 0.0, %v1045_v20 }
 0x4ae   : > { %v1047_v23 = vadd.f32 1.0, %v1046_v21  ;;  %v1060_v27 = vmul.f32 %v1059_v24, %v1045_v20 }
 0x4b0   : > { %1666 = vrcp.f32 %v1047_v23  ;;  %v1061_v31 = vmul.f32 1.442695, %v1060_v27  ;;  %v1144_v27 = vpop.permute.xlu1 %1143 }
 0x4b2   : > { %1668 = vpow2.f32 %v1061_v31 }
 0x4ba   : > { %v1667_v26 = vpop.eup %1666 }
 0x4bb   : > { %v1050_v28 = vmul.f32 1.0614054, %v1667_v26 }
 0x4bc   : > { %v1669_v40 = vpop.eup %1668 }
 0x4bd   : > { %v1051_v30 = vadd.f32 -1.4531521, %v1050_v28 }
 0x4bf   : > { %v1052_v32 = vmul.f32 %v1667_v26, %v1051_v30 }
 0x4c1   : > { %v1053_v33 = vadd.f32 1.4214138, %v1052_v32 }
 0x4c3   : > { %v1054_v34 = vmul.f32 %v1667_v26, %v1053_v33 }
 0x4c5   : > { %v1055_v35 = vadd.f32 -0.28449672, %v1054_v34 }
 0x4c7   : > { %v1056_v36 = vmul.f32 %v1667_v26, %v1055_v35 }
 0x4c9   : > { %v1057_v38 = vadd.f32 0.2548296, %v1056_v36 }
 0x4cb   : > { %v1058_v39 = vmul.f32 %v1667_v26, %v1057_v38 }
 0x4cd   : > { %v1063_v13 = vmul.f32 %v1669_v40, %v1058_v39 }
 0x4cf   : > { %v1064_v41 = vsub.f32 1.0, %v1063_v13 }
 0x4d1   : > { %v1065_v43 = vmul.f32 %v1064_v41, %v1044_v42 }
 0x4d3   : > { %v1066_v45 = vadd.f32 1.0, %v1065_v43 }
 0x4d5   : > { %v1067_v46 = vmul.f32 %v1066_v45, %v1041_v44 }
 0x4d7   : > { %v1943_v47 = vadd.f32 %v1067_v46, %v1898_v37  ;;  %v1336_v37 = vld [vmem:[%s2015_s14 + $0x8] sm:$0xff] }
 0x4d9   : > { %v1069_v48 = vmul.f32 %v1822_v12, %v1943_v47 }
 0x4db   : > { %1078 = vrot.lane.b32.xlu0 %v1069_v48, %s1701_s23  ;;  %v1077_v56 = vmul.f32 %v1075_v22, %v1069_v48 }
 0x4df   : > { %1093 = vrot.lane.b32.xlu0 %v1069_v48, %s1702_s24 }
 0x4e3   : > { %1149 = vperm.xlu0 %1645, %v1565_v49  }
 0x4e7   : > { %1298 = vperm.xlu0 %1645, %v1571_v50  }
 0x4eb   : > { %1346 = vperm.xlu0 %1645, %v1336_v37  }
 0x4ef   : > { %1356 = vperm.xlu0 %1645, %v1338_v2  }
 0x54d   : > { %v1079_v53 = vpop.permute.xlu0 %1078 }
 0x54e   : > { %v1086_v5 = vsel %vm1081_vm11, %v1079_v53, 0.0 }
 0x54f   : > { %v1091_v54 = vmul.f32 %v1089_v1, %v1086_v5  ;;  %v1566_v5 = vld [vmem:[%s2008_s7 + $0x8] sm:$0xf] }
 0x551   : > { %v1094_v57 = vpop.permute.xlu0 %1093  ;;  %v1092_v59 = vadd.f32 %v1091_v54, %v1077_v56  ;;  %v1331_v54 = vld [vmem:[%s2014_s13] sm:$0xff] }
 0x552   : > { %v1101_v58 = vsel %vm1097_vm12, %v1094_v57, 0.0  ;;  %1608 = vmatprep.mubr.msk.f32.mxu1 %vm668_vm5, %v1331_v54 }
 0x553   : > { %v1106_v60 = vmul.f32 %v1104_v55, %v1101_v58  ;;  %v1187_v55 = vpop.permute.xlu1 %1186 }
 0x555   : > { %v1107_v61 = vadd.f32 %v1106_v60, %v1092_v59 }
 0x557   : > { %v1115_v63 = vadd.f32 %v1113_v62, %v1107_v61 }
 0x559   : > { %v1120_v0 = vsel %vm599_vm3, %v1115_v63, 0.0 }
 0x55a   : > { %v1121_v3 = vrot.slane %v1120_v0, 4 }
 0x55c   : > { %v1122_v4 = vadd.f32 %v1121_v3, %v1120_v0 }
 0x55e   : > { %v1123_v6 = vrot.slane %v1122_v4, 2 }
 0x560   : > { %v1124_v25 = vadd.f32 %v1123_v6, %v1122_v4 }
 0x562   : > { %v1125_v7 = vrot.slane %v1124_v25, 1  ;;  %v1150_v30 = vpop.permute.xlu0 %1149 }
 0x564   : > { %v1126_v8 = vadd.f32 %v1125_v7, %v1124_v25 }
 0x566   : > { %v1127_v9 = vmul.f32 0.25, %v1126_v8 }
 0x568   : > { %v1128_v10 = vsub.f32 %v1115_v63, %v1127_v9 }
 0x56a   : > { %v1129_v11 = vmul.f32 %v1128_v10, %v1128_v10 }
 0x56c   : > { %v1130_v14 = vsel %vm599_vm3, %v1129_v11, 0.0 }
 0x56d   : > { %v1131_v15 = vrot.slane %v1130_v14, 4 }
 0x56f   : > { %v1132_v16 = vadd.f32 %v1131_v15, %v1130_v14 }
 0x571   : > { %v1133_v17 = vrot.slane %v1132_v16, 2 }
 0x573   : > { %v1134_v18 = vadd.f32 %v1133_v17, %v1132_v16 }
 0x575   : > { %v1135_v19 = vrot.slane %v1134_v18, 1 }
 0x577   : > { %v1136_v20 = vadd.f32 %v1135_v19, %v1134_v18 }
 0x579   : > { %v1137_v21 = vmul.f32 0.25, %v1136_v20  ;;  %v1293_v20 = vpop.permute.xlu1 %1292 }
 0x57b   : > { %v1138_v23 = vadd.f32 1e-05, %v1137_v21 }
 0x57d   : > { %1670 = vrsqrt.f32 %v1138_v23  ;;  %v1299_v23 = vpop.permute.xlu0 %1298 }
 0x587   : > { %v1671_v24 = vpop.eup %1670 }
 0x588   : > { %v1140_v26 = vmul.f32 %v1671_v24, %v1128_v10 }
 0x58a   : > { %v1146_v28 = vmul.f32 %v1144_v27, %v1140_v26 }
 0x58c   : > { %v1152_v31 = vadd.f32 %v1150_v30, %v1146_v28 }
 0x58e   : > { %v1154_v32 = vmul.f32 0.70710677, %v1152_v31  ;;  %v1153_v52 = vmul.f32 0.5, %v1152_v31 }
 0x590   : > { %v1157_v33 = vand.u32 2147483647, %v1154_v32  ;;  %vm1155_vm13 = vcmp.ge.f32.partialorder %v1154_v32, 0.0 }
 0x591   : > { %v1156_v51 = vsel %vm1155_vm13, 1.0, %v1698_v29 }
 0x592   : > { %v1158_v34 = vmul.f32 0.3275911, %v1157_v33  ;;  %v1171_v36 = vsub.f32 0.0, %v1157_v33 }
 0x594   : > { %v1159_v35 = vadd.f32 1.0, %v1158_v34  ;;  %v1172_v39 = vmul.f32 %v1171_v36, %v1157_v33 }
 0x596   : > { %1672 = vrcp.f32 %v1159_v35  ;;  %v1173_v41 = vmul.f32 1.442695, %v1172_v39 }
 0x598   : > { %1674 = vpow2.f32 %v1173_v41 }
 0x5a0   : > { %v1673_v38 = vpop.eup %1672 }
 0x5a1   : > { %v1162_v40 = vmul.f32 1.0614054, %v1673_v38 }
 0x5a2   : > { %v1675_v50 = vpop.eup %1674 }
 0x5a3   : > { %v1163_v13 = vadd.f32 -1.4531521, %v1162_v40 }
 0x5a5   : > { %v1164_v42 = vmul.f32 %v1673_v38, %v1163_v13 }
 0x5a7   : > { %v1165_v43 = vadd.f32 1.4214138, %v1164_v42 }
 0x5a9   : > { %v1166_v44 = vmul.f32 %v1673_v38, %v1165_v43 }
 0x5ab   : > { %v1167_v45 = vadd.f32 -0.28449672, %v1166_v44 }
 0x5ad   : > { %v1168_v46 = vmul.f32 %v1673_v38, %v1167_v45 }
 0x5af   : > { %v1169_v48 = vadd.f32 0.2548296, %v1168_v46 }
 0x5b1   : > { %v1170_v49 = vmul.f32 %v1673_v38, %v1169_v48 }
 0x5b3   : > { %v1175_v37 = vmul.f32 %v1675_v50, %v1170_v49 }
 0x5b5   : > { %v1176_v2 = vsub.f32 1.0, %v1175_v37 }
 0x5b7   : > { %v1177_v22 = vmul.f32 %v1176_v2, %v1156_v51 }
 0x5b9   : > { %v1178_v1 = vadd.f32 1.0, %v1177_v22 }
 0x5bb   : > { %v1179_v53 = vmul.f32 %v1178_v1, %v1153_v52  ;;  %v1332_v52 = vld [vmem:[%s2014_s13 + $0x8] sm:$0xff]  ;;  %v1333_v1 = vld [vmem:[%s2014_s13 + $0x10] sm:$0xff] }
 0x5bd   : > { %1602 = vmatpush3.msk.msra.mxu0 %vm599_vm3, %v1179_v53  ;;  %v1342_v53 = vpop.permute.xlu1 %1341 }
 0x5be   : > { %1604 = vmatmul.mubr.msk.f32.vlgmr.msra.gmra.mrb[2].mxu0 %vm668_vm5, %v1566_v5 }
 0x691   : > { %v1261_v56 = vpop.f32.mrb[2].mxu0 }
 0x692   : > { %v1262_v57 = vadd.f32 %v1261_v56, %v1187_v55  ;;  %v1605_v58 = vpop.f32.mrb[3].mxu0 }
 0x694   : > { %v1269_v59 = vsel %vm599_vm3, %v1262_v57, 0.0 }
 0x695   : > { %v1270_v60 = vrot.slane %v1269_v59, 4 }
 0x697   : > { %v1271_v61 = vadd.f32 %v1270_v60, %v1269_v59  ;;  %v1682_v59 = vld [vmem:[%s1819_s22] ss:$0 sm:$0xff] }
 0x699   : > { %v1272_v62 = vrot.slane %v1271_v61, 2 }
 0x69b   : > { %v1273_v63 = vadd.f32 %v1272_v62, %v1271_v61  ;;  %v1352_v62 = vpop.permute.xlu1 %1351 }
 0x69d   : > { %v1274_v0 = vrot.slane %v1273_v63, 1 }
 0x69f   : > { %v1275_v3 = vadd.f32 %v1274_v0, %v1273_v63 }
 0x6a1   : > { %v1276_v4 = vmul.f32 0.25, %v1275_v3 }
 0x6a3   : > { %v1277_v6 = vsub.f32 %v1262_v57, %v1276_v4 }
 0x6a5   : > { %v1278_v25 = vmul.f32 %v1277_v6, %v1277_v6 }
 0x6a7   : > { %v1279_v7 = vsel %vm599_vm3, %v1278_v25, 0.0 }
 0x6a8   : > { %v1280_v8 = vrot.slane %v1279_v7, 4 }
 0x6aa   : > { %v1281_v9 = vadd.f32 %v1280_v8, %v1279_v7 }
 0x6ac   : > { %v1282_v10 = vrot.slane %v1281_v9, 2 }
 0x6ae   : > { %v1283_v11 = vadd.f32 %v1282_v10, %v1281_v9 }
 0x6b0   : > { %v1284_v14 = vrot.slane %v1283_v11, 1 }
 0x6b2   : > { %v1285_v15 = vadd.f32 %v1284_v14, %v1283_v11 }
 0x6b4   : > { %v1286_v16 = vmul.f32 0.25, %v1285_v15 }
 0x6b6   : > { %v1287_v17 = vadd.f32 1e-05, %v1286_v16 }
 0x6b8   : > { %1676 = vrsqrt.f32 %v1287_v17 }
 0x6c2   : > { %v1677_v18 = vpop.eup %1676 }
 0x6c3   : > { %v1289_v19 = vmul.f32 %v1677_v18, %v1277_v6 }
 0x6c5   : > { %v1295_v21 = vmul.f32 %v1293_v20, %v1289_v19 }
 0x6c7   : > { %v1301_v24 = vadd.f32 %v1299_v23, %v1295_v21 }
 0x6c9   : > { %v1303_v26 = vmul.f32 0.70710677, %v1301_v24  ;;  %v1302_v50 = vmul.f32 0.5, %v1301_v24 }
 0x6cb   : > { %v1306_v27 = vand.u32 2147483647, %v1303_v26  ;;  %vm1304_vm14 = vcmp.ge.f32.partialorder %v1303_v26, 0.0 }
 0x6cc   : > { %v1305_v48 = vsel %vm1304_vm14, 1.0, %v1698_v29  ;;  %v1334_v29 = vld [vmem:[%s2014_s13 + $0x18] sm:$0x1f] }
 0x6cd   : > { %v1307_v28 = vmul.f32 0.3275911, %v1306_v27  ;;  %v1320_v31 = vsub.f32 0.0, %v1306_v27 }
 0x6cf   : > { %v1308_v30 = vadd.f32 1.0, %v1307_v28  ;;  %v1321_v33 = vmul.f32 %v1320_v31, %v1306_v27 }
 0x6d1   : > { %1678 = vrcp.f32 %v1308_v30  ;;  %v1322_v36 = vmul.f32 1.442695, %v1321_v33 }
 0x6d3   : > { %1680 = vpow2.f32 %v1322_v36 }
 0x6db   : > { %v1679_v32 = vpop.eup %1678 }
 0x6dc   : > { %v1311_v34 = vmul.f32 1.0614054, %v1679_v32 }
 0x6dd   : > { %v1681_v44 = vpop.eup %1680 }
 0x6de   : > { %v1312_v35 = vadd.f32 -1.4531521, %v1311_v34 }
 0x6e0   : > { %v1313_v38 = vmul.f32 %v1679_v32, %v1312_v35 }
 0x6e2   : > { %v1314_v39 = vadd.f32 1.4214138, %v1313_v38 }
 0x6e4   : > { %v1315_v40 = vmul.f32 %v1679_v32, %v1314_v39 }
 0x6e6   : > { %v1316_v13 = vadd.f32 -0.28449672, %v1315_v40 }
 0x6e8   : > { %v1317_v41 = vmul.f32 %v1679_v32, %v1316_v13 }
 0x6ea   : > { %v1318_v42 = vadd.f32 0.2548296, %v1317_v41 }
 0x6ec   : > { %v1319_v43 = vmul.f32 %v1679_v32, %v1318_v42 }
 0x6ee   : > { %v1324_v45 = vmul.f32 %v1681_v44, %v1319_v43 }
 0x6f0   : > { %v1325_v46 = vsub.f32 1.0, %v1324_v45 }
 0x6f2   : > { %v1326_v49 = vmul.f32 %v1325_v46, %v1305_v48 }
 0x6f4   : > { %v1327_v37 = vadd.f32 1.0, %v1326_v49 }
 0x6f6   : > { %v1328_v2 = vmul.f32 %v1327_v37, %v1302_v50 }
 0x6f8   : > { %v1329_v51 = vadd.f32 %v1328_v2, %v1943_v47  ;;  %v1347_v47 = vpop.permute.xlu0 %1346 }
 0x6fa   : > { %v1330_v22 = vmul.f32 %v1822_v12, %v1329_v51 }
 0x6fc   : > { %1606 = vmatprep.subr.msk.mxu1 %vm599_vm3, %v1330_v22  ;;  %v1357_v58 = vpop.permute.xlu0 %1356 }
 0x6fd   : > { %1607 = vmatpush3.msk.msra.mxu1 %vm599_vm3, %v1330_v22 }
 0x6fe   : > { %1609 = vmatmul.mubr.msk.f32.vlgmr.msra.gmra.mrb[2].mxu1 %vm668_vm5, %v1332_v52 }
 0x6ff   : > { %1611 = vmatprep.mubr.msk.f32.mxu1 %vm668_vm5, %v1333_v1 }
 0x702   : > { %1612 = vmatmul.mubr.msk.f32.gmra.mrb[4].mxu1 %vm668_vm5, %v1334_v29 }
 0x7d1   : > { %v1610_v5 = vpop.f32.mrb[2].mxu1 }
 0x7d2   : > { %v1446_v54 = vadd.f32 %v1610_v5, %v1347_v47  ;;  %v1440_v55 = vpop.f32.mrb[3].mxu1 }
 0x7d3   : > { %v1441_v56 = vadd.f32 %v1440_v55, %v1342_v53 }
 0x7d4   : > { %v1460_v57 = vmul.f32 %v1822_v12, %v1446_v54 }
 0x7d5   : > { %v1459_v60 = vmul.f32 %v1682_v59, %v1441_v56  ;;  %v1613_v61 = vpop.f32.mrb[4].mxu1 }
 0x7d6   : > { %1464 = vst [vmem:[%s519_s21 + $0x8] sm:$0xff] %v1460_v57  ;;  %v1456_v63 = vadd.f32 %v1613_v61, %v1357_v58  ;;  %v1450_v0 = vpop.f32.mrb[5].mxu1 }
 0x7d7   : > { %1463 = vst [vmem:[%s519_s21] sm:$0xff] %v1459_v60  ;;  %v1451_v3 = vadd.f32 %v1450_v0, %v1352_v62 }
 0x7d8   : > { %v1462_v4 = vmul.f32 %v1682_v59, %v1456_v63 }
 0x7d9   : > { %v1461_v6 = vmul.f32 %v1682_v59, %v1451_v3 }
 0x7da   : > { %1466 = vst [vmem:[%s519_s21 + $0x18] sm:$0x1f] %v1462_v4 }
 0x7db   : > { %1465 = vst [vmem:[%s519_s21 + $0x10] sm:$0xff] %v1461_v6 }
 0x7dc PF: > { %s25_s18 = sadd.s32 1, %s1689_s18  }
 0x7dd   : > { %p22_p4 = scmp.ge.s32.totalorder %s25_s18, 4  }
 0x7df   :  { %24 = sbr.rel (!%p22_p4) target bundleno = 1 (0x1), region = 132 }

</bundles_post_ra>
